<compile_context>
chip_gen: v7x
topology: tpu7x:2x2x1
jax: 0.10.0
libtpu: 0.0.40
codegen_flags: <defaults>
</compile_context>

<pallas_src>
import math
from functools import partial

import numpy as np
import jax
import jax.numpy as jnp
from jax.experimental import pallas as pl
from jax.experimental.pallas import tpu as pltpu

PAD = 3          # reflect pad for the 7x7 canonical depthwise grid
KMAX = 7         # all depthwise kernels are zero-embedded into 7x7 taps


# --------------------------- fused Pallas kernel -----------------------------

def _block_kernel(xp_ref, x_ref, w1_ref, b1_ref, a1_ref,
                  wd_ref, bd_ref, a2_ref,
                  w3_ref, b3_ref,
                  ws1_ref, bs1_ref, ase_ref, ws2_ref, bs2_ref,
                  smat_ref, sx_ref, bx_ref,
                  o_ref, yp_scr, z_scr, *, H, W, pad):
    """One grid step == one sample: full BasicBlock forward."""
    K = 2 * pad + 1
    Hp, Wp = H + 2 * pad, W + 2 * pad
    C1 = wd_ref.shape[1]

    # --- stage 1: all 12 branch 1x1 convs (+ folded unify/BN) + PReLU, computed
    #     on the reflect-padded pixels (pointwise ops commute with padding) -----
    xp = xp_ref[0]                                                   # (Hp*Wp, Cl)
    y = jnp.dot(xp, w1_ref[...], preferred_element_type=jnp.float32) + b1_ref[...]
    a1 = a1_ref[...]
    y = jnp.where(y >= 0.0, y, a1 * y)                               # (Hp*Wp, C1)

    # lay the padded activation out as (Hp, Wp, C1) for windowed depthwise access
    for hp in range(Hp):
        yp_scr[hp] = y[hp * Wp:(hp + 1) * Wp, :]

    # --- stage 2: depthwise KxK conv for all branches at once (+ BN + PReLU) ---
    wd = wd_ref[...]                                                 # hoisted taps
    acc = jnp.zeros((H, W, C1), jnp.float32)
    for i in range(K):                                               # static unroll
        for j in range(K):
            acc = acc + yp_scr[i:i + H, j:j + W, :] * wd[i * K + j:i * K + j + 1, :]
    for h in range(H):                                               # back to (H*W, C1)
        z_scr[h * W:(h + 1) * W, :] = acc[h]
    z = z_scr[...] + bd_ref[...]
    a2 = a2_ref[...]
    z = jnp.where(z >= 0.0, z, a2 * z)                               # (H*W, C1)

    # --- stage 3: final 1x1 convs (block-diagonal over the 12 branches) + BN ---
    r = jnp.dot(z, w3_ref[...], preferred_element_type=jnp.float32) + b3_ref[...]

    # --- squeeze-excitation: global avg pool (== AvgPool2d(feature_size)) ->
    #     1x1 -> PReLU -> 1x1 -> sigmoid, then gate the bottleneck outputs ------
    s = jnp.mean(r, axis=0, keepdims=True)                           # (1, C3)
    s1 = jnp.dot(s, ws1_ref[...], preferred_element_type=jnp.float32) + bs1_ref[...]
    ase = ase_ref[...]
    s1 = jnp.where(s1 >= 0.0, s1, ase * s1)
    s2 = jnp.dot(s1, ws2_ref[...], preferred_element_type=jnp.float32) + bs2_ref[...]
    gate = jax.nn.sigmoid(s2)                                        # (1, C3)
    gated = r * gate                                                 # (H*W, C3)

    # --- fused epilogue: ResnetInit residual/transient sums + BasicBlock channel
    #     concat + unify/shortcut skip path, as two selection matmuls -----------
    x = x_ref[0]                                                     # (H*W, Cl)
    out = (jnp.dot(gated, smat_ref[...], preferred_element_type=jnp.float32)
           + jnp.dot(x, sx_ref[...], preferred_element_type=jnp.float32)
           + bx_ref[...])
    o_ref[0] = out


# --------------------------- jitted forward wrapper --------------------------

@jax.jit
def basic_block_forward(x_nchw, fused):
    """x_nchw: (N, last_planes, H, W) float32.  Returns NCHW output."""
    N, Cl, H, W = x_nchw.shape
    assert H == W and H > PAD, "SE global pool / reflect pad assume square H=W>3"
    x = jnp.transpose(x_nchw, (0, 2, 3, 1)).astype(jnp.float32)      # NHWC
    xp = jnp.pad(x, ((0, 0), (PAD, PAD), (PAD, PAD), (0, 0)), mode='reflect')
    Hp, Wp = H + 2 * PAD, W + 2 * PAD
    xp2 = xp.reshape(N, Hp * Wp, Cl)
    x2 = x.reshape(N, H * W, Cl)

    C1 = fused['wd'].shape[1]
    Cf = fused['smat'].shape[1]
    kern = partial(_block_kernel, H=H, W=W, pad=PAD)
    bc = lambda n: (0, 0)                                            # broadcast weights

    out2 = pl.pallas_call(
        kern,
        out_shape=jax.ShapeDtypeStruct((N, H * W, Cf), jnp.float32),
        grid=(N,),
        in_specs=[
            pl.BlockSpec((1, Hp * Wp, Cl), lambda n: (n, 0, 0)),     # padded input
            pl.BlockSpec((1, H * W, Cl), lambda n: (n, 0, 0)),       # raw input (skip path)
            pl.BlockSpec(fused['w1'].shape, bc),
            pl.BlockSpec(fused['b1'].shape, bc),
            pl.BlockSpec(fused['a1'].shape, bc),
            pl.BlockSpec(fused['wd'].shape, bc),
            pl.BlockSpec(fused['bd'].shape, bc),
            pl.BlockSpec(fused['a2'].shape, bc),
            pl.BlockSpec(fused['w3'].shape, bc),
            pl.BlockSpec(fused['b3'].shape, bc),
            pl.BlockSpec(fused['ws1'].shape, bc),
            pl.BlockSpec(fused['bs1'].shape, bc),
            pl.BlockSpec(fused['ase'].shape, bc),
            pl.BlockSpec(fused['ws2'].shape, bc),
            pl.BlockSpec(fused['bs2'].shape, bc),
            pl.BlockSpec(fused['smat'].shape, bc),
            pl.BlockSpec(fused['sx'].shape, bc),
            pl.BlockSpec(fused['bx'].shape, bc),
        ],
        out_specs=pl.BlockSpec((1, H * W, Cf), lambda n: (n, 0, 0)),
        scratch_shapes=[pltpu.VMEM((Hp, Wp, C1), jnp.float32),
                        pltpu.VMEM((H * W, C1), jnp.float32)],
        compiler_params=pltpu.CompilerParams(
            dimension_semantics=("parallel",)),                      # v7x: 2 TCs over batch
    )(xp2, x2, fused['w1'], fused['b1'], fused['a1'], fused['wd'], fused['bd'],
      fused['a2'], fused['w3'], fused['b3'], fused['ws1'], fused['bs1'],
      fused['ase'], fused['ws2'], fused['bs2'], fused['smat'], fused['sx'],
      fused['bx'])

    return jnp.transpose(out2.reshape(N, H, W, Cf), (0, 3, 1, 2))


# --------------------------- parameter packing (host-side glue) --------------

def pack_basic_block(params, cfg):
    """Fold per-branch weights (+ eval BN, unify/shortcut, channel selections and
    the final concat/sums) into the fused tensors consumed by the kernel."""
    d, dd = cfg['out_planes'], cfg['dense_depth']
    Cl, Cin = cfg['last_planes'], cfg['in_planes']
    K = KMAX

    if cfg['is_unify']:
        wu, bu = params['unify']['w'], params['unify']['b'][0]
    else:
        wu, bu = jnp.eye(Cl, dtype=jnp.float32), jnp.zeros((Cl,), jnp.float32)
    Cu = wu.shape[1]
    if cfg['root']:
        wsh, bsh = params['shortcut']['w'], params['shortcut']['b'][0]
    else:
        wsh, bsh = jnp.eye(Cu, dtype=jnp.float32), jnp.zeros((Cu,), jnp.float32)
    Cxf = wsh.shape[1]
    tail = Cxf - 2 * d
    Cf = 2 * d + tail + 3 * dd

    res_idx = np.array(list(range(d)) + list(range(2 * d, Cu)), np.int32)
    tra_idx = np.array(list(range(d, Cu)), np.int32)
    names = ('residual', 'residual_across', 'transient', 'transient_across')
    src_of = dict(residual=res_idx, residual_across=res_idx,
                  transient=tra_idx, transient_across=tra_idx)
    cout_of = dict(residual=d + dd, residual_across=d,
                   transient=d, transient_across=d + dd)

    branches = [(kk, nm, params[f'rir_{kk}'][nm]) for kk in (3, 5, 7) for nm in names]
    C1 = len(branches) * Cin
    C3 = sum(cout_of[nm] for _, nm, _ in branches)

    w1f = jnp.zeros((Cl, C1), jnp.float32)
    b1f = jnp.zeros((C1,), jnp.float32)
    a1f = jnp.zeros((C1,), jnp.float32)
    wdf = jnp.zeros((K * K, C1), jnp.float32)
    bdf = jnp.zeros((C1,), jnp.float32)
    a2f = jnp.zeros((C1,), jnp.float32)
    w3f = jnp.zeros((C1, C3), jnp.float32)
    b3f = jnp.zeros((C3,), jnp.float32)
    ws1f = jnp.zeros((C3, C1), jnp.float32)
    bs1f = jnp.zeros((C1,), jnp.float32)
    asef = jnp.zeros((C1,), jnp.float32)
    ws2f = jnp.zeros((C1, C3), jnp.float32)
    bs2f = jnp.zeros((C3,), jnp.float32)
    smat = np.zeros((C3, Cf), np.float32)

    off3 = 0
    for b, (kk, nm, p) in enumerate(branches):
        c0, c1 = b * Cin, (b + 1) * Cin
        co = cout_of[nm]
        src = src_of[nm]
        ki = (3, 5, 7).index(kk)
        # stage 1: fold unify + residual/transient channel selection into weight
        w1f = w1f.at[:, c0:c1].set(wu[:, src] @ p['w1'])
        b1f = b1f.at[c0:c1].set(bu[src] @ p['w1'] + p['b1'][0])
        a1f = a1f.at[c0:c1].set(jnp.full((Cin,), p['a1'][0, 0]))
        # depthwise: embed the kk x kk taps centered in the canonical 7 x 7 grid
        off = (K - kk) // 2
        wd7 = jnp.pad(p['wd'].reshape(kk, kk, Cin),
                      ((off, off), (off, off), (0, 0))).reshape(K * K, Cin)
        wdf = wdf.at[:, c0:c1].set(wd7)
        bdf = bdf.at[c0:c1].set(p['bd'][0])
        a2f = a2f.at[c0:c1].set(jnp.full((Cin,), p['a2'][0, 0]))
        # stage 3 + SE, block-diagonal per branch
        w3f = w3f.at[c0:c1, off3:off3 + co].set(p['w3'])
        b3f = b3f.at[off3:off3 + co].set(p['b3'][0])
        ws1f = ws1f.at[off3:off3 + co, c0:c1].set(p['ws1'])
        bs1f = bs1f.at[c0:c1].set(p['bs1'][0])
        asef = asef.at[c0:c1].set(jnp.full((Cin,), p['a_se'][0, 0]))
        ws2f = ws2f.at[c0:c1, off3:off3 + co].set(p['ws2'])
        bs2f = bs2f.at[off3:off3 + co].set(p['bs2'][0])
        # epilogue selection: res_k = rr + tr ; tra_k = rt + tt ; BasicBlock concat
        if nm in ('residual', 'transient_across'):           # -> x_residual_k
            smat[off3:off3 + d, 0:d] = np.eye(d, dtype=np.float32)
            smat[off3 + d:off3 + d + dd,
                 2 * d + tail + ki * dd:2 * d + tail + (ki + 1) * dd] = \
                np.eye(dd, dtype=np.float32)
        else:                                                 # -> x_transient_k
            smat[off3:off3 + d, d:2 * d] = np.eye(d, dtype=np.float32)
        off3 += co

    # skip-path contribution: out gets xfin[:, :d] and xfin[:, 2d:] slices, with
    # xfin = shortcut(unify(x)); fold everything into one (Cl, Cf) matrix + bias.
    sx_base = np.zeros((Cxf, Cf), np.float32)
    sx_base[0:d, 0:d] = np.eye(d, dtype=np.float32)
    for t in range(tail):
        sx_base[2 * d + t, 2 * d + t] = 1.0
    sx_base = jnp.asarray(sx_base)
    sxmat = wu @ wsh @ sx_base
    bx = (bu @ wsh + bsh) @ sx_base

    return dict(
        w1=w1f, b1=b1f.reshape(1, -1), a1=a1f.reshape(1, -1),
        wd=wdf, bd=bdf.reshape(1, -1), a2=a2f.reshape(1, -1),
        w3=w3f, b3=b3f.reshape(1, -1),
        ws1=ws1f, bs1=bs1f.reshape(1, -1), ase=asef.reshape(1, -1),
        ws2=ws2f, bs2=bs2f.reshape(1, -1),
        smat=jnp.asarray(smat), sx=sxmat, bx=bx.reshape(1, -1),
    )


# --------------------------- deterministic parameter init --------------------

def _fold_bn(w, b, bn, eps=1e-5):
    """Fold eval-mode BatchNorm into the preceding conv (weight last-dim = Cout)."""
    gamma, beta, mean, var = bn
    s = gamma / jnp.sqrt(var + eps)
    return (w * s).astype(jnp.float32), ((b - mean) * s + beta).astype(jnp.float32)


def _init_bn(key, c):
    k1, k2, k3, k4 = jax.random.split(key, 4)
    gamma = 1.0 + 0.1 * jax.random.normal(k1, (c,), jnp.float32)
    beta = 0.1 * jax.random.normal(k2, (c,), jnp.float32)
    mean = 0.1 * jax.random.normal(k3, (c,), jnp.float32)
    var = 1.0 + 0.1 * jnp.abs(jax.random.normal(k4, (c,), jnp.float32))
    return gamma, beta, mean, var


def _init_se_bottleneck(key, c_last, c_in, c_out, ksize):
    ks = jax.random.split(key, 13)
    alpha = jnp.full((1, 1), 0.25, jnp.float32)        # nn.PReLU() default init
    w1 = jax.random.normal(ks[0], (c_last, c_in), jnp.float32) / math.sqrt(c_last)
    b1 = 0.05 * jax.random.normal(ks[1], (c_in,), jnp.float32)
    w1, b1 = _fold_bn(w1, b1, _init_bn(ks[2], c_in))
    wd = jax.random.normal(ks[3], (ksize * ksize, c_in), jnp.float32) / float(ksize)
    bd = 0.05 * jax.random.normal(ks[4], (c_in,), jnp.float32)
    wd, bd = _fold_bn(wd, bd, _init_bn(ks[5], c_in))
    w3 = jax.random.normal(ks[6], (c_in, c_out), jnp.float32) / math.sqrt(c_in)
    b3 = 0.05 * jax.random.normal(ks[7], (c_out,), jnp.float32)
    w3, b3 = _fold_bn(w3, b3, _init_bn(ks[8], c_out))
    ws1 = jax.random.normal(ks[9], (c_out, c_in), jnp.float32) / math.sqrt(c_out)
    bs1 = 0.05 * jax.random.normal(ks[10], (c_in,), jnp.float32)
    ws2 = jax.random.normal(ks[11], (c_in, c_out), jnp.float32) / math.sqrt(c_in)
    bs2 = 0.05 * jax.random.normal(ks[12], (c_out,), jnp.float32)
    return dict(
        w1=w1, b1=b1.reshape(1, -1), a1=alpha,
        wd=wd, bd=bd.reshape(1, -1), a2=alpha,
        w3=w3, b3=b3.reshape(1, -1),
        ws1=ws1, bs1=bs1.reshape(1, -1), a_se=alpha,
        ws2=ws2, bs2=bs2.reshape(1, -1),
    )


def init_basic_block(key, last_planes, in_planes, out_planes, dense_depth,
                     root, is_unify):
    keys = list(jax.random.split(key, 16))
    params = {}
    if is_unify:
        c_u = 2 * out_planes + dense_depth
        ku = jax.random.split(keys[0], 2)
        wu = jax.random.normal(ku[0], (last_planes, c_u), jnp.float32) / math.sqrt(last_planes)
        bu = 0.05 * jax.random.normal(ku[1], (c_u,), jnp.float32)
        wu, bu = _fold_bn(wu, bu, _init_bn(keys[1], c_u))
        params['unify'] = dict(w=wu, b=bu.reshape(1, -1))
        rir_last = out_planes + dense_depth
    else:
        rir_last = last_planes - out_planes
    if root:
        c_s = 2 * out_planes + dense_depth
        kq = jax.random.split(keys[2], 2)
        ws = jax.random.normal(kq[0], (last_planes, c_s), jnp.float32) / math.sqrt(last_planes)
        bs = 0.05 * jax.random.normal(kq[1], (c_s,), jnp.float32)
        ws, bs = _fold_bn(ws, bs, _init_bn(keys[3], c_s))
        params['shortcut'] = dict(w=ws, b=bs.reshape(1, -1))
    ki = 4
    for ksz in (3, 5, 7):
        params[f'rir_{ksz}'] = dict(
            residual=_init_se_bottleneck(keys[ki + 0], rir_last, in_planes,
                                         out_planes + dense_depth, ksz),
            residual_across=_init_se_bottleneck(keys[ki + 1], rir_last, in_planes,
                                                out_planes, ksz),
            transient=_init_se_bottleneck(keys[ki + 2], rir_last, in_planes,
                                          out_planes, ksz),
            transient_across=_init_se_bottleneck(keys[ki + 3], rir_last, in_planes,
                                                 out_planes + dense_depth, ksz),
        )
        ki += 4
    return params


# --------------------------- main ---------------------------------------------

if __name__ == "__main__":
    key = jax.random.PRNGKey(0)
    kx, kp = jax.random.split(key)

    # BasicBlock(last_planes=12, in_planes=8, out_planes=8, dense_depth=4,
    #            root=False, feature_size=8, is_unify=True)
    last_planes, in_planes, out_planes, dense_depth = 12, 8, 8, 4
    root, is_unify, feature_size = False, True, 8
    N, H, W = 2, feature_size, feature_size

    x = jax.random.normal(kx, (N, last_planes, H, W), jnp.float32)   # NCHW input
    params = init_basic_block(kp, last_planes, in_planes, out_planes,
                              dense_depth, root, is_unify)
    cfg = dict(last_planes=last_planes, in_planes=in_planes,
               out_planes=out_planes, dense_depth=dense_depth, root=root,
               is_unify=is_unify, feature_size=feature_size)
    fused = pack_basic_block(params, cfg)

    out = basic_block_forward(x, fused)
    out = jax.block_until_ready(out)

    expected_c = (2 * out_planes + 4 * dense_depth) if (is_unify or root) \
        else (last_planes + 3 * dense_depth)
    assert out.shape == (N, expected_c, H, W), out.shape
    assert bool(jnp.all(jnp.isfinite(out)))
    print("KERNEL_OK")
</pallas_src>

<mosaic_0001>
module attributes {stable_mosaic.version = 11 : i64} {
  func.func @_block_kernel(%arg0: i32, %arg1: memref<1x196x12xf32, #tpu.memory_space<vmem>>, %arg2: memref<1x64x12xf32, #tpu.memory_space<vmem>>, %arg3: memref<12x96xf32, #tpu.memory_space<vmem>>, %arg4: memref<1x96xf32, #tpu.memory_space<vmem>>, %arg5: memref<1x96xf32, #tpu.memory_space<vmem>>, %arg6: memref<49x96xf32, #tpu.memory_space<vmem>>, %arg7: memref<1x96xf32, #tpu.memory_space<vmem>>, %arg8: memref<1x96xf32, #tpu.memory_space<vmem>>, %arg9: memref<96x120xf32, #tpu.memory_space<vmem>>, %arg10: memref<1x120xf32, #tpu.memory_space<vmem>>, %arg11: memref<120x96xf32, #tpu.memory_space<vmem>>, %arg12: memref<1x96xf32, #tpu.memory_space<vmem>>, %arg13: memref<1x96xf32, #tpu.memory_space<vmem>>, %arg14: memref<96x120xf32, #tpu.memory_space<vmem>>, %arg15: memref<1x120xf32, #tpu.memory_space<vmem>>, %arg16: memref<120x32xf32, #tpu.memory_space<vmem>>, %arg17: memref<12x32xf32, #tpu.memory_space<vmem>>, %arg18: memref<1x32xf32, #tpu.memory_space<vmem>>, %arg19: memref<1x64x32xf32, #tpu.memory_space<vmem>>, %arg20: memref<14x14x96xf32, #tpu.memory_space<vmem>>, %arg21: memref<64x96xf32, #tpu.memory_space<vmem>>) attributes {dimension_semantics = [#tpu.dimension_semantics<parallel>], iteration_bounds = array<i64: 2>, scalar_prefetch = 0 : i64, scratch_operands = 2 : i64, tpu.core_type = #tpu.core_type<tc>, window_params = [{transform_indices = @transform_0, window_bounds = array<i64: 1, 196, 12>}, {transform_indices = @transform_1, window_bounds = array<i64: 1, 64, 12>}, {pipeline_mode = #tpu.pipeline_mode<synchronous>, transform_indices = @transform_2, window_bounds = array<i64: 12, 96>}, {pipeline_mode = #tpu.pipeline_mode<synchronous>, transform_indices = @transform_3, window_bounds = array<i64: 1, 96>}, {pipeline_mode = #tpu.pipeline_mode<synchronous>, transform_indices = @transform_4, window_bounds = array<i64: 1, 96>}, {pipeline_mode = #tpu.pipeline_mode<synchronous>, transform_indices = @transform_5, window_bounds = array<i64: 49, 96>}, {pipeline_mode = #tpu.pipeline_mode<synchronous>, transform_indices = @transform_6, window_bounds = array<i64: 1, 96>}, {pipeline_mode = #tpu.pipeline_mode<synchronous>, transform_indices = @transform_7, window_bounds = array<i64: 1, 96>}, {pipeline_mode = #tpu.pipeline_mode<synchronous>, transform_indices = @transform_8, window_bounds = array<i64: 96, 120>}, {pipeline_mode = #tpu.pipeline_mode<synchronous>, transform_indices = @transform_9, window_bounds = array<i64: 1, 120>}, {pipeline_mode = #tpu.pipeline_mode<synchronous>, transform_indices = @transform_10, window_bounds = array<i64: 120, 96>}, {pipeline_mode = #tpu.pipeline_mode<synchronous>, transform_indices = @transform_11, window_bounds = array<i64: 1, 96>}, {pipeline_mode = #tpu.pipeline_mode<synchronous>, transform_indices = @transform_12, window_bounds = array<i64: 1, 96>}, {pipeline_mode = #tpu.pipeline_mode<synchronous>, transform_indices = @transform_13, window_bounds = array<i64: 96, 120>}, {pipeline_mode = #tpu.pipeline_mode<synchronous>, transform_indices = @transform_14, window_bounds = array<i64: 1, 120>}, {pipeline_mode = #tpu.pipeline_mode<synchronous>, transform_indices = @transform_15, window_bounds = array<i64: 120, 32>}, {pipeline_mode = #tpu.pipeline_mode<synchronous>, transform_indices = @transform_16, window_bounds = array<i64: 12, 32>}, {pipeline_mode = #tpu.pipeline_mode<synchronous>, transform_indices = @transform_17, window_bounds = array<i64: 1, 32>}, {transform_indices = @transform_18, window_bounds = array<i64: 1, 64, 32>}]} {
    %c0 = arith.constant 0 : index
    %c0_0 = arith.constant 0 : index
    %c0_1 = arith.constant 0 : index
    %0 = vector.load %arg1[%c0, %c0_0, %c0_1] : memref<1x196x12xf32, #tpu.memory_space<vmem>>, vector<1x196x12xf32>
    %1 = vector.shape_cast %0 : vector<1x196x12xf32> to vector<196x12xf32>
    %c0_2 = arith.constant 0 : index
    %c0_3 = arith.constant 0 : index
    %2 = vector.load %arg3[%c0_2, %c0_3] : memref<12x96xf32, #tpu.memory_space<vmem>>, vector<12x96xf32>
    %cst = arith.constant dense<0.000000e+00> : vector<196x96xf32>
    %3 = tpu.matmul %1, %2, %cst {dimension_numbers = #tpu.dot_dimension_numbers<[1], [0], [0], [1], [0, 0, 1, 1], [], []>} : vector<196x12xf32>, vector<12x96xf32>, vector<196x96xf32> -> vector<196x96xf32>
    %c0_4 = arith.constant 0 : index
    %c0_5 = arith.constant 0 : index
    %4 = vector.load %arg4[%c0_4, %c0_5] : memref<1x96xf32, #tpu.memory_space<vmem>>, vector<1x96xf32>
    %5 = vector.broadcast %4 : vector<1x96xf32> to vector<196x96xf32>
    %6 = arith.addf %3, %5 : vector<196x96xf32>
    %c0_6 = arith.constant 0 : index
    %c0_7 = arith.constant 0 : index
    %7 = vector.load %arg5[%c0_6, %c0_7] : memref<1x96xf32, #tpu.memory_space<vmem>>, vector<1x96xf32>
    %cst_8 = arith.constant 0.000000e+00 : f32
    %8 = vector.broadcast %cst_8 : f32 to vector<196x96xf32>
    %9 = arith.cmpf oge, %6, %8 : vector<196x96xf32>
    %10 = vector.broadcast %7 : vector<1x96xf32> to vector<196x96xf32>
    %11 = arith.mulf %10, %6 : vector<196x96xf32>
    %12 = arith.select %9, %6, %11 : vector<196x96xi1>, vector<196x96xf32>
    %13 = vector.extract_strided_slice %12 {offsets = [0, 0], sizes = [14, 96], strides = [1, 1]} : vector<196x96xf32> to vector<14x96xf32>
    %c0_9 = arith.constant 0 : index
    %c0_10 = arith.constant 0 : index
    %c0_11 = arith.constant 0 : index
    %14 = vector.load %arg20[%c0_9, %c0_10, %c0_11] : memref<14x14x96xf32, #tpu.memory_space<vmem>>, vector<1x14x96xf32>
    %15 = vector.shape_cast %14 : vector<1x14x96xf32> to vector<14x96xf32>
    %16 = vector.shape_cast %13 : vector<14x96xf32> to vector<1x14x96xf32>
    tpu.vector_store %arg20[%c0_9, %c0_10, %c0_11], %16 {strides = array<i32>} : memref<14x14x96xf32, #tpu.memory_space<vmem>>, vector<1x14x96xf32>,
    %17 = vector.extract_strided_slice %12 {offsets = [14, 0], sizes = [14, 96], strides = [1, 1]} : vector<196x96xf32> to vector<14x96xf32>
    %c1 = arith.constant 1 : index
    %c0_12 = arith.constant 0 : index
    %c0_13 = arith.constant 0 : index
    %18 = vector.load %arg20[%c1, %c0_12, %c0_13] : memref<14x14x96xf32, #tpu.memory_space<vmem>>, vector<1x14x96xf32>
    %19 = vector.shape_cast %18 : vector<1x14x96xf32> to vector<14x96xf32>
    %20 = vector.shape_cast %17 : vector<14x96xf32> to vector<1x14x96xf32>
    tpu.vector_store %arg20[%c1, %c0_12, %c0_13], %20 {strides = array<i32>} : memref<14x14x96xf32, #tpu.memory_space<vmem>>, vector<1x14x96xf32>,
    %21 = vector.extract_strided_slice %12 {offsets = [28, 0], sizes = [14, 96], strides = [1, 1]} : vector<196x96xf32> to vector<14x96xf32>
    %c2 = arith.constant 2 : index
    %c0_14 = arith.constant 0 : index
    %c0_15 = arith.constant 0 : index
    %22 = vector.load %arg20[%c2, %c0_14, %c0_15] : memref<14x14x96xf32, #tpu.memory_space<vmem>>, vector<1x14x96xf32>
    %23 = vector.shape_cast %22 : vector<1x14x96xf32> to vector<14x96xf32>
    %24 = vector.shape_cast %21 : vector<14x96xf32> to vector<1x14x96xf32>
    tpu.vector_store %arg20[%c2, %c0_14, %c0_15], %24 {strides = array<i32>} : memref<14x14x96xf32, #tpu.memory_space<vmem>>, vector<1x14x96xf32>,
    %25 = vector.extract_strided_slice %12 {offsets = [42, 0], sizes = [14, 96], strides = [1, 1]} : vector<196x96xf32> to vector<14x96xf32>
    %c3 = arith.constant 3 : index
    %c0_16 = arith.constant 0 : index
    %c0_17 = arith.constant 0 : index
    %26 = vector.load %arg20[%c3, %c0_16, %c0_17] : memref<14x14x96xf32, #tpu.memory_space<vmem>>, vector<1x14x96xf32>
    %27 = vector.shape_cast %26 : vector<1x14x96xf32> to vector<14x96xf32>
    %28 = vector.shape_cast %25 : vector<14x96xf32> to vector<1x14x96xf32>
    tpu.vector_store %arg20[%c3, %c0_16, %c0_17], %28 {strides = array<i32>} : memref<14x14x96xf32, #tpu.memory_space<vmem>>, vector<1x14x96xf32>,
    %29 = vector.extract_strided_slice %12 {offsets = [56, 0], sizes = [14, 96], strides = [1, 1]} : vector<196x96xf32> to vector<14x96xf32>
    %c4 = arith.constant 4 : index
    %c0_18 = arith.constant 0 : index
    %c0_19 = arith.constant 0 : index
    %30 = vector.load %arg20[%c4, %c0_18, %c0_19] : memref<14x14x96xf32, #tpu.memory_space<vmem>>, vector<1x14x96xf32>
    %31 = vector.shape_cast %30 : vector<1x14x96xf32> to vector<14x96xf32>
    %32 = vector.shape_cast %29 : vector<14x96xf32> to vector<1x14x96xf32>
    tpu.vector_store %arg20[%c4, %c0_18, %c0_19], %32 {strides = array<i32>} : memref<14x14x96xf32, #tpu.memory_space<vmem>>, vector<1x14x96xf32>,
    %33 = vector.extract_strided_slice %12 {offsets = [70, 0], sizes = [14, 96], strides = [1, 1]} : vector<196x96xf32> to vector<14x96xf32>
    %c5 = arith.constant 5 : index
    %c0_20 = arith.constant 0 : index
    %c0_21 = arith.constant 0 : index
    %34 = vector.load %arg20[%c5, %c0_20, %c0_21] : memref<14x14x96xf32, #tpu.memory_space<vmem>>, vector<1x14x96xf32>
    %35 = vector.shape_cast %34 : vector<1x14x96xf32> to vector<14x96xf32>
    %36 = vector.shape_cast %33 : vector<14x96xf32> to vector<1x14x96xf32>
    tpu.vector_store %arg20[%c5, %c0_20, %c0_21], %36 {strides = array<i32>} : memref<14x14x96xf32, #tpu.memory_space<vmem>>, vector<1x14x96xf32>,
    %37 = vector.extract_strided_slice %12 {offsets = [84, 0], sizes = [14, 96], strides = [1, 1]} : vector<196x96xf32> to vector<14x96xf32>
    %c6 = arith.constant 6 : index
    %c0_22 = arith.constant 0 : index
    %c0_23 = arith.constant 0 : index
    %38 = vector.load %arg20[%c6, %c0_22, %c0_23] : memref<14x14x96xf32, #tpu.memory_space<vmem>>, vector<1x14x96xf32>
    %39 = vector.shape_cast %38 : vector<1x14x96xf32> to vector<14x96xf32>
    %40 = vector.shape_cast %37 : vector<14x96xf32> to vector<1x14x96xf32>
    tpu.vector_store %arg20[%c6, %c0_22, %c0_23], %40 {strides = array<i32>} : memref<14x14x96xf32, #tpu.memory_space<vmem>>, vector<1x14x96xf32>,
    %41 = vector.extract_strided_slice %12 {offsets = [98, 0], sizes = [14, 96], strides = [1, 1]} : vector<196x96xf32> to vector<14x96xf32>
    %c7 = arith.constant 7 : index
    %c0_24 = arith.constant 0 : index
    %c0_25 = arith.constant 0 : index
    %42 = vector.load %arg20[%c7, %c0_24, %c0_25] : memref<14x14x96xf32, #tpu.memory_space<vmem>>, vector<1x14x96xf32>
    %43 = vector.shape_cast %42 : vector<1x14x96xf32> to vector<14x96xf32>
    %44 = vector.shape_cast %41 : vector<14x96xf32> to vector<1x14x96xf32>
    tpu.vector_store %arg20[%c7, %c0_24, %c0_25], %44 {strides = array<i32>} : memref<14x14x96xf32, #tpu.memory_space<vmem>>, vector<1x14x96xf32>,
    %45 = vector.extract_strided_slice %12 {offsets = [112, 0], sizes = [14, 96], strides = [1, 1]} : vector<196x96xf32> to vector<14x96xf32>
    %c8 = arith.constant 8 : index
    %c0_26 = arith.constant 0 : index
    %c0_27 = arith.constant 0 : index
    %46 = vector.load %arg20[%c8, %c0_26, %c0_27] : memref<14x14x96xf32, #tpu.memory_space<vmem>>, vector<1x14x96xf32>
    %47 = vector.shape_cast %46 : vector<1x14x96xf32> to vector<14x96xf32>
    %48 = vector.shape_cast %45 : vector<14x96xf32> to vector<1x14x96xf32>
    tpu.vector_store %arg20[%c8, %c0_26, %c0_27], %48 {strides = array<i32>} : memref<14x14x96xf32, #tpu.memory_space<vmem>>, vector<1x14x96xf32>,
    %49 = vector.extract_strided_slice %12 {offsets = [126, 0], sizes = [14, 96], strides = [1, 1]} : vector<196x96xf32> to vector<14x96xf32>
    %c9 = arith.constant 9 : index
    %c0_28 = arith.constant 0 : index
    %c0_29 = arith.constant 0 : index
    %50 = vector.load %arg20[%c9, %c0_28, %c0_29] : memref<14x14x96xf32, #tpu.memory_space<vmem>>, vector<1x14x96xf32>
    %51 = vector.shape_cast %50 : vector<1x14x96xf32> to vector<14x96xf32>
    %52 = vector.shape_cast %49 : vector<14x96xf32> to vector<1x14x96xf32>
    tpu.vector_store %arg20[%c9, %c0_28, %c0_29], %52 {strides = array<i32>} : memref<14x14x96xf32, #tpu.memory_space<vmem>>, vector<1x14x96xf32>,
    %53 = vector.extract_strided_slice %12 {offsets = [140, 0], sizes = [14, 96], strides = [1, 1]} : vector<196x96xf32> to vector<14x96xf32>
    %c10 = arith.constant 10 : index
    %c0_30 = arith.constant 0 : index
    %c0_31 = arith.constant 0 : index
    %54 = vector.load %arg20[%c10, %c0_30, %c0_31] : memref<14x14x96xf32, #tpu.memory_space<vmem>>, vector<1x14x96xf32>
    %55 = vector.shape_cast %54 : vector<1x14x96xf32> to vector<14x96xf32>
    %56 = vector.shape_cast %53 : vector<14x96xf32> to vector<1x14x96xf32>
    tpu.vector_store %arg20[%c10, %c0_30, %c0_31], %56 {strides = array<i32>} : memref<14x14x96xf32, #tpu.memory_space<vmem>>, vector<1x14x96xf32>,
    %57 = vector.extract_strided_slice %12 {offsets = [154, 0], sizes = [14, 96], strides = [1, 1]} : vector<196x96xf32> to vector<14x96xf32>
    %c11 = arith.constant 11 : index
    %c0_32 = arith.constant 0 : index
    %c0_33 = arith.constant 0 : index
    %58 = vector.load %arg20[%c11, %c0_32, %c0_33] : memref<14x14x96xf32, #tpu.memory_space<vmem>>, vector<1x14x96xf32>
    %59 = vector.shape_cast %58 : vector<1x14x96xf32> to vector<14x96xf32>
    %60 = vector.shape_cast %57 : vector<14x96xf32> to vector<1x14x96xf32>
    tpu.vector_store %arg20[%c11, %c0_32, %c0_33], %60 {strides = array<i32>} : memref<14x14x96xf32, #tpu.memory_space<vmem>>, vector<1x14x96xf32>,
    %61 = vector.extract_strided_slice %12 {offsets = [168, 0], sizes = [14, 96], strides = [1, 1]} : vector<196x96xf32> to vector<14x96xf32>
    %c12 = arith.constant 12 : index
    %c0_34 = arith.constant 0 : index
    %c0_35 = arith.constant 0 : index
    %62 = vector.load %arg20[%c12, %c0_34, %c0_35] : memref<14x14x96xf32, #tpu.memory_space<vmem>>, vector<1x14x96xf32>
    %63 = vector.shape_cast %62 : vector<1x14x96xf32> to vector<14x96xf32>
    %64 = vector.shape_cast %61 : vector<14x96xf32> to vector<1x14x96xf32>
    tpu.vector_store %arg20[%c12, %c0_34, %c0_35], %64 {strides = array<i32>} : memref<14x14x96xf32, #tpu.memory_space<vmem>>, vector<1x14x96xf32>,
    %65 = vector.extract_strided_slice %12 {offsets = [182, 0], sizes = [14, 96], strides = [1, 1]} : vector<196x96xf32> to vector<14x96xf32>
    %c13 = arith.constant 13 : index
    %c0_36 = arith.constant 0 : index
    %c0_37 = arith.constant 0 : index
    %66 = vector.load %arg20[%c13, %c0_36, %c0_37] : memref<14x14x96xf32, #tpu.memory_space<vmem>>, vector<1x14x96xf32>
    %67 = vector.shape_cast %66 : vector<1x14x96xf32> to vector<14x96xf32>
    %68 = vector.shape_cast %65 : vector<14x96xf32> to vector<1x14x96xf32>
    tpu.vector_store %arg20[%c13, %c0_36, %c0_37], %68 {strides = array<i32>} : memref<14x14x96xf32, #tpu.memory_space<vmem>>, vector<1x14x96xf32>,
    %c0_38 = arith.constant 0 : index
    %c0_39 = arith.constant 0 : index
    %69 = vector.load %arg6[%c0_38, %c0_39] : memref<49x96xf32, #tpu.memory_space<vmem>>, vector<49x96xf32>
    %cst_40 = arith.constant 0.000000e+00 : f32
    %70 = vector.broadcast %cst_40 : f32 to vector<8x8x96xf32>
    %c0_41 = arith.constant 0 : index
    %c0_42 = arith.constant 0 : index
    %c0_43 = arith.constant 0 : index
    %71 = vector.load %arg20[%c0_41, %c0_42, %c0_43] : memref<14x14x96xf32, #tpu.memory_space<vmem>>, vector<8x8x96xf32>
    %72 = vector.extract_strided_slice %69 {offsets = [0, 0], sizes = [1, 96], strides = [1, 1]} : vector<49x96xf32> to vector<1x96xf32>
    %73 = vector.shape_cast %72 : vector<1x96xf32> to vector<1x1x96xf32>
    %74 = vector.broadcast %73 : vector<1x1x96xf32> to vector<8x8x96xf32>
    %75 = arith.mulf %71, %74 : vector<8x8x96xf32>
    %76 = arith.addf %70, %75 : vector<8x8x96xf32>
    %c0_44 = arith.constant 0 : index
    %c1_45 = arith.constant 1 : index
    %c0_46 = arith.constant 0 : index
    %77 = vector.load %arg20[%c0_44, %c1_45, %c0_46] : memref<14x14x96xf32, #tpu.memory_space<vmem>>, vector<8x8x96xf32>
    %78 = vector.extract_strided_slice %69 {offsets = [1, 0], sizes = [1, 96], strides = [1, 1]} : vector<49x96xf32> to vector<1x96xf32>
    %79 = vector.shape_cast %78 : vector<1x96xf32> to vector<1x1x96xf32>
    %80 = vector.broadcast %79 : vector<1x1x96xf32> to vector<8x8x96xf32>
    %81 = arith.mulf %77, %80 : vector<8x8x96xf32>
    %82 = arith.addf %76, %81 : vector<8x8x96xf32>
    %c0_47 = arith.constant 0 : index
    %c2_48 = arith.constant 2 : index
    %c0_49 = arith.constant 0 : index
    %83 = vector.load %arg20[%c0_47, %c2_48, %c0_49] : memref<14x14x96xf32, #tpu.memory_space<vmem>>, vector<8x8x96xf32>
    %84 = vector.extract_strided_slice %69 {offsets = [2, 0], sizes = [1, 96], strides = [1, 1]} : vector<49x96xf32> to vector<1x96xf32>
    %85 = vector.shape_cast %84 : vector<1x96xf32> to vector<1x1x96xf32>
    %86 = vector.broadcast %85 : vector<1x1x96xf32> to vector<8x8x96xf32>
    %87 = arith.mulf %83, %86 : vector<8x8x96xf32>
    %88 = arith.addf %82, %87 : vector<8x8x96xf32>
    %c0_50 = arith.constant 0 : index
    %c3_51 = arith.constant 3 : index
    %c0_52 = arith.constant 0 : index
    %89 = vector.load %arg20[%c0_50, %c3_51, %c0_52] : memref<14x14x96xf32, #tpu.memory_space<vmem>>, vector<8x8x96xf32>
    %90 = vector.extract_strided_slice %69 {offsets = [3, 0], sizes = [1, 96], strides = [1, 1]} : vector<49x96xf32> to vector<1x96xf32>
    %91 = vector.shape_cast %90 : vector<1x96xf32> to vector<1x1x96xf32>
    %92 = vector.broadcast %91 : vector<1x1x96xf32> to vector<8x8x96xf32>
    %93 = arith.mulf %89, %92 : vector<8x8x96xf32>
    %94 = arith.addf %88, %93 : vector<8x8x96xf32>
    %c0_53 = arith.constant 0 : index
    %c4_54 = arith.constant 4 : index
    %c0_55 = arith.constant 0 : index
    %95 = vector.load %arg20[%c0_53, %c4_54, %c0_55] : memref<14x14x96xf32, #tpu.memory_space<vmem>>, vector<8x8x96xf32>
    %96 = vector.extract_strided_slice %69 {offsets = [4, 0], sizes = [1, 96], strides = [1, 1]} : vector<49x96xf32> to vector<1x96xf32>
    %97 = vector.shape_cast %96 : vector<1x96xf32> to vector<1x1x96xf32>
    %98 = vector.broadcast %97 : vector<1x1x96xf32> to vector<8x8x96xf32>
    %99 = arith.mulf %95, %98 : vector<8x8x96xf32>
    %100 = arith.addf %94, %99 : vector<8x8x96xf32>
    %c0_56 = arith.constant 0 : index
    %c5_57 = arith.constant 5 : index
    %c0_58 = arith.constant 0 : index
    %101 = vector.load %arg20[%c0_56, %c5_57, %c0_58] : memref<14x14x96xf32, #tpu.memory_space<vmem>>, vector<8x8x96xf32>
    %102 = vector.extract_strided_slice %69 {offsets = [5, 0], sizes = [1, 96], strides = [1, 1]} : vector<49x96xf32> to vector<1x96xf32>
    %103 = vector.shape_cast %102 : vector<1x96xf32> to vector<1x1x96xf32>
    %104 = vector.broadcast %103 : vector<1x1x96xf32> to vector<8x8x96xf32>
    %105 = arith.mulf %101, %104 : vector<8x8x96xf32>
    %106 = arith.addf %100, %105 : vector<8x8x96xf32>
    %c0_59 = arith.constant 0 : index
    %c6_60 = arith.constant 6 : index
    %c0_61 = arith.constant 0 : index
    %107 = vector.load %arg20[%c0_59, %c6_60, %c0_61] : memref<14x14x96xf32, #tpu.memory_space<vmem>>, vector<8x8x96xf32>
    %108 = vector.extract_strided_slice %69 {offsets = [6, 0], sizes = [1, 96], strides = [1, 1]} : vector<49x96xf32> to vector<1x96xf32>
    %109 = vector.shape_cast %108 : vector<1x96xf32> to vector<1x1x96xf32>
    %110 = vector.broadcast %109 : vector<1x1x96xf32> to vector<8x8x96xf32>
    %111 = arith.mulf %107, %110 : vector<8x8x96xf32>
    %112 = arith.addf %106, %111 : vector<8x8x96xf32>
    %c1_62 = arith.constant 1 : index
    %c0_63 = arith.constant 0 : index
    %c0_64 = arith.constant 0 : index
    %113 = vector.load %arg20[%c1_62, %c0_63, %c0_64] : memref<14x14x96xf32, #tpu.memory_space<vmem>>, vector<8x8x96xf32>
    %114 = vector.extract_strided_slice %69 {offsets = [7, 0], sizes = [1, 96], strides = [1, 1]} : vector<49x96xf32> to vector<1x96xf32>
    %115 = vector.shape_cast %114 : vector<1x96xf32> to vector<1x1x96xf32>
    %116 = vector.broadcast %115 : vector<1x1x96xf32> to vector<8x8x96xf32>
    %117 = arith.mulf %113, %116 : vector<8x8x96xf32>
    %118 = arith.addf %112, %117 : vector<8x8x96xf32>
    %c1_65 = arith.constant 1 : index
    %c1_66 = arith.constant 1 : index
    %c0_67 = arith.constant 0 : index
    %119 = vector.load %arg20[%c1_65, %c1_66, %c0_67] : memref<14x14x96xf32, #tpu.memory_space<vmem>>, vector<8x8x96xf32>
    %120 = vector.extract_strided_slice %69 {offsets = [8, 0], sizes = [1, 96], strides = [1, 1]} : vector<49x96xf32> to vector<1x96xf32>
    %121 = vector.shape_cast %120 : vector<1x96xf32> to vector<1x1x96xf32>
    %122 = vector.broadcast %121 : vector<1x1x96xf32> to vector<8x8x96xf32>
    %123 = arith.mulf %119, %122 : vector<8x8x96xf32>
    %124 = arith.addf %118, %123 : vector<8x8x96xf32>
    %c1_68 = arith.constant 1 : index
    %c2_69 = arith.constant 2 : index
    %c0_70 = arith.constant 0 : index
    %125 = vector.load %arg20[%c1_68, %c2_69, %c0_70] : memref<14x14x96xf32, #tpu.memory_space<vmem>>, vector<8x8x96xf32>
    %126 = vector.extract_strided_slice %69 {offsets = [9, 0], sizes = [1, 96], strides = [1, 1]} : vector<49x96xf32> to vector<1x96xf32>
    %127 = vector.shape_cast %126 : vector<1x96xf32> to vector<1x1x96xf32>
    %128 = vector.broadcast %127 : vector<1x1x96xf32> to vector<8x8x96xf32>
    %129 = arith.mulf %125, %128 : vector<8x8x96xf32>
    %130 = arith.addf %124, %129 : vector<8x8x96xf32>
    %c1_71 = arith.constant 1 : index
    %c3_72 = arith.constant 3 : index
    %c0_73 = arith.constant 0 : index
    %131 = vector.load %arg20[%c1_71, %c3_72, %c0_73] : memref<14x14x96xf32, #tpu.memory_space<vmem>>, vector<8x8x96xf32>
    %132 = vector.extract_strided_slice %69 {offsets = [10, 0], sizes = [1, 96], strides = [1, 1]} : vector<49x96xf32> to vector<1x96xf32>
    %133 = vector.shape_cast %132 : vector<1x96xf32> to vector<1x1x96xf32>
    %134 = vector.broadcast %133 : vector<1x1x96xf32> to vector<8x8x96xf32>
    %135 = arith.mulf %131, %134 : vector<8x8x96xf32>
    %136 = arith.addf %130, %135 : vector<8x8x96xf32>
    %c1_74 = arith.constant 1 : index
    %c4_75 = arith.constant 4 : index
    %c0_76 = arith.constant 0 : index
    %137 = vector.load %arg20[%c1_74, %c4_75, %c0_76] : memref<14x14x96xf32, #tpu.memory_space<vmem>>, vector<8x8x96xf32>
    %138 = vector.extract_strided_slice %69 {offsets = [11, 0], sizes = [1, 96], strides = [1, 1]} : vector<49x96xf32> to vector<1x96xf32>
    %139 = vector.shape_cast %138 : vector<1x96xf32> to vector<1x1x96xf32>
    %140 = vector.broadcast %139 : vector<1x1x96xf32> to vector<8x8x96xf32>
    %141 = arith.mulf %137, %140 : vector<8x8x96xf32>
    %142 = arith.addf %136, %141 : vector<8x8x96xf32>
    %c1_77 = arith.constant 1 : index
    %c5_78 = arith.constant 5 : index
    %c0_79 = arith.constant 0 : index
    %143 = vector.load %arg20[%c1_77, %c5_78, %c0_79] : memref<14x14x96xf32, #tpu.memory_space<vmem>>, vector<8x8x96xf32>
    %144 = vector.extract_strided_slice %69 {offsets = [12, 0], sizes = [1, 96], strides = [1, 1]} : vector<49x96xf32> to vector<1x96xf32>
    %145 = vector.shape_cast %144 : vector<1x96xf32> to vector<1x1x96xf32>
    %146 = vector.broadcast %145 : vector<1x1x96xf32> to vector<8x8x96xf32>
    %147 = arith.mulf %143, %146 : vector<8x8x96xf32>
    %148 = arith.addf %142, %147 : vector<8x8x96xf32>
    %c1_80 = arith.constant 1 : index
    %c6_81 = arith.constant 6 : index
    %c0_82 = arith.constant 0 : index
    %149 = vector.load %arg20[%c1_80, %c6_81, %c0_82] : memref<14x14x96xf32, #tpu.memory_space<vmem>>, vector<8x8x96xf32>
    %150 = vector.extract_strided_slice %69 {offsets = [13, 0], sizes = [1, 96], strides = [1, 1]} : vector<49x96xf32> to vector<1x96xf32>
    %151 = vector.shape_cast %150 : vector<1x96xf32> to vector<1x1x96xf32>
    %152 = vector.broadcast %151 : vector<1x1x96xf32> to vector<8x8x96xf32>
    %153 = arith.mulf %149, %152 : vector<8x8x96xf32>
    %154 = arith.addf %148, %153 : vector<8x8x96xf32>
    %c2_83 = arith.constant 2 : index
    %c0_84 = arith.constant 0 : index
    %c0_85 = arith.constant 0 : index
    %155 = vector.load %arg20[%c2_83, %c0_84, %c0_85] : memref<14x14x96xf32, #tpu.memory_space<vmem>>, vector<8x8x96xf32>
    %156 = vector.extract_strided_slice %69 {offsets = [14, 0], sizes = [1, 96], strides = [1, 1]} : vector<49x96xf32> to vector<1x96xf32>
    %157 = vector.shape_cast %156 : vector<1x96xf32> to vector<1x1x96xf32>
    %158 = vector.broadcast %157 : vector<1x1x96xf32> to vector<8x8x96xf32>
    %159 = arith.mulf %155, %158 : vector<8x8x96xf32>
    %160 = arith.addf %154, %159 : vector<8x8x96xf32>
    %c2_86 = arith.constant 2 : index
    %c1_87 = arith.constant 1 : index
    %c0_88 = arith.constant 0 : index
    %161 = vector.load %arg20[%c2_86, %c1_87, %c0_88] : memref<14x14x96xf32, #tpu.memory_space<vmem>>, vector<8x8x96xf32>
    %162 = vector.extract_strided_slice %69 {offsets = [15, 0], sizes = [1, 96], strides = [1, 1]} : vector<49x96xf32> to vector<1x96xf32>
    %163 = vector.shape_cast %162 : vector<1x96xf32> to vector<1x1x96xf32>
    %164 = vector.broadcast %163 : vector<1x1x96xf32> to vector<8x8x96xf32>
    %165 = arith.mulf %161, %164 : vector<8x8x96xf32>
    %166 = arith.addf %160, %165 : vector<8x8x96xf32>
    %c2_89 = arith.constant 2 : index
    %c2_90 = arith.constant 2 : index
    %c0_91 = arith.constant 0 : index
    %167 = vector.load %arg20[%c2_89, %c2_90, %c0_91] : memref<14x14x96xf32, #tpu.memory_space<vmem>>, vector<8x8x96xf32>
    %168 = vector.extract_strided_slice %69 {offsets = [16, 0], sizes = [1, 96], strides = [1, 1]} : vector<49x96xf32> to vector<1x96xf32>
    %169 = vector.shape_cast %168 : vector<1x96xf32> to vector<1x1x96xf32>
    %170 = vector.broadcast %169 : vector<1x1x96xf32> to vector<8x8x96xf32>
    %171 = arith.mulf %167, %170 : vector<8x8x96xf32>
    %172 = arith.addf %166, %171 : vector<8x8x96xf32>
    %c2_92 = arith.constant 2 : index
    %c3_93 = arith.constant 3 : index
    %c0_94 = arith.constant 0 : index
    %173 = vector.load %arg20[%c2_92, %c3_93, %c0_94] : memref<14x14x96xf32, #tpu.memory_space<vmem>>, vector<8x8x96xf32>
    %174 = vector.extract_strided_slice %69 {offsets = [17, 0], sizes = [1, 96], strides = [1, 1]} : vector<49x96xf32> to vector<1x96xf32>
    %175 = vector.shape_cast %174 : vector<1x96xf32> to vector<1x1x96xf32>
    %176 = vector.broadcast %175 : vector<1x1x96xf32> to vector<8x8x96xf32>
    %177 = arith.mulf %173, %176 : vector<8x8x96xf32>
    %178 = arith.addf %172, %177 : vector<8x8x96xf32>
    %c2_95 = arith.constant 2 : index
    %c4_96 = arith.constant 4 : index
    %c0_97 = arith.constant 0 : index
    %179 = vector.load %arg20[%c2_95, %c4_96, %c0_97] : memref<14x14x96xf32, #tpu.memory_space<vmem>>, vector<8x8x96xf32>
    %180 = vector.extract_strided_slice %69 {offsets = [18, 0], sizes = [1, 96], strides = [1, 1]} : vector<49x96xf32> to vector<1x96xf32>
    %181 = vector.shape_cast %180 : vector<1x96xf32> to vector<1x1x96xf32>
    %182 = vector.broadcast %181 : vector<1x1x96xf32> to vector<8x8x96xf32>
    %183 = arith.mulf %179, %182 : vector<8x8x96xf32>
    %184 = arith.addf %178, %183 : vector<8x8x96xf32>
    %c2_98 = arith.constant 2 : index
    %c5_99 = arith.constant 5 : index
    %c0_100 = arith.constant 0 : index
    %185 = vector.load %arg20[%c2_98, %c5_99, %c0_100] : memref<14x14x96xf32, #tpu.memory_space<vmem>>, vector<8x8x96xf32>
    %186 = vector.extract_strided_slice %69 {offsets = [19, 0], sizes = [1, 96], strides = [1, 1]} : vector<49x96xf32> to vector<1x96xf32>
    %187 = vector.shape_cast %186 : vector<1x96xf32> to vector<1x1x96xf32>
    %188 = vector.broadcast %187 : vector<1x1x96xf32> to vector<8x8x96xf32>
    %189 = arith.mulf %185, %188 : vector<8x8x96xf32>
    %190 = arith.addf %184, %189 : vector<8x8x96xf32>
    %c2_101 = arith.constant 2 : index
    %c6_102 = arith.constant 6 : index
    %c0_103 = arith.constant 0 : index
    %191 = vector.load %arg20[%c2_101, %c6_102, %c0_103] : memref<14x14x96xf32, #tpu.memory_space<vmem>>, vector<8x8x96xf32>
    %192 = vector.extract_strided_slice %69 {offsets = [20, 0], sizes = [1, 96], strides = [1, 1]} : vector<49x96xf32> to vector<1x96xf32>
    %193 = vector.shape_cast %192 : vector<1x96xf32> to vector<1x1x96xf32>
    %194 = vector.broadcast %193 : vector<1x1x96xf32> to vector<8x8x96xf32>
    %195 = arith.mulf %191, %194 : vector<8x8x96xf32>
    %196 = arith.addf %190, %195 : vector<8x8x96xf32>
    %c3_104 = arith.constant 3 : index
    %c0_105 = arith.constant 0 : index
    %c0_106 = arith.constant 0 : index
    %197 = vector.load %arg20[%c3_104, %c0_105, %c0_106] : memref<14x14x96xf32, #tpu.memory_space<vmem>>, vector<8x8x96xf32>
    %198 = vector.extract_strided_slice %69 {offsets = [21, 0], sizes = [1, 96], strides = [1, 1]} : vector<49x96xf32> to vector<1x96xf32>
    %199 = vector.shape_cast %198 : vector<1x96xf32> to vector<1x1x96xf32>
    %200 = vector.broadcast %199 : vector<1x1x96xf32> to vector<8x8x96xf32>
    %201 = arith.mulf %197, %200 : vector<8x8x96xf32>
    %202 = arith.addf %196, %201 : vector<8x8x96xf32>
    %c3_107 = arith.constant 3 : index
    %c1_108 = arith.constant 1 : index
    %c0_109 = arith.constant 0 : index
    %203 = vector.load %arg20[%c3_107, %c1_108, %c0_109] : memref<14x14x96xf32, #tpu.memory_space<vmem>>, vector<8x8x96xf32>
    %204 = vector.extract_strided_slice %69 {offsets = [22, 0], sizes = [1, 96], strides = [1, 1]} : vector<49x96xf32> to vector<1x96xf32>
    %205 = vector.shape_cast %204 : vector<1x96xf32> to vector<1x1x96xf32>
    %206 = vector.broadcast %205 : vector<1x1x96xf32> to vector<8x8x96xf32>
    %207 = arith.mulf %203, %206 : vector<8x8x96xf32>
    %208 = arith.addf %202, %207 : vector<8x8x96xf32>
    %c3_110 = arith.constant 3 : index
    %c2_111 = arith.constant 2 : index
    %c0_112 = arith.constant 0 : index
    %209 = vector.load %arg20[%c3_110, %c2_111, %c0_112] : memref<14x14x96xf32, #tpu.memory_space<vmem>>, vector<8x8x96xf32>
    %210 = vector.extract_strided_slice %69 {offsets = [23, 0], sizes = [1, 96], strides = [1, 1]} : vector<49x96xf32> to vector<1x96xf32>
    %211 = vector.shape_cast %210 : vector<1x96xf32> to vector<1x1x96xf32>
    %212 = vector.broadcast %211 : vector<1x1x96xf32> to vector<8x8x96xf32>
    %213 = arith.mulf %209, %212 : vector<8x8x96xf32>
    %214 = arith.addf %208, %213 : vector<8x8x96xf32>
    %c3_113 = arith.constant 3 : index
    %c3_114 = arith.constant 3 : index
    %c0_115 = arith.constant 0 : index
    %215 = vector.load %arg20[%c3_113, %c3_114, %c0_115] : memref<14x14x96xf32, #tpu.memory_space<vmem>>, vector<8x8x96xf32>
    %216 = vector.extract_strided_slice %69 {offsets = [24, 0], sizes = [1, 96], strides = [1, 1]} : vector<49x96xf32> to vector<1x96xf32>
    %217 = vector.shape_cast %216 : vector<1x96xf32> to vector<1x1x96xf32>
    %218 = vector.broadcast %217 : vector<1x1x96xf32> to vector<8x8x96xf32>
    %219 = arith.mulf %215, %218 : vector<8x8x96xf32>
    %220 = arith.addf %214, %219 : vector<8x8x96xf32>
    %c3_116 = arith.constant 3 : index
    %c4_117 = arith.constant 4 : index
    %c0_118 = arith.constant 0 : index
    %221 = vector.load %arg20[%c3_116, %c4_117, %c0_118] : memref<14x14x96xf32, #tpu.memory_space<vmem>>, vector<8x8x96xf32>
    %222 = vector.extract_strided_slice %69 {offsets = [25, 0], sizes = [1, 96], strides = [1, 1]} : vector<49x96xf32> to vector<1x96xf32>
    %223 = vector.shape_cast %222 : vector<1x96xf32> to vector<1x1x96xf32>
    %224 = vector.broadcast %223 : vector<1x1x96xf32> to vector<8x8x96xf32>
    %225 = arith.mulf %221, %224 : vector<8x8x96xf32>
    %226 = arith.addf %220, %225 : vector<8x8x96xf32>
    %c3_119 = arith.constant 3 : index
    %c5_120 = arith.constant 5 : index
    %c0_121 = arith.constant 0 : index
    %227 = vector.load %arg20[%c3_119, %c5_120, %c0_121] : memref<14x14x96xf32, #tpu.memory_space<vmem>>, vector<8x8x96xf32>
    %228 = vector.extract_strided_slice %69 {offsets = [26, 0], sizes = [1, 96], strides = [1, 1]} : vector<49x96xf32> to vector<1x96xf32>
    %229 = vector.shape_cast %228 : vector<1x96xf32> to vector<1x1x96xf32>
    %230 = vector.broadcast %229 : vector<1x1x96xf32> to vector<8x8x96xf32>
    %231 = arith.mulf %227, %230 : vector<8x8x96xf32>
    %232 = arith.addf %226, %231 : vector<8x8x96xf32>
    %c3_122 = arith.constant 3 : index
    %c6_123 = arith.constant 6 : index
    %c0_124 = arith.constant 0 : index
    %233 = vector.load %arg20[%c3_122, %c6_123, %c0_124] : memref<14x14x96xf32, #tpu.memory_space<vmem>>, vector<8x8x96xf32>
    %234 = vector.extract_strided_slice %69 {offsets = [27, 0], sizes = [1, 96], strides = [1, 1]} : vector<49x96xf32> to vector<1x96xf32>
    %235 = vector.shape_cast %234 : vector<1x96xf32> to vector<1x1x96xf32>
    %236 = vector.broadcast %235 : vector<1x1x96xf32> to vector<8x8x96xf32>
    %237 = arith.mulf %233, %236 : vector<8x8x96xf32>
    %238 = arith.addf %232, %237 : vector<8x8x96xf32>
    %c4_125 = arith.constant 4 : index
    %c0_126 = arith.constant 0 : index
    %c0_127 = arith.constant 0 : index
    %239 = vector.load %arg20[%c4_125, %c0_126, %c0_127] : memref<14x14x96xf32, #tpu.memory_space<vmem>>, vector<8x8x96xf32>
    %240 = vector.extract_strided_slice %69 {offsets = [28, 0], sizes = [1, 96], strides = [1, 1]} : vector<49x96xf32> to vector<1x96xf32>
    %241 = vector.shape_cast %240 : vector<1x96xf32> to vector<1x1x96xf32>
    %242 = vector.broadcast %241 : vector<1x1x96xf32> to vector<8x8x96xf32>
    %243 = arith.mulf %239, %242 : vector<8x8x96xf32>
    %244 = arith.addf %238, %243 : vector<8x8x96xf32>
    %c4_128 = arith.constant 4 : index
    %c1_129 = arith.constant 1 : index
    %c0_130 = arith.constant 0 : index
    %245 = vector.load %arg20[%c4_128, %c1_129, %c0_130] : memref<14x14x96xf32, #tpu.memory_space<vmem>>, vector<8x8x96xf32>
    %246 = vector.extract_strided_slice %69 {offsets = [29, 0], sizes = [1, 96], strides = [1, 1]} : vector<49x96xf32> to vector<1x96xf32>
    %247 = vector.shape_cast %246 : vector<1x96xf32> to vector<1x1x96xf32>
    %248 = vector.broadcast %247 : vector<1x1x96xf32> to vector<8x8x96xf32>
    %249 = arith.mulf %245, %248 : vector<8x8x96xf32>
    %250 = arith.addf %244, %249 : vector<8x8x96xf32>
    %c4_131 = arith.constant 4 : index
    %c2_132 = arith.constant 2 : index
    %c0_133 = arith.constant 0 : index
    %251 = vector.load %arg20[%c4_131, %c2_132, %c0_133] : memref<14x14x96xf32, #tpu.memory_space<vmem>>, vector<8x8x96xf32>
    %252 = vector.extract_strided_slice %69 {offsets = [30, 0], sizes = [1, 96], strides = [1, 1]} : vector<49x96xf32> to vector<1x96xf32>
    %253 = vector.shape_cast %252 : vector<1x96xf32> to vector<1x1x96xf32>
    %254 = vector.broadcast %253 : vector<1x1x96xf32> to vector<8x8x96xf32>
    %255 = arith.mulf %251, %254 : vector<8x8x96xf32>
    %256 = arith.addf %250, %255 : vector<8x8x96xf32>
    %c4_134 = arith.constant 4 : index
    %c3_135 = arith.constant 3 : index
    %c0_136 = arith.constant 0 : index
    %257 = vector.load %arg20[%c4_134, %c3_135, %c0_136] : memref<14x14x96xf32, #tpu.memory_space<vmem>>, vector<8x8x96xf32>
    %258 = vector.extract_strided_slice %69 {offsets = [31, 0], sizes = [1, 96], strides = [1, 1]} : vector<49x96xf32> to vector<1x96xf32>
    %259 = vector.shape_cast %258 : vector<1x96xf32> to vector<1x1x96xf32>
    %260 = vector.broadcast %259 : vector<1x1x96xf32> to vector<8x8x96xf32>
    %261 = arith.mulf %257, %260 : vector<8x8x96xf32>
    %262 = arith.addf %256, %261 : vector<8x8x96xf32>
    %c4_137 = arith.constant 4 : index
    %c4_138 = arith.constant 4 : index
    %c0_139 = arith.constant 0 : index
    %263 = vector.load %arg20[%c4_137, %c4_138, %c0_139] : memref<14x14x96xf32, #tpu.memory_space<vmem>>, vector<8x8x96xf32>
    %264 = vector.extract_strided_slice %69 {offsets = [32, 0], sizes = [1, 96], strides = [1, 1]} : vector<49x96xf32> to vector<1x96xf32>
    %265 = vector.shape_cast %264 : vector<1x96xf32> to vector<1x1x96xf32>
    %266 = vector.broadcast %265 : vector<1x1x96xf32> to vector<8x8x96xf32>
    %267 = arith.mulf %263, %266 : vector<8x8x96xf32>
    %268 = arith.addf %262, %267 : vector<8x8x96xf32>
    %c4_140 = arith.constant 4 : index
    %c5_141 = arith.constant 5 : index
    %c0_142 = arith.constant 0 : index
    %269 = vector.load %arg20[%c4_140, %c5_141, %c0_142] : memref<14x14x96xf32, #tpu.memory_space<vmem>>, vector<8x8x96xf32>
    %270 = vector.extract_strided_slice %69 {offsets = [33, 0], sizes = [1, 96], strides = [1, 1]} : vector<49x96xf32> to vector<1x96xf32>
    %271 = vector.shape_cast %270 : vector<1x96xf32> to vector<1x1x96xf32>
    %272 = vector.broadcast %271 : vector<1x1x96xf32> to vector<8x8x96xf32>
    %273 = arith.mulf %269, %272 : vector<8x8x96xf32>
    %274 = arith.addf %268, %273 : vector<8x8x96xf32>
    %c4_143 = arith.constant 4 : index
    %c6_144 = arith.constant 6 : index
    %c0_145 = arith.constant 0 : index
    %275 = vector.load %arg20[%c4_143, %c6_144, %c0_145] : memref<14x14x96xf32, #tpu.memory_space<vmem>>, vector<8x8x96xf32>
    %276 = vector.extract_strided_slice %69 {offsets = [34, 0], sizes = [1, 96], strides = [1, 1]} : vector<49x96xf32> to vector<1x96xf32>
    %277 = vector.shape_cast %276 : vector<1x96xf32> to vector<1x1x96xf32>
    %278 = vector.broadcast %277 : vector<1x1x96xf32> to vector<8x8x96xf32>
    %279 = arith.mulf %275, %278 : vector<8x8x96xf32>
    %280 = arith.addf %274, %279 : vector<8x8x96xf32>
    %c5_146 = arith.constant 5 : index
    %c0_147 = arith.constant 0 : index
    %c0_148 = arith.constant 0 : index
    %281 = vector.load %arg20[%c5_146, %c0_147, %c0_148] : memref<14x14x96xf32, #tpu.memory_space<vmem>>, vector<8x8x96xf32>
    %282 = vector.extract_strided_slice %69 {offsets = [35, 0], sizes = [1, 96], strides = [1, 1]} : vector<49x96xf32> to vector<1x96xf32>
    %283 = vector.shape_cast %282 : vector<1x96xf32> to vector<1x1x96xf32>
    %284 = vector.broadcast %283 : vector<1x1x96xf32> to vector<8x8x96xf32>
    %285 = arith.mulf %281, %284 : vector<8x8x96xf32>
    %286 = arith.addf %280, %285 : vector<8x8x96xf32>
    %c5_149 = arith.constant 5 : index
    %c1_150 = arith.constant 1 : index
    %c0_151 = arith.constant 0 : index
    %287 = vector.load %arg20[%c5_149, %c1_150, %c0_151] : memref<14x14x96xf32, #tpu.memory_space<vmem>>, vector<8x8x96xf32>
    %288 = vector.extract_strided_slice %69 {offsets = [36, 0], sizes = [1, 96], strides = [1, 1]} : vector<49x96xf32> to vector<1x96xf32>
    %289 = vector.shape_cast %288 : vector<1x96xf32> to vector<1x1x96xf32>
    %290 = vector.broadcast %289 : vector<1x1x96xf32> to vector<8x8x96xf32>
    %291 = arith.mulf %287, %290 : vector<8x8x96xf32>
    %292 = arith.addf %286, %291 : vector<8x8x96xf32>
    %c5_152 = arith.constant 5 : index
    %c2_153 = arith.constant 2 : index
    %c0_154 = arith.constant 0 : index
    %293 = vector.load %arg20[%c5_152, %c2_153, %c0_154] : memref<14x14x96xf32, #tpu.memory_space<vmem>>, vector<8x8x96xf32>
    %294 = vector.extract_strided_slice %69 {offsets = [37, 0], sizes = [1, 96], strides = [1, 1]} : vector<49x96xf32> to vector<1x96xf32>
    %295 = vector.shape_cast %294 : vector<1x96xf32> to vector<1x1x96xf32>
    %296 = vector.broadcast %295 : vector<1x1x96xf32> to vector<8x8x96xf32>
    %297 = arith.mulf %293, %296 : vector<8x8x96xf32>
    %298 = arith.addf %292, %297 : vector<8x8x96xf32>
    %c5_155 = arith.constant 5 : index
    %c3_156 = arith.constant 3 : index
    %c0_157 = arith.constant 0 : index
    %299 = vector.load %arg20[%c5_155, %c3_156, %c0_157] : memref<14x14x96xf32, #tpu.memory_space<vmem>>, vector<8x8x96xf32>
    %300 = vector.extract_strided_slice %69 {offsets = [38, 0], sizes = [1, 96], strides = [1, 1]} : vector<49x96xf32> to vector<1x96xf32>
    %301 = vector.shape_cast %300 : vector<1x96xf32> to vector<1x1x96xf32>
    %302 = vector.broadcast %301 : vector<1x1x96xf32> to vector<8x8x96xf32>
    %303 = arith.mulf %299, %302 : vector<8x8x96xf32>
    %304 = arith.addf %298, %303 : vector<8x8x96xf32>
    %c5_158 = arith.constant 5 : index
    %c4_159 = arith.constant 4 : index
    %c0_160 = arith.constant 0 : index
    %305 = vector.load %arg20[%c5_158, %c4_159, %c0_160] : memref<14x14x96xf32, #tpu.memory_space<vmem>>, vector<8x8x96xf32>
    %306 = vector.extract_strided_slice %69 {offsets = [39, 0], sizes = [1, 96], strides = [1, 1]} : vector<49x96xf32> to vector<1x96xf32>
    %307 = vector.shape_cast %306 : vector<1x96xf32> to vector<1x1x96xf32>
    %308 = vector.broadcast %307 : vector<1x1x96xf32> to vector<8x8x96xf32>
    %309 = arith.mulf %305, %308 : vector<8x8x96xf32>
    %310 = arith.addf %304, %309 : vector<8x8x96xf32>
    %c5_161 = arith.constant 5 : index
    %c5_162 = arith.constant 5 : index
    %c0_163 = arith.constant 0 : index
    %311 = vector.load %arg20[%c5_161, %c5_162, %c0_163] : memref<14x14x96xf32, #tpu.memory_space<vmem>>, vector<8x8x96xf32>
    %312 = vector.extract_strided_slice %69 {offsets = [40, 0], sizes = [1, 96], strides = [1, 1]} : vector<49x96xf32> to vector<1x96xf32>
    %313 = vector.shape_cast %312 : vector<1x96xf32> to vector<1x1x96xf32>
    %314 = vector.broadcast %313 : vector<1x1x96xf32> to vector<8x8x96xf32>
    %315 = arith.mulf %311, %314 : vector<8x8x96xf32>
    %316 = arith.addf %310, %315 : vector<8x8x96xf32>
    %c5_164 = arith.constant 5 : index
    %c6_165 = arith.constant 6 : index
    %c0_166 = arith.constant 0 : index
    %317 = vector.load %arg20[%c5_164, %c6_165, %c0_166] : memref<14x14x96xf32, #tpu.memory_space<vmem>>, vector<8x8x96xf32>
    %318 = vector.extract_strided_slice %69 {offsets = [41, 0], sizes = [1, 96], strides = [1, 1]} : vector<49x96xf32> to vector<1x96xf32>
    %319 = vector.shape_cast %318 : vector<1x96xf32> to vector<1x1x96xf32>
    %320 = vector.broadcast %319 : vector<1x1x96xf32> to vector<8x8x96xf32>
    %321 = arith.mulf %317, %320 : vector<8x8x96xf32>
    %322 = arith.addf %316, %321 : vector<8x8x96xf32>
    %c6_167 = arith.constant 6 : index
    %c0_168 = arith.constant 0 : index
    %c0_169 = arith.constant 0 : index
    %323 = vector.load %arg20[%c6_167, %c0_168, %c0_169] : memref<14x14x96xf32, #tpu.memory_space<vmem>>, vector<8x8x96xf32>
    %324 = vector.extract_strided_slice %69 {offsets = [42, 0], sizes = [1, 96], strides = [1, 1]} : vector<49x96xf32> to vector<1x96xf32>
    %325 = vector.shape_cast %324 : vector<1x96xf32> to vector<1x1x96xf32>
    %326 = vector.broadcast %325 : vector<1x1x96xf32> to vector<8x8x96xf32>
    %327 = arith.mulf %323, %326 : vector<8x8x96xf32>
    %328 = arith.addf %322, %327 : vector<8x8x96xf32>
    %c6_170 = arith.constant 6 : index
    %c1_171 = arith.constant 1 : index
    %c0_172 = arith.constant 0 : index
    %329 = vector.load %arg20[%c6_170, %c1_171, %c0_172] : memref<14x14x96xf32, #tpu.memory_space<vmem>>, vector<8x8x96xf32>
    %330 = vector.extract_strided_slice %69 {offsets = [43, 0], sizes = [1, 96], strides = [1, 1]} : vector<49x96xf32> to vector<1x96xf32>
    %331 = vector.shape_cast %330 : vector<1x96xf32> to vector<1x1x96xf32>
    %332 = vector.broadcast %331 : vector<1x1x96xf32> to vector<8x8x96xf32>
    %333 = arith.mulf %329, %332 : vector<8x8x96xf32>
    %334 = arith.addf %328, %333 : vector<8x8x96xf32>
    %c6_173 = arith.constant 6 : index
    %c2_174 = arith.constant 2 : index
    %c0_175 = arith.constant 0 : index
    %335 = vector.load %arg20[%c6_173, %c2_174, %c0_175] : memref<14x14x96xf32, #tpu.memory_space<vmem>>, vector<8x8x96xf32>
    %336 = vector.extract_strided_slice %69 {offsets = [44, 0], sizes = [1, 96], strides = [1, 1]} : vector<49x96xf32> to vector<1x96xf32>
    %337 = vector.shape_cast %336 : vector<1x96xf32> to vector<1x1x96xf32>
    %338 = vector.broadcast %337 : vector<1x1x96xf32> to vector<8x8x96xf32>
    %339 = arith.mulf %335, %338 : vector<8x8x96xf32>
    %340 = arith.addf %334, %339 : vector<8x8x96xf32>
    %c6_176 = arith.constant 6 : index
    %c3_177 = arith.constant 3 : index
    %c0_178 = arith.constant 0 : index
    %341 = vector.load %arg20[%c6_176, %c3_177, %c0_178] : memref<14x14x96xf32, #tpu.memory_space<vmem>>, vector<8x8x96xf32>
    %342 = vector.extract_strided_slice %69 {offsets = [45, 0], sizes = [1, 96], strides = [1, 1]} : vector<49x96xf32> to vector<1x96xf32>
    %343 = vector.shape_cast %342 : vector<1x96xf32> to vector<1x1x96xf32>
    %344 = vector.broadcast %343 : vector<1x1x96xf32> to vector<8x8x96xf32>
    %345 = arith.mulf %341, %344 : vector<8x8x96xf32>
    %346 = arith.addf %340, %345 : vector<8x8x96xf32>
    %c6_179 = arith.constant 6 : index
    %c4_180 = arith.constant 4 : index
    %c0_181 = arith.constant 0 : index
    %347 = vector.load %arg20[%c6_179, %c4_180, %c0_181] : memref<14x14x96xf32, #tpu.memory_space<vmem>>, vector<8x8x96xf32>
    %348 = vector.extract_strided_slice %69 {offsets = [46, 0], sizes = [1, 96], strides = [1, 1]} : vector<49x96xf32> to vector<1x96xf32>
    %349 = vector.shape_cast %348 : vector<1x96xf32> to vector<1x1x96xf32>
    %350 = vector.broadcast %349 : vector<1x1x96xf32> to vector<8x8x96xf32>
    %351 = arith.mulf %347, %350 : vector<8x8x96xf32>
    %352 = arith.addf %346, %351 : vector<8x8x96xf32>
    %c6_182 = arith.constant 6 : index
    %c5_183 = arith.constant 5 : index
    %c0_184 = arith.constant 0 : index
    %353 = vector.load %arg20[%c6_182, %c5_183, %c0_184] : memref<14x14x96xf32, #tpu.memory_space<vmem>>, vector<8x8x96xf32>
    %354 = vector.extract_strided_slice %69 {offsets = [47, 0], sizes = [1, 96], strides = [1, 1]} : vector<49x96xf32> to vector<1x96xf32>
    %355 = vector.shape_cast %354 : vector<1x96xf32> to vector<1x1x96xf32>
    %356 = vector.broadcast %355 : vector<1x1x96xf32> to vector<8x8x96xf32>
    %357 = arith.mulf %353, %356 : vector<8x8x96xf32>
    %358 = arith.addf %352, %357 : vector<8x8x96xf32>
    %c6_185 = arith.constant 6 : index
    %c6_186 = arith.constant 6 : index
    %c0_187 = arith.constant 0 : index
    %359 = vector.load %arg20[%c6_185, %c6_186, %c0_187] : memref<14x14x96xf32, #tpu.memory_space<vmem>>, vector<8x8x96xf32>
    %360 = vector.extract_strided_slice %69 {offsets = [48, 0], sizes = [1, 96], strides = [1, 1]} : vector<49x96xf32> to vector<1x96xf32>
    %361 = vector.shape_cast %360 : vector<1x96xf32> to vector<1x1x96xf32>
    %362 = vector.broadcast %361 : vector<1x1x96xf32> to vector<8x8x96xf32>
    %363 = arith.mulf %359, %362 : vector<8x8x96xf32>
    %364 = arith.addf %358, %363 : vector<8x8x96xf32>
    %365 = vector.extract_strided_slice %364 {offsets = [0, 0, 0], sizes = [1, 8, 96], strides = [1, 1, 1]} : vector<8x8x96xf32> to vector<1x8x96xf32>
    %366 = vector.shape_cast %365 : vector<1x8x96xf32> to vector<8x96xf32>
    %c0_188 = arith.constant 0 : index
    %c0_189 = arith.constant 0 : index
    %367 = vector.load %arg21[%c0_188, %c0_189] : memref<64x96xf32, #tpu.memory_space<vmem>>, vector<8x96xf32>
    tpu.vector_store %arg21[%c0_188, %c0_189], %366 {strides = array<i32>} : memref<64x96xf32, #tpu.memory_space<vmem>>, vector<8x96xf32>,
    %368 = vector.extract_strided_slice %364 {offsets = [1, 0, 0], sizes = [1, 8, 96], strides = [1, 1, 1]} : vector<8x8x96xf32> to vector<1x8x96xf32>
    %369 = vector.shape_cast %368 : vector<1x8x96xf32> to vector<8x96xf32>
    %c8_190 = arith.constant 8 : index
    %c0_191 = arith.constant 0 : index
    %370 = vector.load %arg21[%c8_190, %c0_191] : memref<64x96xf32, #tpu.memory_space<vmem>>, vector<8x96xf32>
    tpu.vector_store %arg21[%c8_190, %c0_191], %369 {strides = array<i32>} : memref<64x96xf32, #tpu.memory_space<vmem>>, vector<8x96xf32>,
    %371 = vector.extract_strided_slice %364 {offsets = [2, 0, 0], sizes = [1, 8, 96], strides = [1, 1, 1]} : vector<8x8x96xf32> to vector<1x8x96xf32>
    %372 = vector.shape_cast %371 : vector<1x8x96xf32> to vector<8x96xf32>
    %c16 = arith.constant 16 : index
    %c0_192 = arith.constant 0 : index
    %373 = vector.load %arg21[%c16, %c0_192] : memref<64x96xf32, #tpu.memory_space<vmem>>, vector<8x96xf32>
    tpu.vector_store %arg21[%c16, %c0_192], %372 {strides = array<i32>} : memref<64x96xf32, #tpu.memory_space<vmem>>, vector<8x96xf32>,
    %374 = vector.extract_strided_slice %364 {offsets = [3, 0, 0], sizes = [1, 8, 96], strides = [1, 1, 1]} : vector<8x8x96xf32> to vector<1x8x96xf32>
    %375 = vector.shape_cast %374 : vector<1x8x96xf32> to vector<8x96xf32>
    %c24 = arith.constant 24 : index
    %c0_193 = arith.constant 0 : index
    %376 = vector.load %arg21[%c24, %c0_193] : memref<64x96xf32, #tpu.memory_space<vmem>>, vector<8x96xf32>
    tpu.vector_store %arg21[%c24, %c0_193], %375 {strides = array<i32>} : memref<64x96xf32, #tpu.memory_space<vmem>>, vector<8x96xf32>,
    %377 = vector.extract_strided_slice %364 {offsets = [4, 0, 0], sizes = [1, 8, 96], strides = [1, 1, 1]} : vector<8x8x96xf32> to vector<1x8x96xf32>
    %378 = vector.shape_cast %377 : vector<1x8x96xf32> to vector<8x96xf32>
    %c32 = arith.constant 32 : index
    %c0_194 = arith.constant 0 : index
    %379 = vector.load %arg21[%c32, %c0_194] : memref<64x96xf32, #tpu.memory_space<vmem>>, vector<8x96xf32>
    tpu.vector_store %arg21[%c32, %c0_194], %378 {strides = array<i32>} : memref<64x96xf32, #tpu.memory_space<vmem>>, vector<8x96xf32>,
    %380 = vector.extract_strided_slice %364 {offsets = [5, 0, 0], sizes = [1, 8, 96], strides = [1, 1, 1]} : vector<8x8x96xf32> to vector<1x8x96xf32>
    %381 = vector.shape_cast %380 : vector<1x8x96xf32> to vector<8x96xf32>
    %c40 = arith.constant 40 : index
    %c0_195 = arith.constant 0 : index
    %382 = vector.load %arg21[%c40, %c0_195] : memref<64x96xf32, #tpu.memory_space<vmem>>, vector<8x96xf32>
    tpu.vector_store %arg21[%c40, %c0_195], %381 {strides = array<i32>} : memref<64x96xf32, #tpu.memory_space<vmem>>, vector<8x96xf32>,
    %383 = vector.extract_strided_slice %364 {offsets = [6, 0, 0], sizes = [1, 8, 96], strides = [1, 1, 1]} : vector<8x8x96xf32> to vector<1x8x96xf32>
    %384 = vector.shape_cast %383 : vector<1x8x96xf32> to vector<8x96xf32>
    %c48 = arith.constant 48 : index
    %c0_196 = arith.constant 0 : index
    %385 = vector.load %arg21[%c48, %c0_196] : memref<64x96xf32, #tpu.memory_space<vmem>>, vector<8x96xf32>
    tpu.vector_store %arg21[%c48, %c0_196], %384 {strides = array<i32>} : memref<64x96xf32, #tpu.memory_space<vmem>>, vector<8x96xf32>,
    %386 = vector.extract_strided_slice %364 {offsets = [7, 0, 0], sizes = [1, 8, 96], strides = [1, 1, 1]} : vector<8x8x96xf32> to vector<1x8x96xf32>
    %387 = vector.shape_cast %386 : vector<1x8x96xf32> to vector<8x96xf32>
    %c56 = arith.constant 56 : index
    %c0_197 = arith.constant 0 : index
    %388 = vector.load %arg21[%c56, %c0_197] : memref<64x96xf32, #tpu.memory_space<vmem>>, vector<8x96xf32>
    tpu.vector_store %arg21[%c56, %c0_197], %387 {strides = array<i32>} : memref<64x96xf32, #tpu.memory_space<vmem>>, vector<8x96xf32>,
    %c0_198 = arith.constant 0 : index
    %c0_199 = arith.constant 0 : index
    %389 = vector.load %arg21[%c0_198, %c0_199] : memref<64x96xf32, #tpu.memory_space<vmem>>, vector<64x96xf32>
    %c0_200 = arith.constant 0 : index
    %c0_201 = arith.constant 0 : index
    %390 = vector.load %arg7[%c0_200, %c0_201] : memref<1x96xf32, #tpu.memory_space<vmem>>, vector<1x96xf32>
    %391 = vector.broadcast %390 : vector<1x96xf32> to vector<64x96xf32>
    %392 = arith.addf %389, %391 : vector<64x96xf32>
    %c0_202 = arith.constant 0 : index
    %c0_203 = arith.constant 0 : index
    %393 = vector.load %arg8[%c0_202, %c0_203] : memref<1x96xf32, #tpu.memory_space<vmem>>, vector<1x96xf32>
    %cst_204 = arith.constant 0.000000e+00 : f32
    %394 = vector.broadcast %cst_204 : f32 to vector<64x96xf32>
    %395 = arith.cmpf oge, %392, %394 : vector<64x96xf32>
    %396 = vector.broadcast %393 : vector<1x96xf32> to vector<64x96xf32>
    %397 = arith.mulf %396, %392 : vector<64x96xf32>
    %398 = arith.select %395, %392, %397 : vector<64x96xi1>, vector<64x96xf32>
    %c0_205 = arith.constant 0 : index
    %c0_206 = arith.constant 0 : index
    %399 = vector.load %arg9[%c0_205, %c0_206] : memref<96x120xf32, #tpu.memory_space<vmem>>, vector<96x120xf32>
    %cst_207 = arith.constant dense<0.000000e+00> : vector<64x120xf32>
    %400 = tpu.matmul %398, %399, %cst_207 {dimension_numbers = #tpu.dot_dimension_numbers<[1], [0], [0], [1], [0, 0, 1, 1], [], []>} : vector<64x96xf32>, vector<96x120xf32>, vector<64x120xf32> -> vector<64x120xf32>
    %c0_208 = arith.constant 0 : index
    %c0_209 = arith.constant 0 : index
    %401 = vector.load %arg10[%c0_208, %c0_209] : memref<1x120xf32, #tpu.memory_space<vmem>>, vector<1x120xf32>
    %402 = vector.broadcast %401 : vector<1x120xf32> to vector<64x120xf32>
    %403 = arith.addf %400, %402 : vector<64x120xf32>
    %cst_210 = arith.constant dense<0.000000e+00> : vector<120xf32>
    %404 = vector.multi_reduction <add>, %403, %cst_210 [0] : vector<64x120xf32> to vector<120xf32>
    %405 = vector.shape_cast %404 : vector<120xf32> to vector<1x120xf32>
    %cst_211 = arith.constant 6.400000e+01 : f32
    %406 = vector.broadcast %cst_211 : f32 to vector<1x120xf32>
    %407 = arith.divf %405, %406 : vector<1x120xf32>
    %c0_212 = arith.constant 0 : index
    %c0_213 = arith.constant 0 : index
    %408 = vector.load %arg11[%c0_212, %c0_213] : memref<120x96xf32, #tpu.memory_space<vmem>>, vector<120x96xf32>
    %cst_214 = arith.constant dense<0.000000e+00> : vector<1x96xf32>
    %409 = tpu.matmul %407, %408, %cst_214 {dimension_numbers = #tpu.dot_dimension_numbers<[1], [0], [0], [1], [0, 0, 1, 1], [], []>} : vector<1x120xf32>, vector<120x96xf32>, vector<1x96xf32> -> vector<1x96xf32>
    %c0_215 = arith.constant 0 : index
    %c0_216 = arith.constant 0 : index
    %410 = vector.load %arg12[%c0_215, %c0_216] : memref<1x96xf32, #tpu.memory_space<vmem>>, vector<1x96xf32>
    %411 = arith.addf %409, %410 : vector<1x96xf32>
    %c0_217 = arith.constant 0 : index
    %c0_218 = arith.constant 0 : index
    %412 = vector.load %arg13[%c0_217, %c0_218] : memref<1x96xf32, #tpu.memory_space<vmem>>, vector<1x96xf32>
    %cst_219 = arith.constant 0.000000e+00 : f32
    %413 = vector.broadcast %cst_219 : f32 to vector<1x96xf32>
    %414 = arith.cmpf oge, %411, %413 : vector<1x96xf32>
    %415 = arith.mulf %412, %411 : vector<1x96xf32>
    %416 = arith.select %414, %411, %415 : vector<1x96xi1>, vector<1x96xf32>
    %c0_220 = arith.constant 0 : index
    %c0_221 = arith.constant 0 : index
    %417 = vector.load %arg14[%c0_220, %c0_221] : memref<96x120xf32, #tpu.memory_space<vmem>>, vector<96x120xf32>
    %cst_222 = arith.constant dense<0.000000e+00> : vector<1x120xf32>
    %418 = tpu.matmul %416, %417, %cst_222 {dimension_numbers = #tpu.dot_dimension_numbers<[1], [0], [0], [1], [0, 0, 1, 1], [], []>} : vector<1x96xf32>, vector<96x120xf32>, vector<1x120xf32> -> vector<1x120xf32>
    %c0_223 = arith.constant 0 : index
    %c0_224 = arith.constant 0 : index
    %419 = vector.load %arg15[%c0_223, %c0_224] : memref<1x120xf32, #tpu.memory_space<vmem>>, vector<1x120xf32>
    %420 = arith.addf %418, %419 : vector<1x120xf32>
    %421 = arith.negf %420 : vector<1x120xf32>
    %422 = math.exp %421 : vector<1x120xf32>
    %cst_225 = arith.constant 1.000000e+00 : f32
    %423 = vector.broadcast %cst_225 : f32 to vector<1x120xf32>
    %424 = arith.addf %423, %422 : vector<1x120xf32>
    %425 = arith.divf %423, %424 : vector<1x120xf32>
    %426 = vector.broadcast %425 : vector<1x120xf32> to vector<64x120xf32>
    %427 = arith.mulf %403, %426 : vector<64x120xf32>
    %c0_226 = arith.constant 0 : index
    %c0_227 = arith.constant 0 : index
    %c0_228 = arith.constant 0 : index
    %428 = vector.load %arg2[%c0_226, %c0_227, %c0_228] : memref<1x64x12xf32, #tpu.memory_space<vmem>>, vector<1x64x12xf32>
    %429 = vector.shape_cast %428 : vector<1x64x12xf32> to vector<64x12xf32>
    %c0_229 = arith.constant 0 : index
    %c0_230 = arith.constant 0 : index
    %430 = vector.load %arg16[%c0_229, %c0_230] : memref<120x32xf32, #tpu.memory_space<vmem>>, vector<120x32xf32>
    %cst_231 = arith.constant dense<0.000000e+00> : vector<64x32xf32>
    %431 = tpu.matmul %427, %430, %cst_231 {dimension_numbers = #tpu.dot_dimension_numbers<[1], [0], [0], [1], [0, 0, 1, 1], [], []>} : vector<64x120xf32>, vector<120x32xf32>, vector<64x32xf32> -> vector<64x32xf32>
    %c0_232 = arith.constant 0 : index
    %c0_233 = arith.constant 0 : index
    %432 = vector.load %arg17[%c0_232, %c0_233] : memref<12x32xf32, #tpu.memory_space<vmem>>, vector<12x32xf32>
    %cst_234 = arith.constant dense<0.000000e+00> : vector<64x32xf32>
    %433 = tpu.matmul %429, %432, %cst_234 {dimension_numbers = #tpu.dot_dimension_numbers<[1], [0], [0], [1], [0, 0, 1, 1], [], []>} : vector<64x12xf32>, vector<12x32xf32>, vector<64x32xf32> -> vector<64x32xf32>
    %434 = arith.addf %431, %433 : vector<64x32xf32>
    %c0_235 = arith.constant 0 : index
    %c0_236 = arith.constant 0 : index
    %435 = vector.load %arg18[%c0_235, %c0_236] : memref<1x32xf32, #tpu.memory_space<vmem>>, vector<1x32xf32>
    %436 = vector.broadcast %435 : vector<1x32xf32> to vector<64x32xf32>
    %437 = arith.addf %434, %436 : vector<64x32xf32>
    %c0_237 = arith.constant 0 : index
    %c0_238 = arith.constant 0 : index
    %c0_239 = arith.constant 0 : index
    %438 = vector.load %arg19[%c0_237, %c0_238, %c0_239] : memref<1x64x32xf32, #tpu.memory_space<vmem>>, vector<1x64x32xf32>
    %439 = vector.shape_cast %438 : vector<1x64x32xf32> to vector<64x32xf32>
    %440 = vector.shape_cast %437 : vector<64x32xf32> to vector<1x64x32xf32>
    tpu.vector_store %arg19[%c0_237, %c0_238, %c0_239], %440 {strides = array<i32>} : memref<1x64x32xf32, #tpu.memory_space<vmem>>, vector<1x64x32xf32>,
    return
  }
  func.func @transform_0(%arg0: i32) -> (i32, i32, i32) {
    %c0_i32 = arith.constant 0 : i32
    %c0_i32_0 = arith.constant 0 : i32
    %c0_i32_1 = arith.constant 0 : i32
    return %arg0, %c0_i32, %c0_i32_0 : i32, i32, i32
  }
  func.func @transform_1(%arg0: i32) -> (i32, i32, i32) {
    %c0_i32 = arith.constant 0 : i32
    %c0_i32_0 = arith.constant 0 : i32
    %c0_i32_1 = arith.constant 0 : i32
    return %arg0, %c0_i32, %c0_i32_0 : i32, i32, i32
  }
  func.func @transform_2(%arg0: i32) -> (i32, i32) {
    %c0_i32 = arith.constant 0 : i32
    %c0_i32_0 = arith.constant 0 : i32
    %c0_i32_1 = arith.constant 0 : i32
    return %c0_i32, %c0_i32_0 : i32, i32
  }
  func.func @transform_3(%arg0: i32) -> (i32, i32) {
    %c0_i32 = arith.constant 0 : i32
    %c0_i32_0 = arith.constant 0 : i32
    %c0_i32_1 = arith.constant 0 : i32
    return %c0_i32, %c0_i32_0 : i32, i32
  }
  func.func @transform_4(%arg0: i32) -> (i32, i32) {
    %c0_i32 = arith.constant 0 : i32
    %c0_i32_0 = arith.constant 0 : i32
    %c0_i32_1 = arith.constant 0 : i32
    return %c0_i32, %c0_i32_0 : i32, i32
  }
  func.func @transform_5(%arg0: i32) -> (i32, i32) {
    %c0_i32 = arith.constant 0 : i32
    %c0_i32_0 = arith.constant 0 : i32
    %c0_i32_1 = arith.constant 0 : i32
    return %c0_i32, %c0_i32_0 : i32, i32
  }
  func.func @transform_6(%arg0: i32) -> (i32, i32) {
    %c0_i32 = arith.constant 0 : i32
    %c0_i32_0 = arith.constant 0 : i32
    %c0_i32_1 = arith.constant 0 : i32
    return %c0_i32, %c0_i32_0 : i32, i32
  }
  func.func @transform_7(%arg0: i32) -> (i32, i32) {
    %c0_i32 = arith.constant 0 : i32
    %c0_i32_0 = arith.constant 0 : i32
    %c0_i32_1 = arith.constant 0 : i32
    return %c0_i32, %c0_i32_0 : i32, i32
  }
  func.func @transform_8(%arg0: i32) -> (i32, i32) {
    %c0_i32 = arith.constant 0 : i32
    %c0_i32_0 = arith.constant 0 : i32
    %c0_i32_1 = arith.constant 0 : i32
    return %c0_i32, %c0_i32_0 : i32, i32
  }
  func.func @transform_9(%arg0: i32) -> (i32, i32) {
    %c0_i32 = arith.constant 0 : i32
    %c0_i32_0 = arith.constant 0 : i32
    %c0_i32_1 = arith.constant 0 : i32
    return %c0_i32, %c0_i32_0 : i32, i32
  }
  func.func @transform_10(%arg0: i32) -> (i32, i32) {
    %c0_i32 = arith.constant 0 : i32
    %c0_i32_0 = arith.constant 0 : i32
    %c0_i32_1 = arith.constant 0 : i32
    return %c0_i32, %c0_i32_0 : i32, i32
  }
  func.func @transform_11(%arg0: i32) -> (i32, i32) {
    %c0_i32 = arith.constant 0 : i32
    %c0_i32_0 = arith.constant 0 : i32
    %c0_i32_1 = arith.constant 0 : i32
    return %c0_i32, %c0_i32_0 : i32, i32
  }
  func.func @transform_12(%arg0: i32) -> (i32, i32) {
    %c0_i32 = arith.constant 0 : i32
    %c0_i32_0 = arith.constant 0 : i32
    %c0_i32_1 = arith.constant 0 : i32
    return %c0_i32, %c0_i32_0 : i32, i32
  }
  func.func @transform_13(%arg0: i32) -> (i32, i32) {
    %c0_i32 = arith.constant 0 : i32
    %c0_i32_0 = arith.constant 0 : i32
    %c0_i32_1 = arith.constant 0 : i32
    return %c0_i32, %c0_i32_0 : i32, i32
  }
  func.func @transform_14(%arg0: i32) -> (i32, i32) {
    %c0_i32 = arith.constant 0 : i32
    %c0_i32_0 = arith.constant 0 : i32
    %c0_i32_1 = arith.constant 0 : i32
    return %c0_i32, %c0_i32_0 : i32, i32
  }
  func.func @transform_15(%arg0: i32) -> (i32, i32) {
    %c0_i32 = arith.constant 0 : i32
    %c0_i32_0 = arith.constant 0 : i32
    %c0_i32_1 = arith.constant 0 : i32
    return %c0_i32, %c0_i32_0 : i32, i32
  }
  func.func @transform_16(%arg0: i32) -> (i32, i32) {
    %c0_i32 = arith.constant 0 : i32
    %c0_i32_0 = arith.constant 0 : i32
    %c0_i32_1 = arith.constant 0 : i32
    return %c0_i32, %c0_i32_0 : i32, i32
  }
  func.func @transform_17(%arg0: i32) -> (i32, i32) {
    %c0_i32 = arith.constant 0 : i32
    %c0_i32_0 = arith.constant 0 : i32
    %c0_i32_1 = arith.constant 0 : i32
    return %c0_i32, %c0_i32_0 : i32, i32
  }
  func.func @transform_18(%arg0: i32) -> (i32, i32, i32) {
    %c0_i32 = arith.constant 0 : i32
    %c0_i32_0 = arith.constant 0 : i32
    %c0_i32_1 = arith.constant 0 : i32
    return %arg0, %c0_i32, %c0_i32_0 : i32, i32, i32
  }
}

</mosaic_0001>

<bundles_post_ra>
// kernel: basic_block_forward.1
= control target key start
LH: loop header
LB: loop body
LE: loop exit
PB: predicated region body
PF: predicated region fallthrough
CT: control target
= control target key end

     0   :  { %s5684_s0 = inlined_call_operand.vmem [shape: f32[2,196,12], index: 0, kind: input, shape index: {}]   ;;  %s5685_s1 = inlined_call_operand.vmem [shape: f32[2,64,12], index: 1, kind: input, shape index: {}]   ;;  %s5686_s2 = inlined_call_operand.vmem [shape: f32[12,96], index: 2, kind: input, shape index: {}]   ;;  %s5687_s3 = inlined_call_operand.vmem [shape: f32[1,96], index: 3, kind: input, shape index: {}]   ;;  %s5688_s4 = inlined_call_operand.vmem [shape: f32[1,96], index: 4, kind: input, shape index: {}]   ;;  %s5689_s5 = inlined_call_operand.vmem [shape: f32[49,96], index: 5, kind: input, shape index: {}]   ;;  %s5690_s6 = inlined_call_operand.vmem [shape: f32[1,96], index: 6, kind: input, shape index: {}]   ;;  %s5691_s7 = inlined_call_operand.vmem [shape: f32[1,96], index: 7, kind: input, shape index: {}]   ;;  %s5692_s8 = inlined_call_operand.vmem [shape: f32[96,120], index: 8, kind: input, shape index: {}]   ;;  %s5693_s9 = inlined_call_operand.vmem [shape: f32[1,120], index: 9, kind: input, shape index: {}]   ;;  %s5694_s10 = inlined_call_operand.vmem [shape: f32[120,96], index: 10, kind: input, shape index: {}]   ;;  %s5695_s11 = inlined_call_operand.vmem [shape: f32[1,96], index: 11, kind: input, shape index: {}]   ;;  %s5696_s12 = inlined_call_operand.vmem [shape: f32[1,96], index: 12, kind: input, shape index: {}]   ;;  %s5697_s13 = inlined_call_operand.vmem [shape: f32[96,120], index: 13, kind: input, shape index: {}]   ;;  %s5698_s14 = inlined_call_operand.vmem [shape: f32[1,120], index: 14, kind: input, shape index: {}]   ;;  %s5699_s15 = inlined_call_operand.vmem [shape: f32[120,32], index: 15, kind: input, shape index: {}]   ;;  %s5700_s16 = inlined_call_operand.vmem [shape: f32[12,32], index: 16, kind: input, shape index: {}]   ;;  %s5701_s17 = inlined_call_operand.vmem [shape: f32[1,32], index: 17, kind: input, shape index: {}]   ;;  %s5702_s18 = inlined_call_operand.hbm [shape: f32[2,64,32], index: 18, kind: output, shape index: {}]  }
   0x1   :  { %5810 = sst [smem:[#allocation69_spill]] %s5684_s0 }
   0x2   :  { %5811 = sst [smem:[#allocation70_spill]] %s5685_s1 }
   0x3   :  { %5812 = sst [smem:[#allocation71_spill]] %s5686_s2 }
   0x4   :  { %5813 = sst [smem:[#allocation72_spill]] %s5687_s3 }
   0x5   :  { %5814 = sst [smem:[#allocation73_spill]] %s5688_s4 }
   0x6   :  { %5815 = sst [smem:[#allocation74_spill]] %s5689_s5 }
   0x7   :  { %5816 = sst [smem:[#allocation75_spill]] %s5690_s6 }
   0x8   :  { %5817 = sst [smem:[#allocation76_spill]] %s5691_s7 }
   0x9   :  { %23 = vsyncpa [#allocation5], 0 }
   0xa   :  { %25 = vsyncpa [#allocation5 + $0x1], 0  ;;  %s3989_s27 = smov 0   ;;  %s3991_s28 = smov 0  }
   0xb   :  { %s3993_s29 = smov 0   ;;  %s3995_s30 = smov 0  }
   0xc LB: > { %s4010_s0 = sadd.s32 4294967295, %s3885_s30   ;;  %s3243_s19 = sadd.s32 4294967294, %s3885_s30   ;;  %s3885_s30 = sphi %s3995_s30, %s6050_s30   ;;  %s3881_s29 = sphi %s3993_s29, %s6049_s29   ;;  %s3877_s28 = sphi %s3991_s28, %s6048_s28   ;;  %s3873_s27 = sphi %s3989_s27, %s6047_s27  }
   0xd   : > { %s4014_s1 = sadd.s32 1, %s3885_s30   ;;  %s426_s20 = sadd.s32 1, %s3881_s29 }
   0xe   : > { %s423_s21 = ssub.s32 %s3885_s30, %s4014_s1  ;;  %p436_p0 = scmp.ne.s32.totalorder %s3881_s29, %s3877_s28 }
   0xf   : > { %p424_p1 = scmp.eq.s32.totalorder %s423_s21, 0  ;;  %p437_p2 = scmp.eq.s32.totalorder %s4010_s0, 1 }
  0x10   : > { %p442_p3 = scmp.ne.s32.totalorder %s3877_s28, %s3873_s27  ;;  %p443_p4 = scmp.eq.s32.totalorder %s3243_s19, 1 }
  0x11   : > { %s4025_s22 = scalar_select %p424_p1, %s3881_s29, %s426_s20  }
  0x12   : > { %p4027_p5 = por %p437_p2, %p436_p0  ;;  %p4031_p6 = por %p443_p4, %p442_p3 }
  0x13   : > { %5818 = sst [smem:[#allocation7_spill]] %s4025_s22  ;;  %p3246_p7 = scmp.ge.s32.totalorder %s3885_s30, 1 }
  0x14   : > { %p525_p8 = scmp.lt.s32.totalorder %s3885_s30, 3 }
  0x16   : > { %p526_p9 = pnand %p3246_p7, %p525_p8 }
  0x18   : > { %529 = sbr.rel (%p526_p9) target bundleno = 1465 (0x5b9), region = 92 }
  0x1f   : > { %s5821_s26 = sld [smem:[#allocation71_spill]]  ;;  %vm704_vm0 = vcmask 1043456   ;;  %v5707_v2 = vmov 0.0|0.0   ;;  %vm3888_vm1 = vmmov 1   ;;  %v5822_v4 = vmov 0  ;;  %p584_p10 = scmp.lt.s32.totalorder %s4010_s0, 1 }
  0x20   : > { %3661 = vmatprep.subr.bf16.mxu0 %v5707_v2  ;;  %vm4044_vm2 = vmpackc.low %vm704_vm0, %vm3888_vm1  ;;  %vm3889_vm3 = vmmov 0   ;;  %v5705_v5 = vmov 0.0   ;;  %vm628_vm4 = vcmask 97280   ;;  %s5825_s20 = sld [smem:[#allocation69_spill]]  ;;  %v1050_v31 = vlaneseq  ;;  %s5826_s3 = sld [smem:[#allocation72_spill]] }
  0x21   : > { %v5823_v4 = vsel %vm4044_vm2, 4294967295, %v5822_v4  ;;  %3432 = vmatprep.mubr.msk.f32.mxu0 %vm3889_vm3, %v5705_v5  ;;  %s4054_s21 = scalar_select %p584_p10, %s4010_s0, 1  ;;  %vm980_vm5 = vcmask 785408   ;;  %vm982_vm7 = vcmask 783360   ;;  %vm985_vm8 = vcmask 785414  }
  0x22   : > { %5824 = vst [vmem:[#allocation8_spill] sm:$0xff] %v5823_v4  ;;  %v1051_v33 = vshrl.u32 %v1050_v31, 7  ;;  %s5827_s4 = sld [smem:[#allocation73_spill]]  ;;  %s5829_s5 = sld [smem:[#allocation74_spill]]  ;;  %vm988_vm10 = vcmask 781312   ;;  %vm991_vm11 = vcmask 785412  }
  0x23   : > { %s3770_s24 = smul.u32 200, %s4054_s21  ;;  %vm994_vm14 = vcmask 779264   ;;  %vm997_vm15 = vcmask 785410   ;;  %s6039_s6 = sld [smem:[#allocation75_spill]] }
  0x24   : > { %v4175_v39 = vsub.s32 0, %v1051_v33  ;;  %v4177_v40 = vsub.s32 1, %v1051_v33  ;;  %v4182_v43 = vsub.s32 2, %v1051_v33  ;;  %v4184_v44 = vsub.s32 3, %v1051_v33  ;;  %s6041_s7 = sld [smem:[#allocation76_spill]]  ;;  %s3317_s22 = sshll.u32 %s4054_s21, 6 }
  0x25   : > { %v619_v0 = vld [vmem:[%s5821_s26] sm:$0xff]  ;;  %v620_v1 = vld [vmem:[%s5821_s26 + $0x8] sm:$0xf]  ;;  %v4186_v45 = vsub.s32 4, %v1051_v33  ;;  %v4188_v46 = vsub.s32 5, %v1051_v33  ;;  %v4191_v49 = vsub.s32 6, %v1051_v33 }
  0x26   : > { %v3662_v3 = vpack.c.bf16 %v620_v1, %v619_v0  ;;  %s4061_s26 = scalar_lea.vmem %s5825_s20, %s3770_s24  ;;  %v4166_v32 = vld [vmem:[%s5826_s3] ss:$0 sm:$0xff]  ;;  %5828 = vst [vmem:[#allocation9_spill] sm:$0xff] %v4175_v39  ;;  %v4194_v51 = vsub.s32 7, %v1051_v33  ;;  %s581_s19 = sand.u32 1, %s3877_s28  }
  0x27   : > { %v594_v6 = vld [vmem:[%s4061_s26] sm:$0xff]  ;;  %v595_v7 = vld [vmem:[%s4061_s26 + $0x8] sm:$0xff]  ;;  %v596_v8 = vld [vmem:[%s4061_s26 + $0x10] sm:$0xff]  ;;  %s3891_s25 = smov [#allocation4]  }
  0x28   : > { %3664 = vmatpush3.bf16.msk.msra.mxu0 %vm4044_vm2, %v3662_v3  ;;  %v597_v9 = vld [vmem:[%s4061_s26 + $0x18] sm:$0xff]  ;;  %v598_v10 = vld [vmem:[%s4061_s26 + $0x20] sm:$0xff]  ;;  %v599_v11 = vld [vmem:[%s4061_s26 + $0x28] sm:$0xff] }
  0x29   : > { %3689 = vmatprep.subr.bf16.mxu0 %v5707_v2  ;;  %v600_v12 = vld [vmem:[%s4061_s26 + $0x30] sm:$0xff]  ;;  %v601_v13 = vld [vmem:[%s4061_s26 + $0x38] sm:$0xff]  ;;  %v602_v14 = vld [vmem:[%s4061_s26 + $0x40] sm:$0xff] }
  0x2a   : > { %v603_v15 = vld [vmem:[%s4061_s26 + $0x48] sm:$0xff]  ;;  %v604_v16 = vld [vmem:[%s4061_s26 + $0x50] sm:$0xff]  ;;  %v605_v17 = vld [vmem:[%s4061_s26 + $0x58] sm:$0xff] }
  0x2b   : > { %3433 = vmatmul.mubr.msk.f32.vlgmr.msra.gmra.mrb[0].mxu0 %vm628_vm4, %v594_v6  ;;  %v606_v18 = vld [vmem:[%s4061_s26 + $0x60] sm:$0xff]  ;;  %v607_v19 = vld [vmem:[%s4061_s26 + $0x68] sm:$0xff]  ;;  %v608_v20 = vld [vmem:[%s4061_s26 + $0x70] sm:$0xff] }
  0x2c   : > { %3435 = vmatprep.mubr.msk.f32.mxu0 %vm3889_vm3, %v5705_v5  ;;  %v609_v21 = vld [vmem:[%s4061_s26 + $0x78] sm:$0xff]  ;;  %v610_v22 = vld [vmem:[%s4061_s26 + $0x80] sm:$0xff]  ;;  %v611_v23 = vld [vmem:[%s4061_s26 + $0x88] sm:$0xff] }
  0x2d   : > { %v612_v24 = vld [vmem:[%s4061_s26 + $0x90] sm:$0xff]  ;;  %v613_v25 = vld [vmem:[%s4061_s26 + $0x98] sm:$0xff]  ;;  %v614_v26 = vld [vmem:[%s4061_s26 + $0xa0] sm:$0xff] }
  0x2e   : > { %v615_v27 = vld [vmem:[%s4061_s26 + $0xa8] sm:$0xff]  ;;  %v616_v28 = vld [vmem:[%s4061_s26 + $0xb0] sm:$0xff]  ;;  %v617_v29 = vld [vmem:[%s4061_s26 + $0xb8] sm:$0xff] }
  0x2f   : > { %3436 = vmatmul.mubr.msk.f32.gmra.mrb[2].mxu0 %vm628_vm4, %v595_v7  ;;  %v618_v30 = vld [vmem:[%s4061_s26 + $0xc0] sm:$0xf]  ;;  %v1036_v55 = vld [vmem:[%s5829_s5 + $0x8] sm:$0xff]  ;;  %v1037_v7 = vld [vmem:[%s5829_s5 + $0x10] sm:$0xff]  ;;  %s6044_s26 = sld [smem:[#allocation70_spill]] }
  0x30   : > { %3438 = vmatprep.mubr.msk.f32.mxu0 %vm3889_vm3, %v5705_v5  ;;  %v4171_v35 = vld [vmem:[%s5827_s4] ss:$0 sm:$0xff]  ;;  %v4228_v3 = vrot.slane %v1036_v55, %v4175_v39  ;;  %v4231_v6 = vrot.slane %v1036_v55, %v4177_v40 }
  0x31   : > { %v1035_v41 = vld [vmem:[%s5829_s5] sm:$0xff] }
  0x32   : > { %v4197_v52 = vrot.slane %v1035_v41, %v4175_v39  ;;  %v4201_v54 = vrot.slane %v1035_v41, %v4177_v40  ;;  %v4207_v56 = vrot.slane %v1035_v41, %v4182_v43  ;;  %v4210_v57 = vrot.slane %v1035_v41, %v4184_v44  ;;  %5837 = vst [vmem:[#allocation17_spill] sm:$0xff] %v4228_v3 }
  0x33   : > { %3439 = vmatmul.mubr.msk.f32.gmra.mrb[4].mxu0 %vm628_vm4, %v596_v8  ;;  %v4213_v58 = vrot.slane %v1035_v41, %v4186_v45  ;;  %v4216_v59 = vrot.slane %v1035_v41, %v4188_v46  ;;  %v4219_v62 = vrot.slane %v1035_v41, %v4191_v49  ;;  %v4225_v1 = vrot.slane %v1035_v41, %v4194_v51 }
  0x34   : > { %3441 = vmatprep.mubr.msk.f32.mxu0 %vm3889_vm3, %v5705_v5  ;;  %5830 = vst [vmem:[#allocation10_spill] sm:$0xff] %v4197_v52  ;;  %5831 = vst [vmem:[#allocation11_spill] sm:$0xff] %v4201_v54 }
  0x35   : > { %5832 = vst [vmem:[#allocation12_spill] sm:$0xff] %v4207_v56  ;;  %5833 = vst [vmem:[#allocation13_spill] sm:$0xff] %v4210_v57 }
  0x36   : > { %5834 = vst [vmem:[#allocation14_spill] sm:$0xff] %v4213_v58  ;;  %5835 = vst [vmem:[#allocation15_spill] sm:$0xff] %v4216_v59 }
  0x37   : > { %3442 = vmatmul.mubr.msk.f32.gmra.mrb[6].mxu0 %vm628_vm4, %v597_v9  ;;  %5836 = vst [vmem:[#allocation16_spill] sm:$0xff] %v4225_v1  ;;  %5838 = vst [vmem:[#allocation18_spill] sm:$0xff] %v4231_v6  ;;  %v4238_v9 = vrot.slane %v1036_v55, %v4182_v43 }
  0x38   : > { %3444 = vmatprep.mubr.msk.f32.mxu0 %vm3889_vm3, %v5705_v5 }
  0x39   : > { %5839 = vst [vmem:[#allocation19_spill] sm:$0xff] %v4238_v9 }
  0x3b   : > { %3445 = vmatmul.mubr.msk.f32.gmra.mrb[8].mxu0 %vm628_vm4, %v598_v10  ;;  %v4241_v10 = vrot.slane %v1036_v55, %v4184_v44 }
  0x3c   : > { %3447 = vmatprep.mubr.msk.f32.mxu0 %vm3889_vm3, %v5705_v5 }
  0x3d   : > { %5840 = vst [vmem:[#allocation20_spill] sm:$0xff] %v4241_v10 }
  0x3f   : > { %3448 = vmatmul.mubr.msk.f32.gmra.mrb[10].mxu0 %vm628_vm4, %v599_v11 }
  0x40   : > { %3450 = vmatprep.mubr.msk.f32.mxu0 %vm3889_vm3, %v5705_v5 }
  0x43   : > { %3451 = vmatmul.mubr.msk.f32.gmra.mrb[12].mxu0 %vm628_vm4, %v600_v12  ;;  %v4244_v12 = vrot.slane %v1036_v55, %v4186_v45 }
  0x44   : > { %3453 = vmatprep.mubr.msk.f32.mxu0 %vm3889_vm3, %v5705_v5 }
  0x45   : > { %5841 = vst [vmem:[#allocation21_spill] sm:$0xff] %v4244_v12 }
  0x47   : > { %3454 = vmatmul.mubr.msk.f32.gmra.mrb[14].mxu0 %vm628_vm4, %v601_v13  ;;  %v4247_v13 = vrot.slane %v1036_v55, %v4188_v46 }
  0x48   : > { %3456 = vmatprep.mubr.msk.f32.mxu0 %vm3889_vm3, %v5705_v5 }
  0x49   : > { %5842 = vst [vmem:[#allocation22_spill] sm:$0xff] %v4247_v13 }
  0x4b   : > { %3457 = vmatmul.mubr.msk.f32.gmra.mrb[16].mxu0 %vm628_vm4, %v602_v14  ;;  %v4250_v14 = vrot.slane %v1036_v55, %v4191_v49 }
  0x4c   : > { %3459 = vmatprep.mubr.msk.f32.mxu0 %vm3889_vm3, %v5705_v5 }
  0x4d   : > { %5843 = vst [vmem:[#allocation23_spill] sm:$0xff] %v4250_v14 }
  0x4f   : > { %3460 = vmatmul.mubr.msk.f32.gmra.mrb[18].mxu0 %vm628_vm4, %v603_v15  ;;  %v4253_v15 = vrot.slane %v1036_v55, %v4194_v51 }
  0x50   : > { %3462 = vmatprep.mubr.msk.f32.mxu0 %vm3889_vm3, %v5705_v5 }
  0x51   : > { %5844 = vst [vmem:[#allocation24_spill] sm:$0xff] %v4253_v15 }
  0x53   : > { %3463 = vmatmul.mubr.msk.f32.gmra.mrb[20].mxu0 %vm628_vm4, %v604_v16 }
  0x54   : > { %3465 = vmatprep.mubr.msk.f32.mxu0 %vm3889_vm3, %v5705_v5 }
  0x57   : > { %3466 = vmatmul.mubr.msk.f32.gmra.mrb[22].mxu0 %vm628_vm4, %v605_v17 }
  0x58   : > { %3468 = vmatprep.mubr.msk.f32.mxu0 %vm3889_vm3, %v5705_v5 }
  0x5b   : > { %3469 = vmatmul.mubr.msk.f32.gmra.mrb[24].mxu0 %vm628_vm4, %v606_v18 }
  0x5c   : > { %3471 = vmatprep.mubr.msk.f32.mxu0 %vm3889_vm3, %v5705_v5 }
  0x5f   : > { %3472 = vmatmul.mubr.msk.f32.gmra.mrb[26].mxu0 %vm628_vm4, %v607_v19  ;;  %v4257_v19 = vrot.slane %v1037_v7, %v4175_v39 }
  0x60   : > { %3474 = vmatprep.mubr.msk.f32.mxu0 %vm3889_vm3, %v5705_v5 }
  0x61   : > { %5845 = vst [vmem:[#allocation25_spill] sm:$0xff] %v4257_v19 }
  0x63   : > { %3475 = vmatmul.mubr.msk.f32.gmra.mrb[28].mxu0 %vm628_vm4, %v608_v20  ;;  %v4260_v20 = vrot.slane %v1037_v7, %v4177_v40 }
  0x64   : > { %3477 = vmatprep.mubr.msk.f32.mxu0 %vm3889_vm3, %v5705_v5 }
  0x65   : > { %5846 = vst [vmem:[#allocation26_spill] sm:$0xff] %v4260_v20 }
  0x67   : > { %3478 = vmatmul.mubr.msk.f32.gmra.mrb[30].mxu0 %vm628_vm4, %v609_v21  ;;  %v1038_v21 = vld [vmem:[%s5829_s5 + $0x18] sm:$0xff] }
  0x68   : > { %3480 = vmatprep.mubr.msk.f32.mxu0 %vm3889_vm3, %v5705_v5  ;;  %v4286_v31 = vrot.slane %v1038_v21, %v4175_v39  ;;  %v4289_v33 = vrot.slane %v1038_v21, %v4177_v40 }
  0x6a   : > { %5853 = vst [vmem:[#allocation33_spill] sm:$0xff] %v4286_v31  ;;  %5854 = vst [vmem:[#allocation34_spill] sm:$0xff] %v4289_v33 }
  0x6b   : > { %3481 = vmatmul.mubr.msk.f32.gmra.mrb[32].mxu0 %vm628_vm4, %v610_v22  ;;  %v4267_v22 = vrot.slane %v1037_v7, %v4182_v43 }
  0x6c   : > { %3483 = vmatprep.mubr.msk.f32.mxu0 %vm3889_vm3, %v5705_v5 }
  0x6d   : > { %5847 = vst [vmem:[#allocation27_spill] sm:$0xff] %v4267_v22 }
  0x6f   : > { %3484 = vmatmul.mubr.msk.f32.gmra.mrb[34].mxu0 %vm628_vm4, %v611_v23  ;;  %v4270_v23 = vrot.slane %v1037_v7, %v4184_v44 }
  0x70   : > { %3486 = vmatprep.mubr.msk.f32.mxu0 %vm3889_vm3, %v5705_v5 }
  0x71   : > { %5848 = vst [vmem:[#allocation28_spill] sm:$0xff] %v4270_v23 }
  0x73   : > { %3487 = vmatmul.mubr.msk.f32.gmra.mrb[36].mxu0 %vm628_vm4, %v612_v24  ;;  %v4273_v24 = vrot.slane %v1037_v7, %v4186_v45 }
  0x74   : > { %3489 = vmatprep.mubr.msk.f32.mxu0 %vm3889_vm3, %v5705_v5 }
  0x75   : > { %5849 = vst [vmem:[#allocation29_spill] sm:$0xff] %v4273_v24 }
  0x77   : > { %3490 = vmatmul.mubr.msk.f32.gmra.mrb[38].mxu0 %vm628_vm4, %v613_v25  ;;  %v4276_v25 = vrot.slane %v1037_v7, %v4188_v46 }
  0x78   : > { %3492 = vmatprep.mubr.msk.f32.mxu0 %vm3889_vm3, %v5705_v5 }
  0x79   : > { %5850 = vst [vmem:[#allocation30_spill] sm:$0xff] %v4276_v25 }
  0x7b   : > { %3493 = vmatmul.mubr.msk.f32.gmra.mrb[40].mxu0 %vm628_vm4, %v614_v26 }
  0x7c   : > { %3495 = vmatprep.mubr.msk.f32.mxu0 %vm3889_vm3, %v5705_v5 }
  0x7f   : > { %3496 = vmatmul.mubr.msk.f32.gmra.mrb[42].mxu0 %vm628_vm4, %v615_v27 }
  0x80   : > { %3498 = vmatprep.mubr.msk.f32.mxu0 %vm3889_vm3, %v5705_v5 }
  0x83   : > { %3499 = vmatmul.mubr.msk.f32.gmra.mrb[44].mxu0 %vm628_vm4, %v616_v28  ;;  %v4280_v28 = vrot.slane %v1037_v7, %v4191_v49 }
  0x84   : > { %3501 = vmatprep.mubr.msk.f32.mxu0 %vm3889_vm3, %v5705_v5 }
  0x85   : > { %5851 = vst [vmem:[#allocation31_spill] sm:$0xff] %v4280_v28 }
  0x87   : > { %3502 = vmatmul.mubr.msk.f32.gmra.mrb[46].mxu0 %vm628_vm4, %v617_v29  ;;  %v4283_v29 = vrot.slane %v1037_v7, %v4194_v51 }
  0x88   : > { %3504 = vmatprep.mubr.msk.f32.mxu0 %vm3889_vm3, %v5705_v5 }
  0x89   : > { %5852 = vst [vmem:[#allocation32_spill] sm:$0xff] %v4283_v29 }
  0x8b   : > { %3505 = vmatmul.mubr.msk.f32.gmra.mrb[48].mxu0 %vm628_vm4, %v618_v30 }
  0x8c   : > { %3573 = vmatprep.mubr.msk.f32.mxu0 %vm3889_vm3, %v5705_v5 }
  0xfe   : > { %v774_v34 = vpop.f32.mrb[0].mxu0 }
  0xff   : > { %v775_v36 = vadd.f32 %v4166_v32, %v774_v34  ;;  %v3434_v37 = vpop.f32.mrb[1].mxu0  ;;  %v4292_v34 = vrot.slane %v1038_v21, %v4182_v43 }
 0x100   : > { %v1039_v37 = vld [vmem:[%s5829_s5 + $0x20] sm:$0xff] }
 0x101   : > { %vm899_vm6 = vcmp.ge.f32.partialorder %v775_v36, 0.0  ;;  %v930_v38 = vmul.f32 %v4171_v35, %v775_v36  ;;  %5855 = vst [vmem:[#allocation35_spill] sm:$0xff] %v4292_v34  ;;  %v4318_v7 = vrot.slane %v1039_v37, %v4175_v39 }
 0x102   : > { %v779_v42 = vpop.f32.mrb[2].mxu0 }
 0x103   : > { %v955_v47 = vsel %vm899_vm6, %v775_v36, %v930_v38  ;;  %v780_v48 = vadd.f32 %v4166_v32, %v779_v42  ;;  %v3437_v50 = vpop.f32.mrb[3].mxu0  ;;  %v4295_v36 = vrot.slane %v1038_v21, %v4184_v44  ;;  %5861 = vst [vmem:[#allocation41_spill] sm:$0xff] %v4318_v7 }
 0x104   : > { %981 = vst.msk [vmem:[#allocation2] sm:$0xff] %vm980_vm5, %v955_v47  ;;  %v4302_v50 = vrot.slane %v1038_v21, %v4186_v45 }
 0x105   : > { %vm900_vm9 = vcmp.ge.f32.partialorder %v780_v48, 0.0  ;;  %v931_v53 = vmul.f32 %v4171_v35, %v780_v48  ;;  %5856 = vst [vmem:[#allocation36_spill] sm:$0xff] %v4295_v36 }
 0x106   : > { %v784_v60 = vpop.f32.mrb[4].mxu0  ;;  %5857 = vst [vmem:[#allocation37_spill] sm:$0xff] %v4302_v50 }
 0x107   : > { %v956_v61 = vsel %vm900_vm9, %v780_v48, %v931_v53  ;;  %v785_v63 = vadd.f32 %v4166_v32, %v784_v60  ;;  %v3440_v0 = vpop.f32.mrb[5].mxu0  ;;  %v4305_v53 = vrot.slane %v1038_v21, %v4188_v46 }
 0x108   : > { %983 = vst.msk [vmem:[#allocation2 + $0x8] sm:$0x3f] %vm982_vm7, %v956_v61 }
 0x109   : > { %986 = vst.msk [vmem:[#allocation2 + $0xa] sm:$0xc0] %vm985_vm8, %v956_v61  ;;  %vm901_vm12 = vcmp.ge.f32.partialorder %v785_v63, 0.0  ;;  %v932_v8 = vmul.f32 %v4171_v35, %v785_v63  ;;  %5858 = vst [vmem:[#allocation38_spill] sm:$0xff] %v4305_v53  ;;  %v4312_v61 = vrot.slane %v1038_v21, %v4191_v49 }
 0x10a   : > { %v789_v11 = vpop.f32.mrb[6].mxu0 }
 0x10b   : > { %v957_v16 = vsel %vm901_vm12, %v785_v63, %v932_v8  ;;  %v790_v17 = vadd.f32 %v4166_v32, %v789_v11  ;;  %v3443_v18 = vpop.f32.mrb[7].mxu0  ;;  %v1042_v26 = vld [vmem:[#allocation2] sm:$0xff]  ;;  %5859 = vst [vmem:[#allocation39_spill] sm:$0xff] %v4312_v61  ;;  %v4315_v63 = vrot.slane %v1038_v21, %v4194_v51  ;;  %v4321_v8 = vrot.slane %v1039_v37, %v4177_v40 }
 0x10c   : > { %987 = vst.msk [vmem:[#allocation2 + $0x12] sm:$0xff] %vm980_vm5, %v957_v16  ;;  %v1054_v55 = vmul.f32 %v4197_v52, %v1042_v26  ;;  %v4324_v11 = vrot.slane %v1039_v37, %v4182_v43  ;;  %v4327_v16 = vrot.slane %v1039_v37, %v4184_v44 }
 0x10d   : > { %vm902_vm13 = vcmp.ge.f32.partialorder %v790_v17, 0.0  ;;  %v933_v27 = vmul.f32 %v4171_v35, %v790_v17  ;;  %5860 = vst [vmem:[#allocation40_spill] sm:$0xff] %v4315_v63  ;;  %5862 = vst [vmem:[#allocation42_spill] sm:$0xff] %v4321_v8 }
 0x10e   : > { %v794_v30 = vpop.f32.mrb[8].mxu0  ;;  %5863 = vst [vmem:[#allocation43_spill] sm:$0xff] %v4324_v11  ;;  %5864 = vst [vmem:[#allocation44_spill] sm:$0xff] %v4327_v16 }
 0x10f   : > { %v1070_v38 = vld [vmem:[#allocation2 + $0x1] sm:$0xff]  ;;  %v958_v42 = vsel %vm902_vm13, %v790_v17, %v933_v27  ;;  %v795_v47 = vadd.f32 %v4166_v32, %v794_v30  ;;  %v3446_v48 = vpop.f32.mrb[9].mxu0 }
 0x110   : > { %v1098_v41 = vld [vmem:[#allocation2 + $0x2] sm:$0xff]  ;;  %v1082_v60 = vmul.f32 %v4201_v54, %v1070_v38  ;;  %989 = vst.msk [vmem:[#allocation2 + $0x1a] sm:$0xf] %vm988_vm10, %v958_v42 }
 0x111   : > { %992 = vst.msk [vmem:[#allocation2 + $0x1c] sm:$0xf0] %vm991_vm11, %v958_v42  ;;  %v1126_v0 = vld [vmem:[#allocation2 + $0x3] sm:$0xff]  ;;  %v1110_v18 = vmul.f32 %v4207_v56, %v1098_v41  ;;  %vm903_vm0 = vcmp.ge.f32.partialorder %v795_v47, 0.0  ;;  %v934_v26 = vmul.f32 %v4171_v35, %v795_v47  ;;  %v4343_v41 = vrot.slane %v1039_v37, %v4188_v46 }
 0x112   : > { %v1090_v17 = vadd.f32 %v1082_v60, %v1054_v55  ;;  %v1154_v21 = vld [vmem:[#allocation2 + $0x4] sm:$0xff]  ;;  %v799_v27 = vpop.f32.mrb[10].mxu0  ;;  %v4340_v55 = vrot.slane %v1039_v37, %v4186_v45  ;;  %v4346_v60 = vrot.slane %v1039_v37, %v4191_v49  ;;  %v1138_v16 = vmul.f32 %v4210_v57, %v1126_v0 }
 0x113   : > { %v4334_v30 = vld [vmem:[%s5829_s5 + $0x28] sm:$0xff]  ;;  %v1043_v38 = vld [vmem:[#allocation2 + $0x10] sm:$0xff]  ;;  %v800_v5 = vadd.f32 %v4166_v32, %v799_v27  ;;  %v3449_v2 = vpop.f32.mrb[11].mxu0  ;;  %5866 = vst [vmem:[#allocation46_spill] sm:$0xff] %v4343_v41  ;;  %v959_v27 = vsel %vm903_vm0, %v795_v47, %v934_v26  ;;  %v1166_v0 = vmul.f32 %v4213_v58, %v1154_v21 }
 0x114   : > { %v1071_v42 = vld [vmem:[#allocation2 + $0x11] sm:$0xff]  ;;  %5865 = vst [vmem:[#allocation45_spill] sm:$0xff] %v4340_v55  ;;  %5867 = vst [vmem:[#allocation47_spill] sm:$0xff] %v4346_v60  ;;  %v1118_v4 = vadd.f32 %v1110_v18, %v1090_v17  ;;  %v1182_v11 = vld [vmem:[#allocation2 + $0x5] sm:$0xff]  ;;  %v1055_v8 = vmul.f32 %v4197_v52, %v1043_v38  ;;  %v4353_v2 = vrot.slane %v1039_v37, %v4194_v51 }
 0x115   : > { %v4336_v48 = vld [vmem:[#allocation2 + $0x12] sm:$0xff]  ;;  %v1083_v7 = vmul.f32 %v4201_v54, %v1071_v42  ;;  %v4357_v55 = vrot.slane %v4334_v30, %v4175_v39  ;;  %v4361_v60 = vrot.slane %v4334_v30, %v4177_v40  ;;  %993 = vst.msk [vmem:[#allocation2 + $0x24] sm:$0xff] %vm980_vm5, %v959_v27  ;;  %v1194_v37 = vmul.f32 %v4216_v59, %v1182_v11  ;;  %v1210_v26 = vld [vmem:[#allocation2 + $0x6] sm:$0xff] }
 0x116   : > { %5868 = vst [vmem:[#allocation48_spill] sm:$0xff] %v4353_v2  ;;  %v1146_v17 = vadd.f32 %v1138_v16, %v1118_v4  ;;  %v1111_v41 = vmul.f32 %v4207_v56, %v4336_v48  ;;  %v804_v47 = vpop.f32.mrb[12].mxu0  ;;  %v4372_v4 = vrot.slane %v4334_v30, %v4182_v43  ;;  %vm904_vm1 = vcmp.ge.f32.partialorder %v800_v5, 0.0 }
 0x117   : > { %5869 = vst [vmem:[#allocation49_spill] sm:$0xff] %v4357_v55  ;;  %5870 = vst [vmem:[#allocation50_spill] sm:$0xff] %v4361_v60  ;;  %v1091_v18 = vadd.f32 %v1083_v7, %v1055_v8  ;;  %v1127_v2 = vld [vmem:[#allocation2 + $0x13] sm:$0xff]  ;;  %v935_v55 = vmul.f32 %v4171_v35, %v800_v5  ;;  %v805_v40 = vadd.f32 %v4166_v32, %v804_v47  ;;  %v3452_v60 = vpop.f32.mrb[13].mxu0 }
 0x118   : > { %v1155_v39 = vld [vmem:[#allocation2 + $0x14] sm:$0xff]  ;;  %5871 = vst [vmem:[#allocation51_spill] sm:$0xff] %v4372_v4  ;;  %v1174_v7 = vadd.f32 %v1166_v0, %v1146_v17  ;;  %v1139_v16 = vmul.f32 %v4210_v57, %v1127_v2  ;;  %v4377_v11 = vrot.slane %v4334_v30, %v4184_v44  ;;  %v4381_v27 = vrot.slane %v4334_v30, %v4186_v45 }
 0x119   : > { %v1119_v8 = vadd.f32 %v1111_v41, %v1091_v18  ;;  %v1183_v21 = vld [vmem:[#allocation2 + $0x15] sm:$0xff]  ;;  %v4385_v60 = vrot.slane %v4334_v30, %v4188_v46  ;;  %v4389_v43 = vrot.slane %v4334_v30, %v4191_v49  ;;  %v1222_v17 = vmul.f32 %v4219_v62, %v1210_v26 }
 0x11a   : > { %5872 = vst [vmem:[#allocation52_spill] sm:$0xff] %v4377_v11  ;;  %5873 = vst [vmem:[#allocation53_spill] sm:$0xff] %v4381_v27  ;;  %v1202_v41 = vadd.f32 %v1194_v37, %v1174_v7  ;;  %v1167_v18 = vmul.f32 %v4213_v58, %v1155_v39  ;;  %v1211_v44 = vld [vmem:[#allocation2 + $0x16] sm:$0xff]  ;;  %v809_v47 = vpop.f32.mrb[14].mxu0  ;;  %v960_v11 = vsel %vm904_vm1, %v800_v5, %v935_v55  ;;  %vm905_vm6 = vcmp.ge.f32.partialorder %v805_v40, 0.0 }
 0x11b   : > { %5874 = vst [vmem:[#allocation54_spill] sm:$0xff] %v4385_v60  ;;  %5875 = vst [vmem:[#allocation55_spill] sm:$0xff] %v4389_v43  ;;  %v1147_v0 = vadd.f32 %v1139_v16, %v1119_v8  ;;  %v936_v45 = vmul.f32 %v4171_v35, %v805_v40  ;;  %v810_v27 = vadd.f32 %v4166_v32, %v809_v47  ;;  %v3455_v46 = vpop.f32.mrb[15].mxu0 }
 0x11c   : > { %v1230_v60 = vadd.f32 %v1222_v17, %v1202_v41  ;;  %v1250_v4 = vmul.f32 %v4225_v1, %v1043_v38  ;;  %v1195_v37 = vmul.f32 %v4216_v59, %v1183_v21  ;;  %995 = vst.msk [vmem:[#allocation2 + $0x2c] sm:$0x3] %vm994_vm14, %v960_v11  ;;  %v1278_v26 = vmul.f32 %v4228_v3, %v1071_v42  ;;  %v1044_v55 = vld [vmem:[#allocation2 + $0x20] sm:$0xff] }
 0x11d   : > { %v1175_v49 = vadd.f32 %v1167_v18, %v1147_v0  ;;  %998 = vst.msk [vmem:[#allocation2 + $0x2e] sm:$0xfc] %vm997_vm15, %v960_v11  ;;  %v1223_v5 = vmul.f32 %v4219_v62, %v1211_v44  ;;  %v1072_v7 = vld [vmem:[#allocation2 + $0x21] sm:$0xff]  ;;  %v961_v16 = vsel %vm905_vm6, %v805_v40, %v936_v45  ;;  %v4403_v41 = vrot.slane %v4334_v30, %v4194_v51 }
 0x11e   : > { %v1100_v8 = vld [vmem:[#allocation2 + $0x22] sm:$0xff]  ;;  %v1258_v38 = vadd.f32 %v1250_v4, %v1230_v60  ;;  %v1056_v0 = vmul.f32 %v4197_v52, %v1044_v55  ;;  %v1084_v18 = vmul.f32 %v4201_v54, %v1072_v7  ;;  %999 = vst.msk [vmem:[#allocation2 + $0x36] sm:$0xff] %vm980_vm5, %v961_v16  ;;  %v4408_v42 = vpop.f32.mrb[16].mxu0  ;;  %v1306_v11 = vmul.f32 %v4231_v6, %v4336_v48 }
 0x11f   : > { %5876 = vst [vmem:[#allocation56_spill] sm:$0xff] %v4403_v41  ;;  %v1203_v17 = vadd.f32 %v1195_v37, %v1175_v49  ;;  %v1128_v47 = vld [vmem:[#allocation2 + $0x23] sm:$0xff]  ;;  %v1112_v40 = vmul.f32 %v4207_v56, %v1100_v8  ;;  %vm906_vm9 = vcmp.ge.f32.partialorder %v810_v27, 0.0  ;;  %v937_v51 = vmul.f32 %v4171_v35, %v810_v27  ;;  %v3458_v30 = vpop.f32.mrb[17].mxu0 }
 0x120   : > { %v1286_v4 = vadd.f32 %v1278_v26, %v1258_v38  ;;  %v1092_v45 = vadd.f32 %v1084_v18, %v1056_v0  ;;  %v1156_v46 = vld [vmem:[#allocation2 + $0x24] sm:$0xff]  ;;  %v1251_v49 = vmul.f32 %v4225_v1, %v1044_v55  ;;  %v1334_v37 = vmul.f32 %v4238_v9, %v1127_v2 }
 0x121   : > { %v1231_v60 = vadd.f32 %v1223_v5, %v1203_v17  ;;  %v1362_v16 = vmul.f32 %v4241_v10, %v1155_v39  ;;  %v1390_v41 = vmul.f32 %v4244_v12, %v1183_v21  ;;  %v1140_v48 = vmul.f32 %v4210_v57, %v1128_v47 }
 0x122   : > { %v1314_v43 = vadd.f32 %v1306_v11, %v1286_v4  ;;  %v1120_v63 = vadd.f32 %v1112_v40, %v1092_v45  ;;  %v1279_v53 = vmul.f32 %v4228_v3, %v1072_v7  ;;  %v4420_v30 = vpop.f32.mrb[18].mxu0  ;;  %v1418_v26 = vmul.f32 %v4247_v13, %v1211_v44 }
 0x123   : > { %v1259_v61 = vadd.f32 %v1251_v49, %v1231_v60  ;;  %5877 = vst [vmem:[#allocation57_spill] sm:$0xff] %v4420_v30  ;;  %v1168_v5 = vmul.f32 %v4213_v58, %v1156_v46  ;;  %v1307_v38 = vmul.f32 %v4231_v6, %v1100_v8  ;;  %v1184_v2 = vld [vmem:[#allocation2 + $0x25] sm:$0xff]  ;;  %v962_v39 = vsel %vm906_vm9, %v810_v27, %v937_v51  ;;  %v3461_v17 = vpop.f32.mrb[19].mxu0 }
 0x124   : > { %v1342_v21 = vadd.f32 %v1334_v37, %v1314_v43  ;;  %v1148_v0 = vadd.f32 %v1140_v48, %v1120_v63  ;;  %v1335_v11 = vmul.f32 %v4238_v9, %v1128_v47  ;;  %1001 = vst.msk [vmem:[#allocation2 + $0x40] sm:$0xff] %vm980_vm5, %v962_v39  ;;  %v1363_v40 = vmul.f32 %v4241_v10, %v1156_v46  ;;  %v1212_v45 = vld [vmem:[#allocation2 + $0x26] sm:$0xff] }
 0x125   : > { %v1287_v18 = vadd.f32 %v1279_v53, %v1259_v61  ;;  %v1446_v4 = vmul.f32 %v4250_v14, %v1044_v55  ;;  %v1474_v44 = vmul.f32 %v4253_v15, %v1072_v7  ;;  %v1502_v60 = vmul.f32 %v4257_v19, %v1100_v8  ;;  %v4432_v49 = vld [vmem:[#allocation2 + $0x30] sm:$0xff] }
 0x126   : > { %v4434_v27 = vld [vmem:[#allocation2 + $0x31] sm:$0xff]  ;;  %v1370_v43 = vadd.f32 %v1362_v16, %v1342_v21  ;;  %v1176_v63 = vadd.f32 %v1168_v5, %v1148_v0  ;;  %v1196_v61 = vmul.f32 %v4216_v59, %v1184_v2  ;;  %v4439_v37 = vpop.f32.mrb[20].mxu0  ;;  %v1530_v55 = vmul.f32 %v4260_v20, %v1128_v47 }
 0x127   : > { %v1315_v53 = vadd.f32 %v1307_v38, %v1287_v18  ;;  %v4437_v51 = vld [vmem:[#allocation2 + $0x32] sm:$0xff]  ;;  %5878 = vst [vmem:[#allocation58_spill] sm:$0xff] %v4439_v37  ;;  %v1558_v7 = vmul.f32 %v4267_v22, %v1156_v46  ;;  %v1057_v8 = vmul.f32 %v4197_v52, %v4432_v49  ;;  %v1085_v48 = vmul.f32 %v4201_v54, %v4434_v27  ;;  %v3464_v39 = vpop.f32.mrb[21].mxu0 }
 0x128   : > { %v1398_v16 = vadd.f32 %v1390_v41, %v1370_v43  ;;  %v1204_v38 = vadd.f32 %v1196_v61, %v1176_v63  ;;  %v1224_v17 = vmul.f32 %v4219_v62, %v1212_v45  ;;  %v1129_v21 = vld [vmem:[#allocation2 + $0x33] sm:$0xff]  ;;  %v1391_v0 = vmul.f32 %v4244_v12, %v1184_v2 }
 0x129   : > { %v1343_v5 = vadd.f32 %v1335_v11, %v1315_v53  ;;  %v1419_v18 = vmul.f32 %v4247_v13, %v1212_v45  ;;  %v1093_v47 = vadd.f32 %v1085_v48, %v1057_v8  ;;  %v1113_v46 = vmul.f32 %v4207_v56, %v4437_v51  ;;  %v1157_v30 = vld [vmem:[#allocation2 + $0x34] sm:$0xff] }
 0x12a   : > { %v1426_v50 = vadd.f32 %v1418_v26, %v1398_v16  ;;  %v1232_v37 = vadd.f32 %v1224_v17, %v1204_v38  ;;  %v1185_v54 = vld [vmem:[#allocation2 + $0x35] sm:$0xff]  ;;  %v1252_v41 = vmul.f32 %v4225_v1, %v4432_v49  ;;  %v4454_v11 = vpop.f32.mrb[22].mxu0  ;;  %v1586_v43 = vmul.f32 %v4270_v23, %v1184_v2 }
 0x12b   : > { %v1371_v52 = vadd.f32 %v1363_v40, %v1343_v5  ;;  %v1614_v63 = vmul.f32 %v4273_v24, %v1212_v45  ;;  %v1121_v53 = vadd.f32 %v1113_v46, %v1093_v47  ;;  %v1141_v61 = vmul.f32 %v4210_v57, %v1129_v21  ;;  %v3467_v8 = vpop.f32.mrb[23].mxu0  ;;  %v1213_v26 = vld [vmem:[#allocation2 + $0x36] sm:$0xff] }
 0x12c   : > { %v1454_v48 = vadd.f32 %v1446_v4, %v1426_v50  ;;  %v1260_v40 = vadd.f32 %v1252_v41, %v1232_v37  ;;  %v1280_v16 = vmul.f32 %v4228_v3, %v4434_v27  ;;  %v1169_v38 = vmul.f32 %v4213_v58, %v1157_v30 }
 0x12d   : > { %v1399_v39 = vadd.f32 %v1391_v0, %v1371_v52  ;;  %v1149_v5 = vadd.f32 %v1141_v61, %v1121_v53  ;;  %v1197_v17 = vmul.f32 %v4216_v59, %v1185_v54  ;;  %v1308_v2 = vmul.f32 %v4231_v6, %v4437_v51 }
 0x12e   : > { %v1482_v45 = vadd.f32 %v1474_v44, %v1454_v48  ;;  %v1288_v46 = vadd.f32 %v1280_v16, %v1260_v40  ;;  %v1447_v50 = vmul.f32 %v4250_v14, %v4432_v49  ;;  %v4467_v52 = vpop.f32.mrb[24].mxu0  ;;  %v1225_v37 = vmul.f32 %v4219_v62, %v1213_v26 }
 0x12f   : > { %v1427_v47 = vadd.f32 %v1419_v18, %v1399_v39  ;;  %v1177_v4 = vadd.f32 %v1169_v38, %v1149_v5  ;;  %v1336_v0 = vmul.f32 %v4238_v9, %v1129_v21  ;;  %v1364_v41 = vmul.f32 %v4241_v10, %v1157_v30  ;;  %v3470_v53 = vpop.f32.mrb[25].mxu0 }
 0x130   : > { %v1510_v61 = vadd.f32 %v1502_v60, %v1482_v45  ;;  %v1316_v8 = vadd.f32 %v1308_v2, %v1288_v46  ;;  %v1475_v44 = vmul.f32 %v4253_v15, %v4434_v27  ;;  %v1392_v48 = vmul.f32 %v4244_v12, %v1185_v54 }
 0x131   : > { %v1455_v59 = vadd.f32 %v1447_v50, %v1427_v47  ;;  %v1205_v18 = vadd.f32 %v1197_v17, %v1177_v4  ;;  %v1420_v39 = vmul.f32 %v4247_v13, %v1213_v26  ;;  %v1503_v40 = vmul.f32 %v4257_v19, %v4437_v51 }
 0x132   : > { %v1538_v16 = vadd.f32 %v1530_v55, %v1510_v61  ;;  %v1344_v5 = vadd.f32 %v1336_v0, %v1316_v8  ;;  %v1531_v10 = vmul.f32 %v4260_v20, %v1129_v21  ;;  %v839_v53 = vpop.f32.mrb[26].mxu0  ;;  %v1559_v60 = vmul.f32 %v4267_v22, %v1157_v30 }
 0x133   : > { %v1483_v38 = vadd.f32 %v1475_v44, %v1455_v59  ;;  %v1587_v2 = vmul.f32 %v4270_v23, %v1185_v54  ;;  %v1615_v45 = vmul.f32 %v4273_v24, %v1213_v26  ;;  %v1642_v17 = vmul.f32 %v4276_v25, %v4432_v49  ;;  %v3473_v47 = vpop.f32.mrb[27].mxu0 }
 0x134   : > { %v1566_v46 = vadd.f32 %v1558_v7, %v1538_v16  ;;  %v1372_v50 = vadd.f32 %v1364_v41, %v1344_v5  ;;  %v815_v55 = vadd.f32 %v4166_v32, %v4408_v42  ;;  %v4486_v59 = vadd.f32 %v1225_v37, %v1205_v18  ;;  %v4503_v37 = vld [vmem:[#allocation2 + $0x40] sm:$0xff] }
 0x135   : > { %v1511_v4 = vadd.f32 %v1503_v40, %v1483_v38  ;;  %v1670_v0 = vmul.f32 %v4280_v28, %v4434_v27  ;;  %v1698_v61 = vmul.f32 %v4283_v29, %v4437_v51  ;;  %v1726_v8 = vmul.f32 %v4286_v31, %v1129_v21  ;;  %v5879_v51 = vld [vmem:[#allocation57_spill] sm:$0xff]  ;;  %v5880_v40 = vld [vmem:[#allocation58_spill] sm:$0xff] }
 0x136   : > { %v1594_v44 = vadd.f32 %v1586_v43, %v1566_v46  ;;  %v4494_v49 = vmul.f32 %v4289_v33, %v1157_v30  ;;  %vm907_vm12 = vcmp.ge.f32.partialorder %v815_v55, 0.0  ;;  %v844_v7 = vpop.f32.mrb[28].mxu0  ;;  %v4497_v41 = vmul.f32 %v4292_v34, %v1185_v54 }
 0x137   : > { %v1539_v24 = vadd.f32 %v1531_v10, %v1511_v4  ;;  %v4500_v42 = vmul.f32 %v4295_v36, %v1213_v26  ;;  %v938_v27 = vmul.f32 %v4171_v35, %v815_v55  ;;  %v820_v21 = vadd.f32 %v4166_v32, %v5879_v51  ;;  %v3476_v43 = vpop.f32.mrb[29].mxu0 }
 0x138   : > { %v1622_v10 = vadd.f32 %v1614_v63, %v1594_v44  ;;  %v1400_v18 = vadd.f32 %v1392_v48, %v1372_v50  ;;  %v825_v16 = vadd.f32 %v4166_v32, %v5880_v40  ;;  %v830_v26 = vadd.f32 %v4166_v32, %v4454_v11  ;;  %v5882_v43 = vld [vmem:[#allocation10_spill] sm:$0xff] }
 0x139   : > { %v1567_v30 = vadd.f32 %v1559_v60, %v1539_v24  ;;  %v963_v5 = vsel %vm907_vm12, %v815_v55, %v938_v27  ;;  %vm908_vm13 = vcmp.ge.f32.partialorder %v820_v21, 0.0  ;;  %v939_v54 = vmul.f32 %v4171_v35, %v820_v21 }
 0x13a   : > { %v1650_v47 = vadd.f32 %v1642_v17, %v1622_v10  ;;  %1002 = vst.msk [vmem:[#allocation2 + $0x48] sm:$0x3f] %vm982_vm7, %v963_v5  ;;  %v1253_v63 = vmul.f32 %v4225_v1, %v4503_v37  ;;  %vm909_vm0 = vcmp.ge.f32.partialorder %v825_v16, 0.0  ;;  %v849_v24 = vpop.f32.mrb[30].mxu0  ;;  %v940_v60 = vmul.f32 %v4171_v35, %v825_v16 }
 0x13b   : > { %v1595_v38 = vadd.f32 %v1587_v2, %v1567_v30  ;;  %1004 = vst.msk [vmem:[#allocation2 + $0x4a] sm:$0xc0] %vm985_vm8, %v963_v5  ;;  %v964_v48 = vsel %vm908_vm13, %v820_v21, %v939_v54  ;;  %vm910_vm1 = vcmp.ge.f32.partialorder %v830_v26, 0.0  ;;  %v941_v46 = vmul.f32 %v4171_v35, %v830_v26  ;;  %v3479_v50 = vpop.f32.mrb[31].mxu0 }
 0x13c   : > { %v1428_v4 = vadd.f32 %v1420_v39, %v1400_v18  ;;  %v1678_v11 = vadd.f32 %v1670_v0, %v1650_v47  ;;  %1005 = vst.msk [vmem:[#allocation2 + $0x52] sm:$0xff] %vm980_vm5, %v964_v48  ;;  %v835_v2 = vadd.f32 %v4166_v32, %v4467_v52  ;;  %v840_v17 = vadd.f32 %v4166_v32, %v839_v53 }
 0x13d   : > { %v1623_v55 = vadd.f32 %v1615_v45, %v1595_v38  ;;  %v965_v44 = vsel %vm909_vm0, %v825_v16, %v940_v60  ;;  %v966_v27 = vsel %vm910_vm1, %v830_v26, %v941_v46  ;;  %v845_v51 = vadd.f32 %v4166_v32, %v844_v7 }
 0x13e   : > { %v1706_v21 = vadd.f32 %v1698_v61, %v1678_v11  ;;  %1006 = vst.msk [vmem:[#allocation2 + $0x5a] sm:$0xf] %vm988_vm10, %v965_v44  ;;  %vm911_vm6 = vcmp.ge.f32.partialorder %v835_v2, 0.0  ;;  %v942_v39 = vmul.f32 %v4171_v35, %v835_v2  ;;  %v4528_v0 = vadd.f32 %v4166_v32, %v849_v24  ;;  %v854_v52 = vpop.f32.mrb[32].mxu0  ;;  %v5883_v24 = vld [vmem:[#allocation11_spill] sm:$0xff] }
 0x13f   : > { %1008 = vst.msk [vmem:[#allocation2 + $0x5c] sm:$0xf0] %vm991_vm11, %v965_v44  ;;  %vm912_vm9 = vcmp.ge.f32.partialorder %v840_v17, 0.0  ;;  %v943_v53 = vmul.f32 %v4171_v35, %v840_v17  ;;  %vm913_vm12 = vcmp.ge.f32.partialorder %v845_v51, 0.0  ;;  %v944_v45 = vmul.f32 %v4171_v35, %v845_v51  ;;  %v3482_v61 = vpop.f32.mrb[33].mxu0 }
 0x140   : > { %1009 = vst.msk [vmem:[#allocation2 + $0x64] sm:$0xff] %vm980_vm5, %v966_v27  ;;  %5881 = vst [vmem:[#allocation57_spill] sm:$0xff] %v4528_v0  ;;  %v1734_v7 = vadd.f32 %v1726_v8, %v1706_v21  ;;  %v1058_v10 = vmul.f32 %v5882_v43, %v4503_v37  ;;  %v1448_v18 = vmul.f32 %v4250_v14, %v4503_v37 }
 0x141   : > { %v967_v30 = vsel %vm911_vm6, %v835_v2, %v942_v39  ;;  %v1074_v40 = vld [vmem:[#allocation2 + $0x41] sm:$0xff]  ;;  %v1261_v54 = vadd.f32 %v1253_v63, %v4486_v59  ;;  %v1643_v26 = vmul.f32 %v4276_v25, %v4503_v37  ;;  %v968_v8 = vsel %vm912_vm9, %v840_v17, %v943_v53  ;;  %v5888_v53 = vld [vmem:[#allocation15_spill] sm:$0xff] }
 0x142   : > { %v4536_v16 = vld [vmem:[#allocation2 + $0x42] sm:$0xff]  ;;  %1010 = vst.msk [vmem:[#allocation2 + $0x6c] sm:$0x3] %vm994_vm14, %v967_v30  ;;  %v969_v38 = vsel %vm913_vm12, %v845_v51, %v944_v45  ;;  %v1762_v47 = vadd.f32 %v4494_v49, %v1734_v7  ;;  %v1086_v48 = vmul.f32 %v5883_v24, %v1074_v40  ;;  %v1456_v50 = vadd.f32 %v1448_v18, %v1428_v4  ;;  %v4556_v11 = vpop.f32.mrb[34].mxu0 }
 0x143   : > { %v4538_v5 = vld [vmem:[#allocation2 + $0x43] sm:$0xff]  ;;  %1012 = vst.msk [vmem:[#allocation2 + $0x6e] sm:$0xfc] %vm997_vm15, %v967_v30  ;;  %5885 = vst [vmem:[#allocation58_spill] sm:$0xff] %v4556_v11  ;;  %v1281_v49 = vmul.f32 %v4228_v3, %v1074_v40  ;;  %v1651_v17 = vadd.f32 %v1643_v26, %v1623_v55  ;;  %v4563_v44 = vmul.f32 %v4171_v35, %v4528_v0  ;;  %v3485_v27 = vpop.f32.mrb[35].mxu0 }
 0x144   : > { %v4548_v60 = vld [vmem:[#allocation2 + $0x44] sm:$0xff]  ;;  %1013 = vst.msk [vmem:[#allocation2 + $0x76] sm:$0xff] %vm980_vm5, %v968_v8  ;;  %1015 = vst.msk [vmem:[#allocation2 + $0x80] sm:$0xff] %vm980_vm5, %v969_v38  ;;  %v4566_v4 = vadd.f32 %v4166_v32, %v854_v52  ;;  %v1094_v51 = vadd.f32 %v1086_v48, %v1058_v10  ;;  %v1114_v21 = vmul.f32 %v4207_v56, %v4536_v16 }
 0x145   : > { %v4550_v46 = vld [vmem:[#allocation2 + $0x45] sm:$0xff]  ;;  %5886 = vst [vmem:[#allocation59_spill] sm:$0xff] %v4563_v44  ;;  %v1142_v39 = vmul.f32 %v4210_v57, %v4538_v5  ;;  %v1170_v55 = vmul.f32 %v4213_v58, %v4548_v60  ;;  %v1289_v45 = vadd.f32 %v1281_v49, %v1261_v54  ;;  %v1309_v32 = vmul.f32 %v4231_v6, %v4536_v16 }
 0x146   : > { %v5884_v59 = vld [vmem:[#allocation37_spill] sm:$0xff]  ;;  %5887 = vst [vmem:[#allocation60_spill] sm:$0xff] %v4566_v4  ;;  %v1198_v35 = vmul.f32 %v5888_v53, %v4550_v46  ;;  %v1122_v52 = vadd.f32 %v1114_v21, %v1094_v51  ;;  %v1337_v61 = vmul.f32 %v4238_v9, %v4538_v5  ;;  %v1476_v7 = vmul.f32 %v4253_v15, %v1074_v40  ;;  %v4584_v10 = vpop.f32.mrb[36].mxu0  ;;  %v5890_v26 = vld [vmem:[#allocation20_spill] sm:$0xff] }
 0x147   : > { %v1838_v63 = vmul.f32 %v5884_v59, %v4503_v37  ;;  %v4558_v2 = vld [vmem:[#allocation2 + $0x46] sm:$0xff]  ;;  %v1790_v37 = vadd.f32 %v4497_v41, %v1762_v47  ;;  %5889 = vst [vmem:[#allocation61_spill] sm:$0xff] %v4584_v10  ;;  %v1317_v30 = vadd.f32 %v1309_v32, %v1289_v45  ;;  %v1365_v54 = vmul.f32 %v5890_v26, %v4548_v60  ;;  %v3488_v38 = vpop.f32.mrb[37].mxu0 }
 0x148   : > { %v1226_v41 = vmul.f32 %v4219_v62, %v4558_v2  ;;  %v1393_v8 = vmul.f32 %v4244_v12, %v4550_v46  ;;  %v1150_v47 = vadd.f32 %v1142_v39, %v1122_v52  ;;  %v1484_v48 = vadd.f32 %v1476_v7, %v1456_v50  ;;  %v5893_v44 = vld [vmem:[#allocation29_spill] sm:$0xff] }
 0x149   : > { %v1818_v18 = vadd.f32 %v4500_v42, %v1790_v37  ;;  %v1504_v49 = vmul.f32 %v4257_v19, %v4536_v16  ;;  %v1671_v27 = vmul.f32 %v4280_v28, %v1074_v40  ;;  %v1345_v51 = vadd.f32 %v1337_v61, %v1317_v30  ;;  %v5892_v30 = vld [vmem:[#allocation38_spill] sm:$0xff] }
 0x14a   : > { %v1421_v21 = vmul.f32 %v4247_v13, %v4558_v2  ;;  %v1532_v42 = vmul.f32 %v4260_v20, %v4538_v5  ;;  %v1560_v37 = vmul.f32 %v4267_v22, %v4548_v60  ;;  %v1178_v45 = vadd.f32 %v1170_v55, %v1150_v47  ;;  %v4602_v39 = vpop.f32.mrb[38].mxu0 }
 0x14b   : > { %v1512_v32 = vadd.f32 %v1504_v49, %v1484_v48  ;;  %v1679_v38 = vadd.f32 %v1671_v27, %v1651_v17  ;;  %v1699_v50 = vmul.f32 %v4283_v29, %v4536_v16  ;;  %5891 = vst [vmem:[#allocation20_spill] sm:$0xff] %v4602_v39  ;;  %v1373_v52 = vadd.f32 %v1365_v54, %v1345_v51  ;;  %v3491_v11 = vpop.f32.mrb[39].mxu0  ;;  %v5894_v54 = vld [vmem:[#allocation39_spill] sm:$0xff]  ;;  %v1047_v51 = vld [vmem:[#allocation2 + $0x50] sm:$0xff] }
 0x14c   : > { %v1588_v61 = vmul.f32 %v4270_v23, %v4550_v46  ;;  %v1846_v7 = vadd.f32 %v1838_v63, %v1818_v18  ;;  %v1866_v10 = vmul.f32 %v5892_v30, %v1074_v40  ;;  %v1616_v0 = vmul.f32 %v5893_v44, %v4558_v2  ;;  %v1075_v39 = vld [vmem:[#allocation2 + $0x51] sm:$0xff] }
 0x14d   : > { %v1540_v4 = vadd.f32 %v1532_v42, %v1512_v32  ;;  %v1707_v55 = vadd.f32 %v1699_v50, %v1679_v38  ;;  %v1727_v17 = vmul.f32 %v4286_v31, %v4538_v5  ;;  %v1206_v47 = vadd.f32 %v1198_v35, %v1178_v45 }
 0x14e   : > { %v1401_v48 = vadd.f32 %v1393_v8, %v1373_v52  ;;  %v1874_v49 = vadd.f32 %v1866_v10, %v1846_v7  ;;  %v1894_v27 = vmul.f32 %v5894_v54, %v4536_v16  ;;  %v1755_v40 = vmul.f32 %v4289_v33, %v4548_v60  ;;  %v4617_v42 = vpop.f32.mrb[40].mxu0  ;;  %v5896_v10 = vld [vmem:[#allocation40_spill] sm:$0xff]  ;;  %v5897_v16 = vld [vmem:[#allocation41_spill] sm:$0xff] }
 0x14f   : > { %v1568_v63 = vadd.f32 %v1560_v37, %v1540_v4  ;;  %v1735_v18 = vadd.f32 %v1727_v17, %v1707_v55  ;;  %v1783_v11 = vmul.f32 %v4292_v34, %v4550_v46  ;;  %5895 = vst [vmem:[#allocation62_spill] sm:$0xff] %v4617_v42  ;;  %v1811_v35 = vmul.f32 %v4295_v36, %v4558_v2  ;;  %v4625_v4 = vld [vmem:[#allocation2 + $0x52] sm:$0xff]  ;;  %v3494_v37 = vpop.f32.mrb[41].mxu0 }
 0x150   : > { %v1902_v8 = vadd.f32 %v1894_v27, %v1874_v49  ;;  %v1922_v45 = vmul.f32 %v5896_v10, %v4538_v5  ;;  %v1950_v32 = vmul.f32 %v5897_v16, %v4548_v60  ;;  %v1059_v52 = vmul.f32 %v5882_v43, %v1047_v51  ;;  %v5898_v49 = vld [vmem:[#allocation42_spill] sm:$0xff]  ;;  %v5899_v5 = vld [vmem:[#allocation43_spill] sm:$0xff] }
 0x151   : > { %v1596_v38 = vadd.f32 %v1588_v61, %v1568_v63  ;;  %v1763_v50 = vadd.f32 %v1755_v40, %v1735_v18  ;;  %v1087_v7 = vmul.f32 %v5883_v24, %v1075_v39  ;;  %v1234_v55 = vadd.f32 %v1226_v41, %v1206_v47  ;;  %v4636_v63 = vld [vmem:[#allocation2 + $0x53] sm:$0xff] }
 0x152   : > { %v1429_v17 = vadd.f32 %v1421_v21, %v1401_v48  ;;  %v1930_v42 = vadd.f32 %v1922_v45, %v1902_v8  ;;  %v1978_v27 = vmul.f32 %v5898_v49, %v4550_v46  ;;  %v2006_v10 = vmul.f32 %v5899_v5, %v4558_v2  ;;  %v4645_v8 = vld [vmem:[#allocation2 + $0x55] sm:$0xff] }
 0x153   : > { %v1791_v36 = vadd.f32 %v1783_v11, %v1763_v50  ;;  %v1115_v60 = vmul.f32 %v4207_v56, %v4625_v4  ;;  %v1254_v61 = vmul.f32 %v4225_v1, %v1047_v51  ;;  %v1624_v18 = vadd.f32 %v1616_v0, %v1596_v38  ;;  %v4643_v11 = vld [vmem:[#allocation2 + $0x54] sm:$0xff]  ;;  %v5900_v50 = vld [vmem:[#allocation44_spill] sm:$0xff] }
 0x154   : > { %v1958_v40 = vadd.f32 %v1950_v32, %v1930_v42  ;;  %v1282_v41 = vmul.f32 %v4228_v3, %v1075_v39  ;;  %v1449_v21 = vmul.f32 %v4250_v14, %v1047_v51  ;;  %v1477_v47 = vmul.f32 %v4253_v15, %v1075_v39  ;;  %v4647_v45 = vld [vmem:[#allocation2 + $0x56] sm:$0xff] }
 0x155   : > { %v1644_v46 = vmul.f32 %v4276_v25, %v1047_v51  ;;  %v1672_v48 = vmul.f32 %v4280_v28, %v1075_v39  ;;  %v1095_v2 = vadd.f32 %v1087_v7, %v1059_v52  ;;  %v1839_v0 = vmul.f32 %v5884_v59, %v1047_v51  ;;  %v5901_v52 = vld [vmem:[#allocation45_spill] sm:$0xff] }
 0x156   : > { %v1986_v37 = vadd.f32 %v1978_v27, %v1958_v40  ;;  %v1867_v42 = vmul.f32 %v5892_v30, %v1075_v39  ;;  %v1143_v32 = vmul.f32 %v4210_v57, %v4636_v63  ;;  %v1819_v38 = vadd.f32 %v1811_v35, %v1791_v36  ;;  %v4661_v30 = vpop.f32.mrb[42].mxu0 }
 0x157   : > { %v2034_v25 = vmul.f32 %v5900_v50, %v1047_v51  ;;  %v1123_v15 = vadd.f32 %v1115_v60, %v1095_v2  ;;  %v1262_v28 = vadd.f32 %v1254_v61, %v1234_v55  ;;  %v2062_v7 = vmul.f32 %v5901_v52, %v1075_v39  ;;  %5902 = vst [vmem:[#allocation63_spill] sm:$0xff] %v4661_v30  ;;  %v3497_v35 = vpop.f32.mrb[43].mxu0 }
 0x158   : > { %v1171_v14 = vmul.f32 %v4213_v58, %v4643_v11  ;;  %v1199_v27 = vmul.f32 %v5888_v53, %v4645_v8  ;;  %v1227_v40 = vmul.f32 %v4219_v62, %v4647_v45  ;;  %v1310_v36 = vmul.f32 %v4231_v6, %v4625_v4  ;;  %v4671_v2 = vpop.f32.mrb[44].mxu0 }
 0x159   : > { %v1151_v59 = vadd.f32 %v1143_v32, %v1123_v15  ;;  %v1290_v3 = vadd.f32 %v1282_v41, %v1262_v28  ;;  %v1457_v51 = vadd.f32 %v1449_v21, %v1429_v17  ;;  %v2014_v55 = vadd.f32 %v2006_v10, %v1986_v37  ;;  %5903 = vst [vmem:[#allocation64_spill] sm:$0xff] %v4671_v2  ;;  %v3500_v17 = vpop.f32.mrb[45].mxu0 }
 0x15a   : > { %v1338_v39 = vmul.f32 %v4238_v9, %v4636_v63  ;;  %v1366_v60 = vmul.f32 %v5890_v26, %v4643_v11  ;;  %v1394_v61 = vmul.f32 %v4244_v12, %v4645_v8  ;;  %v1505_v41 = vmul.f32 %v4257_v19, %v4625_v4  ;;  %v4687_v17 = vpop.f32.mrb[46].mxu0 }
 0x15b   : > { %v1179_v30 = vadd.f32 %v1171_v14, %v1151_v59  ;;  %v1318_v15 = vadd.f32 %v1310_v36, %v1290_v3  ;;  %v1485_v28 = vadd.f32 %v1477_v47, %v1457_v51  ;;  %v1422_v10 = vmul.f32 %v4247_v13, %v4647_v45  ;;  %5904 = vst [vmem:[#allocation65_spill] sm:$0xff] %v4687_v17 }
 0x15c   : > { %v1533_v21 = vmul.f32 %v4260_v20, %v4636_v63  ;;  %v1561_v37 = vmul.f32 %v4267_v22, %v4643_v11  ;;  %v1652_v32 = vadd.f32 %v1644_v46, %v1624_v18  ;;  %v1589_v3 = vmul.f32 %v4270_v23, %v4645_v8 }
 0x15d   : > { %v1346_v35 = vadd.f32 %v1338_v39, %v1318_v15  ;;  %v1513_v12 = vadd.f32 %v1505_v41, %v1485_v28  ;;  %v1617_v14 = vmul.f32 %v5893_v44, %v4647_v45  ;;  %v1207_v59 = vadd.f32 %v1199_v27, %v1179_v30  ;;  %v3503_v39 = vpop.f32.mrb[47].mxu0 }
 0x15e   : > { %v1680_v47 = vadd.f32 %v1672_v48, %v1652_v32  ;;  %v1700_v36 = vmul.f32 %v4283_v29, %v4625_v4  ;;  %v1847_v51 = vadd.f32 %v1839_v0, %v1819_v38  ;;  %v1728_v18 = vmul.f32 %v4286_v31, %v4636_v63  ;;  %v5907_v39 = vld [vmem:[#allocation46_spill] sm:$0xff] }
 0x15f   : > { %v1374_v2 = vadd.f32 %v1366_v60, %v1346_v35  ;;  %v1541_v13 = vadd.f32 %v1533_v21, %v1513_v12  ;;  %v1756_v46 = vmul.f32 %v4289_v33, %v4643_v11  ;;  %v1784_v30 = vmul.f32 %v4292_v34, %v4645_v8  ;;  %v5905_v60 = vld [vmem:[#allocation36_spill] sm:$0xff] }
 0x160   : > { %v1708_v15 = vadd.f32 %v1700_v36, %v1680_v47  ;;  %v1875_v48 = vadd.f32 %v1867_v42, %v1847_v51  ;;  %v1895_v27 = vmul.f32 %v5894_v54, %v4625_v4  ;;  %v1812_v12 = vmul.f32 %v5905_v60, %v4647_v45  ;;  %v5906_v35 = vld [vmem:[#allocation40_spill] sm:$0xff] }
 0x161   : > { %v1402_v0 = vadd.f32 %v1394_v61, %v1374_v2  ;;  %v1569_v38 = vadd.f32 %v1561_v37, %v1541_v13  ;;  %v2042_v28 = vadd.f32 %v2034_v25, %v2014_v55  ;;  %v4699_v41 = vadd.f32 %v1227_v40, %v1207_v59  ;;  %v1048_v55 = vld [vmem:[#allocation2 + $0x60] sm:$0xff] }
 0x162   : > { %v1736_v21 = vadd.f32 %v1728_v18, %v1708_v15  ;;  %v1903_v32 = vadd.f32 %v1895_v27, %v1875_v48  ;;  %v1923_v47 = vmul.f32 %v5906_v35, %v4636_v63  ;;  %v1951_v42 = vmul.f32 %v5897_v16, %v4643_v11  ;;  %v1076_v37 = vld [vmem:[#allocation2 + $0x61] sm:$0xff] }
 0x163   : > { %v1597_v36 = vadd.f32 %v1589_v3, %v1569_v38  ;;  %v2070_v51 = vadd.f32 %v2062_v7, %v2042_v28  ;;  %v2090_v61 = vmul.f32 %v5907_v39, %v4625_v4  ;;  %v1979_v25 = vmul.f32 %v5898_v49, %v4645_v8  ;;  %v5908_v3 = vld [vmem:[#allocation47_spill] sm:$0xff]  ;;  %v5909_v7 = vld [vmem:[#allocation48_spill] sm:$0xff]  ;;  %v5910_v28 = vld [vmem:[#allocation49_spill] sm:$0xff] }
 0x164   : > { %v1764_v13 = vadd.f32 %v1756_v46, %v1736_v21  ;;  %v1931_v2 = vadd.f32 %v1923_v47, %v1903_v32  ;;  %v2007_v40 = vmul.f32 %v5899_v5, %v4647_v45  ;;  %v1430_v59 = vadd.f32 %v1422_v10, %v1402_v0  ;;  %v1104_v27 = vld [vmem:[#allocation2 + $0x62] sm:$0xff]  ;;  %v5911_v32 = vld [vmem:[#allocation50_spill] sm:$0xff] }
 0x165   : > { %v2098_v18 = vadd.f32 %v2090_v61, %v2070_v51  ;;  %v2118_v15 = vmul.f32 %v5908_v3, %v4636_v63  ;;  %v2146_v48 = vmul.f32 %v5909_v7, %v4643_v11  ;;  %v1132_v4 = vld [vmem:[#allocation2 + $0x63] sm:$0xff]  ;;  %v2174_v21 = vmul.f32 %v5910_v28, %v4645_v8 }
 0x166   : > { %v1792_v46 = vadd.f32 %v1784_v30, %v1764_v13  ;;  %v1959_v38 = vadd.f32 %v1951_v42, %v1931_v2  ;;  %v2202_v47 = vmul.f32 %v5911_v32, %v4647_v45  ;;  %v1625_v17 = vadd.f32 %v1617_v14, %v1597_v36  ;;  %v5912_v13 = vld [vmem:[#allocation17_spill] sm:$0xff]  ;;  %v5913_v14 = vld [vmem:[#allocation23_spill] sm:$0xff]  ;;  %v5923_v32 = vld [vmem:[#allocation54_spill] sm:$0xff] }
 0x167   : > { %v2126_v5 = vadd.f32 %v2118_v15, %v2098_v18  ;;  %v1060_v10 = vmul.f32 %v5882_v43, %v1048_v55  ;;  %v1088_v0 = vmul.f32 %v5883_v24, %v1076_v37  ;;  %v1116_v51 = vmul.f32 %v4207_v56, %v1104_v27  ;;  %v5914_v18 = vld [vmem:[#allocation24_spill] sm:$0xff]  ;;  %v5915_v24 = vld [vmem:[#allocation30_spill] sm:$0xff] }
 0x168   : > { %v1987_v63 = vadd.f32 %v1979_v25, %v1959_v38  ;;  %v1144_v11 = vmul.f32 %v4210_v57, %v1132_v4  ;;  %v1255_v30 = vmul.f32 %v4225_v1, %v1048_v55  ;;  %v1820_v42 = vadd.f32 %v1812_v12, %v1792_v46  ;;  %v5916_v12 = vld [vmem:[#allocation31_spill] sm:$0xff] }
 0x169   : > { %v2154_v61 = vadd.f32 %v2146_v48, %v2126_v5  ;;  %v1283_v8 = vmul.f32 %v5912_v13, %v1076_v37  ;;  %v1311_v2 = vmul.f32 %v4231_v6, %v1104_v27  ;;  %v1339_v45 = vmul.f32 %v4238_v9, %v1132_v4  ;;  %v5917_v6 = vld [vmem:[#allocation37_spill] sm:$0xff] }
 0x16a   : > { %v1450_v36 = vmul.f32 %v5913_v14, %v1048_v55  ;;  %v1478_v15 = vmul.f32 %v5914_v18, %v1076_v37  ;;  %v1506_v25 = vmul.f32 %v4257_v19, %v1104_v27  ;;  %v2015_v38 = vadd.f32 %v2007_v40, %v1987_v63  ;;  %v5918_v14 = vld [vmem:[#allocation38_spill] sm:$0xff]  ;;  %v4741_v63 = vpop.f32.mrb[48].mxu0  ;;  %v5922_v19 = vld [vmem:[#allocation53_spill] sm:$0xff] }
 0x16b   : > { %v2182_v56 = vadd.f32 %v2174_v21, %v2154_v61  ;;  %v1534_v57 = vmul.f32 %v4260_v20, %v1132_v4  ;;  %v1645_v43 = vmul.f32 %v5915_v24, %v1048_v55  ;;  %v1673_v5 = vmul.f32 %v5916_v12, %v1076_v37  ;;  %v4739_v21 = vld [vmem:[#allocation2 + $0x64] sm:$0xff]  ;;  %5919 = vst [vmem:[#allocation48_spill] sm:$0xff] %v4741_v63 }
 0x16c   : > { %v1701_v48 = vmul.f32 %v4283_v29, %v1104_v27  ;;  %v1729_v46 = vmul.f32 %v4286_v31, %v1132_v4  ;;  %v1840_v9 = vmul.f32 %v5917_v6, %v1048_v55  ;;  %v1868_v1 = vmul.f32 %v5918_v14, %v1076_v37  ;;  %v4746_v24 = vld [vmem:[#allocation2 + $0x65] sm:$0xff]  ;;  %v5920_v14 = vld [vmem:[#allocation51_spill] sm:$0xff] }
 0x16d   : > { %v2210_v13 = vadd.f32 %v2202_v47, %v2182_v56  ;;  %v1896_v18 = vmul.f32 %v5894_v54, %v1104_v27  ;;  %v1924_v40 = vmul.f32 %v5906_v35, %v1132_v4  ;;  %v2035_v61 = vmul.f32 %v5900_v50, %v1048_v55  ;;  %v4748_v56 = vld [vmem:[#allocation2 + $0x66] sm:$0xff]  ;;  %v3506_v47 = vpop.f32.mrb[49].mxu0 }
 0x16e   : > { %v2063_v12 = vmul.f32 %v5901_v52, %v1076_v37  ;;  %v2091_v29 = vmul.f32 %v5907_v39, %v1104_v27  ;;  %v1096_v31 = vadd.f32 %v1088_v0, %v1060_v10  ;;  %v2119_v54 = vmul.f32 %v5908_v3, %v1132_v4  ;;  %v5921_v6 = vld [vmem:[#allocation52_spill] sm:$0xff] }
 0x16f   : > { %v2230_v35 = vmul.f32 %v5920_v14, %v1048_v55  ;;  %v2258_v20 = vmul.f32 %v5921_v6, %v1076_v37  ;;  %v1263_v63 = vadd.f32 %v1255_v30, %v4699_v41  ;;  %v2286_v50 = vmul.f32 %v5922_v19, %v1104_v27  ;;  %v5924_v27 = vld [vmem:[#allocation21_spill] sm:$0xff] }
 0x170   : > { %v4756_v52 = vmul.f32 %v5923_v32, %v1132_v4  ;;  %v1124_v39 = vadd.f32 %v1116_v51, %v1096_v31  ;;  %v1172_v10 = vmul.f32 %v4213_v58, %v4739_v21  ;;  %v1200_v0 = vmul.f32 %v5888_v53, %v4746_v24  ;;  %v5925_v51 = vld [vmem:[#allocation22_spill] sm:$0xff] }
 0x171   : > { %v1228_v47 = vmul.f32 %v4219_v62, %v4748_v56  ;;  %v1291_v55 = vadd.f32 %v1283_v8, %v1263_v63  ;;  %v1458_v3 = vadd.f32 %v1450_v36, %v1430_v59  ;;  %v1367_v41 = vmul.f32 %v5890_v26, %v4739_v21 }
 0x172   : > { %v1152_v37 = vadd.f32 %v1144_v11, %v1124_v39  ;;  %v1395_v4 = vmul.f32 %v5924_v27, %v4746_v24  ;;  %v1653_v30 = vadd.f32 %v1645_v43, %v1625_v17  ;;  %v1423_v32 = vmul.f32 %v5925_v51, %v4748_v56 }
 0x173   : > { %v1319_v31 = vadd.f32 %v1311_v2, %v1291_v55  ;;  %v1486_v58 = vadd.f32 %v1478_v15, %v1458_v3  ;;  %v1562_v53 = vmul.f32 %v4267_v22, %v4739_v21  ;;  %v1590_v59 = vmul.f32 %v4270_v23, %v4746_v24 }
 0x174   : > { %v1180_v19 = vadd.f32 %v1172_v10, %v1152_v37  ;;  %v1681_v39 = vadd.f32 %v1673_v5, %v1653_v30  ;;  %v1848_v11 = vadd.f32 %v1840_v9, %v1820_v42  ;;  %v1618_v63 = vmul.f32 %v5893_v44, %v4748_v56 }
 0x175   : > { %v1347_v8 = vadd.f32 %v1339_v45, %v1319_v31  ;;  %v1514_v36 = vadd.f32 %v1506_v25, %v1486_v58  ;;  %v1757_v43 = vmul.f32 %v4289_v33, %v4739_v21  ;;  %v1785_v3 = vmul.f32 %v4292_v34, %v4746_v24 }
 0x176   : > { %v1709_v17 = vadd.f32 %v1701_v48, %v1681_v39  ;;  %v1876_v2 = vadd.f32 %v1868_v1, %v1848_v11  ;;  %v2043_v15 = vadd.f32 %v2035_v61, %v2015_v38  ;;  %v1813_v5 = vmul.f32 %v5905_v60, %v4748_v56  ;;  %v4791_v39 = vld [vmem:[%s5829_s5 + $0x30] ss:$0 sm:$0xff] }
 0x177   : > { %v1375_v10 = vadd.f32 %v1367_v41, %v1347_v8  ;;  %v1542_v55 = vadd.f32 %v1534_v57, %v1514_v36  ;;  %v1952_v58 = vmul.f32 %v5897_v16, %v4739_v21  ;;  %v1208_v9 = vadd.f32 %v1200_v0, %v1180_v19  ;;  %v5926_v57 = vld [vmem:[#allocation43_spill] sm:$0xff]  ;;  %5927 = vst [vmem:[#allocation49_spill] sm:$0xff] %v4791_v39  ;;  %v4797_v0 = vld [vmem:[#allocation2 + $0x70] sm:$0xff] }
 0x178   : > { %v1737_v42 = vadd.f32 %v1729_v46, %v1709_v17  ;;  %v1904_v45 = vadd.f32 %v1896_v18, %v1876_v2  ;;  %v2071_v25 = vadd.f32 %v2063_v12, %v2043_v15  ;;  %v1980_v48 = vmul.f32 %v5898_v49, %v4746_v24  ;;  %v5928_v11 = vld [vmem:[#allocation50_spill] sm:$0xff]  ;;  %v5929_v36 = vld [vmem:[#allocation55_spill] sm:$0xff] }
 0x179   : > { %v1403_v37 = vadd.f32 %v1395_v4, %v1375_v10  ;;  %v1570_v30 = vadd.f32 %v1562_v53, %v1542_v55  ;;  %v2238_v31 = vadd.f32 %v2230_v35, %v2210_v13  ;;  %v2008_v61 = vmul.f32 %v5926_v57, %v4748_v56  ;;  %v4805_v17 = vld [vmem:[#allocation2 + $0x72] sm:$0xff] }
 0x17a   : > { %v1765_v1 = vadd.f32 %v1757_v43, %v1737_v42  ;;  %v1932_v38 = vadd.f32 %v1924_v40, %v1904_v45  ;;  %v2099_v41 = vadd.f32 %v2091_v29, %v2071_v25  ;;  %v2147_v18 = vmul.f32 %v5909_v7, %v4739_v21  ;;  %v4799_v29 = vld [vmem:[#allocation2 + $0x71] sm:$0xff]  ;;  %v5933_v42 = vld [vmem:[#allocation17_spill] sm:$0xff] }
 0x17b   : > { %v1598_v19 = vadd.f32 %v1590_v59, %v1570_v30  ;;  %v2175_v53 = vmul.f32 %v5910_v28, %v4746_v24  ;;  %v2266_v12 = vadd.f32 %v2258_v20, %v2238_v31  ;;  %v1236_v35 = vadd.f32 %v1228_v47, %v1208_v9  ;;  %v4807_v2 = vld [vmem:[#allocation2 + $0x73] sm:$0xff] }
 0x17c   : > { %v1793_v13 = vadd.f32 %v1785_v3, %v1765_v1  ;;  %v1960_v46 = vadd.f32 %v1952_v58, %v1932_v38  ;;  %v2127_v40 = vadd.f32 %v2119_v54, %v2099_v41  ;;  %v1431_v4 = vadd.f32 %v1423_v32, %v1403_v37  ;;  %v5930_v54 = vld [vmem:[#allocation56_spill] sm:$0xff]  ;;  %v4815_v32 = vld [vmem:[#allocation2 + $0x74] sm:$0xff] }
 0x17d   : > { %v2203_v8 = vmul.f32 %v5928_v11, %v4748_v56  ;;  %v2294_v59 = vadd.f32 %v2286_v50, %v2266_v12  ;;  %v2342_v43 = vmul.f32 %v5929_v36, %v4739_v21  ;;  %v2370_v3 = vmul.f32 %v5930_v54, %v4746_v24  ;;  %v4817_v10 = vld [vmem:[#allocation2 + $0x75] sm:$0xff]  ;;  %v5932_v58 = vld [vmem:[#allocation16_spill] sm:$0xff]  ;;  %v5934_v24 = vld [vmem:[#allocation57_spill] sm:$0xff] }
 0x17e   : > { %v1988_v20 = vadd.f32 %v1980_v48, %v1960_v46  ;;  %v2155_v47 = vadd.f32 %v2147_v18, %v2127_v40  ;;  %v4813_v15 = vmul.f32 %v4791_v39, %v4748_v56  ;;  %v1626_v50 = vadd.f32 %v1618_v63, %v1598_v19  ;;  %v4820_v55 = vld [vmem:[#allocation2 + $0x76] sm:$0xff]  ;;  %v5939_v18 = vld [vmem:[#allocation24_spill] sm:$0xff] }
 0x17f   : > { %v2322_v21 = vadd.f32 %v4756_v52, %v2294_v59  ;;  %v1256_v9 = vmul.f32 %v5932_v58, %v4797_v0  ;;  %v1284_v45 = vmul.f32 %v5933_v42, %v4799_v29  ;;  %vm914_vm13 = vcmp.ge.f32.partialorder %v5934_v24, 0.0  ;;  %v5935_v37 = vld [vmem:[#allocation18_spill] sm:$0xff]  ;;  %v5936_v48 = vld [vmem:[#allocation19_spill] sm:$0xff] }
 0x180   : > { %5931 = vst [vmem:[#allocation50_spill] sm:$0xff] %v4813_v15  ;;  %v1821_v25 = vadd.f32 %v1813_v5, %v1793_v13  ;;  %v2183_v56 = vadd.f32 %v2175_v53, %v2155_v47  ;;  %v1312_v30 = vmul.f32 %v5935_v37, %v4805_v17  ;;  %v4831_v63 = vmul.f32 %v5936_v48, %v4807_v2  ;;  %v5938_v41 = vld [vmem:[#allocation23_spill] sm:$0xff]  ;;  %v5942_v40 = vld [vmem:[#allocation26_spill] sm:$0xff] }
 0x181   : > { %v2016_v52 = vadd.f32 %v2008_v61, %v1988_v20  ;;  %v2350_v31 = vadd.f32 %v2342_v43, %v2322_v21  ;;  %v4835_v1 = vmul.f32 %v5890_v26, %v4815_v32  ;;  %v4839_v38 = vmul.f32 %v5924_v27, %v4817_v10  ;;  %v5940_v61 = vld [vmem:[#allocation25_spill] sm:$0xff]  ;;  %v5947_v21 = vld [vmem:[#allocation31_spill] sm:$0xff] }
 0x182   : > { %v4843_v5 = vmul.f32 %v5925_v51, %v4820_v55  ;;  %v1451_v19 = vmul.f32 %v5938_v41, %v4797_v0  ;;  %v1479_v53 = vmul.f32 %v5939_v18, %v4799_v29  ;;  %v1507_v12 = vmul.f32 %v5940_v61, %v4805_v17 }
 0x183   : > { %v2211_v13 = vadd.f32 %v2203_v8, %v2183_v56  ;;  %v4851_v46 = vadd.f32 %v2370_v3, %v2350_v31  ;;  %v4855_v59 = vmul.f32 %v5942_v40, %v4807_v2  ;;  %v4859_v43 = vmul.f32 %v4267_v22, %v4815_v32  ;;  %v5946_v8 = vld [vmem:[#allocation30_spill] sm:$0xff]  ;;  %v5948_v31 = vld [vmem:[#allocation32_spill] sm:$0xff] }
 0x184   : > { %5937 = vst [vmem:[#allocation16_spill] sm:$0xff] %v4843_v5  ;;  %v4863_v20 = vmul.f32 %v4270_v23, %v4817_v10  ;;  %v4867_v47 = vmul.f32 %v5893_v44, %v4820_v55  ;;  %v1646_v3 = vmul.f32 %v5946_v8, %v4797_v0  ;;  %v1674_v56 = vmul.f32 %v5947_v21, %v4799_v29  ;;  %v5953_v21 = vld [vmem:[#allocation37_spill] sm:$0xff]  ;;  %v5964_v5 = vld [vmem:[#allocation59_spill] sm:$0xff] }
 0x185   : > { %5941 = vst [vmem:[#allocation17_spill] sm:$0xff] %v4851_v46  ;;  %5943 = vst [vmem:[#allocation57_spill] sm:$0xff] %v4859_v43  ;;  %v1702_v15 = vmul.f32 %v5948_v31, %v4805_v17  ;;  %v5949_v46 = vld [vmem:[#allocation33_spill] sm:$0xff]  ;;  %v4881_v54 = vmul.f32 %v4289_v33, %v4815_v32  ;;  %v4885_v36 = vmul.f32 %v4292_v34, %v4817_v10  ;;  %v5954_v31 = vld [vmem:[#allocation38_spill] sm:$0xff] }
 0x186   : > { %5944 = vst [vmem:[#allocation18_spill] sm:$0xff] %v4863_v20  ;;  %5945 = vst [vmem:[#allocation19_spill] sm:$0xff] %v4867_v47  ;;  %v4877_v39 = vmul.f32 %v5949_v46, %v4807_v2  ;;  %v4889_v47 = vmul.f32 %v5905_v60, %v4820_v55  ;;  %v1841_v44 = vmul.f32 %v5953_v21, %v4797_v0  ;;  %v5955_v46 = vld [vmem:[#allocation39_spill] sm:$0xff]  ;;  %v5956_v33 = vld [vmem:[#allocation40_spill] sm:$0xff] }
 0x187   : > { %5950 = vst [vmem:[#allocation23_spill] sm:$0xff] %v4881_v54  ;;  %5951 = vst [vmem:[#allocation30_spill] sm:$0xff] %v4885_v36  ;;  %v1869_v20 = vmul.f32 %v5954_v31, %v4799_v29  ;;  %v1897_v23 = vmul.f32 %v5955_v46, %v4805_v17  ;;  %v1925_v54 = vmul.f32 %v5956_v33, %v4807_v2  ;;  %v5960_v31 = vld [vmem:[#allocation44_spill] sm:$0xff]  ;;  %v5961_v46 = vld [vmem:[#allocation45_spill] sm:$0xff] }
 0x188   : > { %5952 = vst [vmem:[#allocation66_spill] sm:$0xff] %v4889_v47  ;;  %v4901_v34 = vmul.f32 %v5897_v16, %v4815_v32  ;;  %v4905_v60 = vmul.f32 %v5898_v49, %v4817_v10  ;;  %v4909_v47 = vmul.f32 %v5926_v57, %v4820_v55  ;;  %v2036_v36 = vmul.f32 %v5960_v31, %v4797_v0  ;;  %v5962_v33 = vld [vmem:[#allocation46_spill] sm:$0xff] }
 0x189   : > { %v2064_v22 = vmul.f32 %v5961_v46, %v4799_v29  ;;  %v2092_v40 = vmul.f32 %v5962_v33, %v4805_v17  ;;  %v2231_v16 = vmul.f32 %v5920_v14, %v4797_v0  ;;  %v1459_v61 = vadd.f32 %v1451_v19, %v1431_v4  ;;  %v5965_v14 = vld [vmem:[#allocation10_spill] sm:$0xff] }
 0x18a   : > { %5957 = vst [vmem:[#allocation37_spill] sm:$0xff] %v4901_v34  ;;  %5958 = vst [vmem:[#allocation67_spill] sm:$0xff] %v4905_v60  ;;  %v5963_v34 = vld [vmem:[#allocation47_spill] sm:$0xff]  ;;  %v1264_v60 = vadd.f32 %v1256_v9, %v1236_v35  ;;  %v1654_v57 = vadd.f32 %v1646_v3, %v1626_v50  ;;  %v2044_v51 = vadd.f32 %v2036_v36, %v2016_v52 }
 0x18b   : > { %5959 = vst [vmem:[#allocation68_spill] sm:$0xff] %v4909_v47  ;;  %v4921_v49 = vmul.f32 %v5963_v34, %v4807_v2  ;;  %v1849_v47 = vadd.f32 %v1841_v44, %v1821_v25  ;;  %v2239_v43 = vadd.f32 %v2231_v16, %v2211_v13  ;;  %v970_v46 = vsel %vm914_vm13, %v5934_v24, %v5964_v5  ;;  %v5966_v36 = vld [vmem:[#allocation11_spill] sm:$0xff]  ;;  %v5968_v25 = vld [vmem:[#allocation12_spill] sm:$0xff] }
 0x18c   : > { %v1292_v27 = vadd.f32 %v1284_v45, %v1264_v60  ;;  %v1487_v33 = vadd.f32 %v1479_v53, %v1459_v61  ;;  %v1682_v18 = vadd.f32 %v1674_v56, %v1654_v57  ;;  %1016 = vst.msk [vmem:[#allocation2 + $0x88] sm:$0x3f] %vm982_vm7, %v970_v46  ;;  %v1061_v35 = vmul.f32 %v4797_v0, %v5965_v14  ;;  %v5967_v14 = vld [vmem:[#allocation53_spill] sm:$0xff]  ;;  %v1245_v5 = vld [vmem:[#allocation2 + $0x80] sm:$0xff]  ;;  %v5970_v61 = vld [vmem:[#allocation14_spill] sm:$0xff] }
 0x18d   : > { %1018 = vst.msk [vmem:[#allocation2 + $0x8a] sm:$0xc0] %vm985_vm8, %v970_v46  ;;  %v4933_v44 = vmul.f32 %v5909_v7, %v4815_v32  ;;  %v2259_v16 = vmul.f32 %v5921_v6, %v4799_v29  ;;  %v1877_v4 = vadd.f32 %v1869_v20, %v1849_v47  ;;  %v1089_v60 = vmul.f32 %v4799_v29, %v5966_v36  ;;  %v5969_v29 = vld [vmem:[#allocation13_spill] sm:$0xff]  ;;  %v5971_v3 = vld [vmem:[#allocation15_spill] sm:$0xff] }
 0x18e   : > { %v4941_v57 = vmul.f32 %v5910_v28, %v4817_v10  ;;  %v4945_v50 = vmul.f32 %v5928_v11, %v4820_v55  ;;  %v2287_v0 = vmul.f32 %v5967_v14, %v4805_v17  ;;  %v2072_v9 = vadd.f32 %v2064_v22, %v2044_v51  ;;  %v5991_v14 = vld [vmem:[#allocation30_spill] sm:$0xff] }
 0x18f   : > { %v2267_v45 = vadd.f32 %v2259_v16, %v2239_v43  ;;  %v1097_v24 = vadd.f32 %v1089_v60, %v1061_v35  ;;  %v1117_v52 = vmul.f32 %v4805_v17, %v5968_v25  ;;  %v1320_v19 = vadd.f32 %v1312_v30, %v1292_v27  ;;  %v5975_v25 = vld [vmem:[#allocation16_spill] sm:$0xff] }
 0x190   : > { %v1145_v53 = vmul.f32 %v4807_v2, %v5969_v29  ;;  %v1173_v13 = vmul.f32 %v4815_v32, %v5970_v61  ;;  %v1515_v46 = vadd.f32 %v1507_v12, %v1487_v33  ;;  %v1710_v20 = vadd.f32 %v1702_v15, %v1682_v18 }
 0x191   : > { %v1125_v47 = vadd.f32 %v1117_v52, %v1097_v24  ;;  %v1201_v56 = vmul.f32 %v4817_v10, %v5971_v3  ;;  %v1348_v22 = vadd.f32 %v4831_v63, %v1320_v19  ;;  %v1905_v51 = vadd.f32 %v1897_v23, %v1877_v4  ;;  %v5982_v3 = vld [vmem:[#allocation18_spill] sm:$0xff] }
 0x192   : > { %v1229_v17 = vmul.f32 %v4820_v55, %v4219_v62  ;;  %v1257_v27 = vmul.f32 %v5932_v58, %v1245_v5  ;;  %v1452_v30 = vmul.f32 %v5938_v41, %v1245_v5  ;;  %v1647_v2 = vmul.f32 %v5946_v8, %v1245_v5 }
 0x193   : > { %v1153_v43 = vadd.f32 %v1145_v53, %v1125_v47  ;;  %v4963_v32 = vld [vmem:[#allocation2 + $0x81] sm:$0xff]  ;;  %v1376_v10 = vadd.f32 %v4835_v1, %v1348_v22  ;;  %v1543_v23 = vadd.f32 %v4855_v59, %v1515_v46  ;;  %v1842_v63 = vmul.f32 %v5953_v21, %v1245_v5  ;;  %v5980_v53 = vld [vmem:[#allocation27_spill] sm:$0xff] }
 0x194   : > { %v4965_v33 = vld [vmem:[#allocation2 + $0x82] sm:$0xff]  ;;  %v1738_v58 = vadd.f32 %v4877_v39, %v1710_v20  ;;  %v1933_v18 = vadd.f32 %v1925_v54, %v1905_v51  ;;  %v2037_v12 = vmul.f32 %v5960_v31, %v1245_v5  ;;  %v2100_v35 = vadd.f32 %v2092_v40, %v2072_v9 }
 0x195   : > { %v4967_v15 = vld [vmem:[#allocation2 + $0x83] sm:$0xff]  ;;  %v1181_v16 = vadd.f32 %v1173_v13, %v1153_v43  ;;  %v1285_v4 = vmul.f32 %v5933_v42, %v4963_v32  ;;  %v1404_v1 = vadd.f32 %v4839_v38, %v1376_v10  ;;  %v4983_v59 = vadd.f32 %v2287_v0, %v2267_v45  ;;  %v5984_v43 = vld [vmem:[#allocation31_spill] sm:$0xff] }
 0x196   : > { %v4972_v62 = vld [vmem:[#allocation2 + $0x84] sm:$0xff]  ;;  %v1313_v60 = vmul.f32 %v5935_v37, %v4965_v33  ;;  %v1341_v39 = vmul.f32 %v5936_v48, %v4967_v15  ;;  %v5977_v37 = vld [vmem:[#allocation22_spill] sm:$0xff]  ;;  %v1675_v10 = vmul.f32 %v5984_v43, %v4963_v32 }
 0x197   : > { %v4974_v55 = vld [vmem:[#allocation2 + $0x85] sm:$0xff]  ;;  %5972 = vst [vmem:[#allocation44_spill] sm:$0xff] %v4983_v59  ;;  %v1369_v54 = vmul.f32 %v5890_v26, %v4972_v62  ;;  %v1209_v24 = vadd.f32 %v1201_v56, %v1181_v16  ;;  %v1432_v0 = vadd.f32 %v5975_v25, %v1404_v1  ;;  %v5979_v26 = vld [vmem:[#allocation26_spill] sm:$0xff]  ;;  %v1564_v61 = vmul.f32 %v5980_v53, %v4972_v62  ;;  %v5986_v1 = vld [vmem:[#allocation23_spill] sm:$0xff] }
 0x198   : > { %v4981_v36 = vld [vmem:[#allocation2 + $0x86] sm:$0xff]  ;;  %v1536_v29 = vmul.f32 %v5979_v26, %v4967_v15 }
 0x199   : > { %v5973_v40 = vld [vmem:[#allocation24_spill] sm:$0xff]  ;;  %v5974_v42 = vld [vmem:[#allocation21_spill] sm:$0xff]  ;;  %v5001_v5 = vmul.f32 %v5977_v37, %v4981_v36  ;;  %v1237_v13 = vadd.f32 %v1229_v17, %v1209_v24  ;;  %v1460_v46 = vadd.f32 %v1452_v30, %v1432_v0  ;;  %v5987_v30 = vld [vmem:[#allocation19_spill] sm:$0xff] }
 0x19a   : > { %v1480_v9 = vmul.f32 %v5973_v40, %v4963_v32  ;;  %v4995_v38 = vmul.f32 %v5974_v42, %v4974_v55  ;;  %v5976_v45 = vld [vmem:[#allocation57_spill] sm:$0xff]  ;;  %v5981_v20 = vld [vmem:[#allocation28_spill] sm:$0xff]  ;;  %v1766_v42 = vadd.f32 %v5986_v1, %v1738_v58 }
 0x19b   : > { %v1571_v52 = vadd.f32 %v5976_v45, %v1543_v23  ;;  %v5978_v48 = vld [vmem:[#allocation25_spill] sm:$0xff]  ;;  %v1592_v47 = vmul.f32 %v5981_v20, %v4974_v55  ;;  %v5985_v23 = vld [vmem:[#allocation32_spill] sm:$0xff]  ;;  %v1265_v25 = vadd.f32 %v1257_v27, %v1237_v13  ;;  %v5994_v13 = vld [vmem:[#allocation66_spill] sm:$0xff] }
 0x19c   : > { %v1508_v19 = vmul.f32 %v5978_v48, %v4965_v33  ;;  %v5983_v22 = vld [vmem:[#allocation29_spill] sm:$0xff]  ;;  %v1703_v16 = vmul.f32 %v5985_v23, %v4965_v33  ;;  %v1488_v17 = vadd.f32 %v1480_v9, %v1460_v46  ;;  %v5993_v27 = vld [vmem:[#allocation36_spill] sm:$0xff] }
 0x19d   : > { %v1599_v56 = vadd.f32 %v5982_v3, %v1571_v52  ;;  %v5014_v51 = vmul.f32 %v5983_v22, %v4981_v36  ;;  %v5988_v0 = vld [vmem:[#allocation33_spill] sm:$0xff]  ;;  %v5989_v52 = vld [vmem:[#allocation34_spill] sm:$0xff]  ;;  %v5990_v3 = vld [vmem:[#allocation35_spill] sm:$0xff]  ;;  %v1794_v22 = vadd.f32 %v5991_v14, %v1766_v42  ;;  %v1293_v23 = vadd.f32 %v1285_v4, %v1265_v25 }
 0x19e   : > { %v1731_v45 = vmul.f32 %v5988_v0, %v4967_v15  ;;  %v1759_v37 = vmul.f32 %v5989_v52, %v4972_v62  ;;  %v1787_v59 = vmul.f32 %v5990_v3, %v4974_v55  ;;  %v5992_v20 = vld [vmem:[#allocation37_spill] sm:$0xff]  ;;  %v1516_v26 = vadd.f32 %v1508_v19, %v1488_v17  ;;  %v5997_v3 = vld [vmem:[#allocation67_spill] sm:$0xff]  ;;  %v5998_v4 = vld [vmem:[#allocation40_spill] sm:$0xff] }
 0x19f   : > { %v1627_v24 = vadd.f32 %v5987_v30, %v1599_v56  ;;  %v1961_v53 = vadd.f32 %v5992_v20, %v1933_v18  ;;  %v5032_v9 = vmul.f32 %v5993_v27, %v4981_v36  ;;  %v1822_v46 = vadd.f32 %v5994_v13, %v1794_v22  ;;  %v5995_v56 = vld [vmem:[#allocation38_spill] sm:$0xff]  ;;  %v5996_v30 = vld [vmem:[#allocation39_spill] sm:$0xff]  ;;  %v5999_v20 = vld [vmem:[#allocation41_spill] sm:$0xff] }
 0x1a0   : > { %v1870_v1 = vmul.f32 %v5995_v56, %v4963_v32  ;;  %v1898_v52 = vmul.f32 %v5996_v30, %v4965_v33  ;;  %v1321_v14 = vadd.f32 %v1313_v60, %v1293_v23  ;;  %v1544_v42 = vadd.f32 %v1536_v29, %v1516_v26  ;;  %v6000_v22 = vld [vmem:[#allocation42_spill] sm:$0xff]  ;;  %v6002_v30 = vld [vmem:[#allocation43_spill] sm:$0xff]  ;;  %v6003_v60 = vld [vmem:[#allocation45_spill] sm:$0xff] }
 0x1a1   : > { %v1655_v58 = vadd.f32 %v1647_v2, %v1627_v24  ;;  %v1989_v0 = vadd.f32 %v5997_v3, %v1961_v53  ;;  %v1926_v2 = vmul.f32 %v5998_v4, %v4967_v15  ;;  %v1850_v19 = vadd.f32 %v1842_v63, %v1822_v46  ;;  %v6001_v24 = vld [vmem:[#allocation68_spill] sm:$0xff]  ;;  %v6004_v63 = vld [vmem:[#allocation46_spill] sm:$0xff] }
 0x1a2   : > { %v1954_v25 = vmul.f32 %v5999_v20, %v4972_v62  ;;  %v1982_v17 = vmul.f32 %v6000_v22, %v4974_v55  ;;  %v1349_v27 = vadd.f32 %v1341_v39, %v1321_v14  ;;  %v5049_v53 = vmul.f32 %v6002_v30, %v4981_v36  ;;  %v5060_v14 = vld [vmem:[%s5827_s4] ss:$0 sm:$0xff] }
 0x1a3   : > { %v1683_v18 = vadd.f32 %v1675_v10, %v1655_v58  ;;  %v2017_v13 = vadd.f32 %v6001_v24, %v1989_v0  ;;  %v2065_v26 = vmul.f32 %v6003_v60, %v4963_v32  ;;  %v1878_v29 = vadd.f32 %v1870_v1, %v1850_v19  ;;  %v6005_v0 = vld [vmem:[#allocation60_spill] sm:$0xff]  ;;  %v6008_v19 = vld [vmem:[#allocation61_spill] sm:$0xff] }
 0x1a4   : > { %v2093_v23 = vmul.f32 %v6004_v63, %v4965_v33  ;;  %v2128_v3 = vadd.f32 %v4921_v49, %v2100_v35  ;;  %v1377_v58 = vadd.f32 %v1369_v54, %v1349_v27  ;;  %v1572_v46 = vadd.f32 %v1564_v61, %v1544_v42  ;;  %v5072_v35 = vld [vmem:[%s5826_s3] ss:$0 sm:$0xff]  ;;  %v6007_v54 = vld [vmem:[#allocation58_spill] sm:$0xff] }
 0x1a5   : > { %v1711_v6 = vadd.f32 %v1703_v16, %v1683_v18  ;;  %v2045_v10 = vadd.f32 %v2037_v12, %v2017_v13  ;;  %vm915_vm0 = vcmp.ge.f32.partialorder %v6005_v0, 0.0  ;;  %v1906_v39 = vadd.f32 %v1898_v52, %v1878_v29  ;;  %6006 = vst [vmem:[#allocation47_spill] sm:$0xff] %v5072_v35 }
 0x1a6   : > { %v946_v32 = vmul.f32 %v5060_v14, %v6005_v0  ;;  %v2156_v12 = vadd.f32 %v4933_v44, %v2128_v3  ;;  %v2121_v49 = vmul.f32 %v5963_v34, %v4967_v15  ;;  %v860_v61 = vadd.f32 %v5072_v35, %v6007_v54 }
 0x1a7   : > { %v1739_v22 = vadd.f32 %v1731_v45, %v1711_v6  ;;  %v2073_v16 = vadd.f32 %v2065_v26, %v2045_v10  ;;  %v2149_v6 = vmul.f32 %v5909_v7, %v4972_v62  ;;  %v1934_v45 = vadd.f32 %v1926_v2, %v1906_v39  ;;  %v6010_v26 = vld [vmem:[#allocation62_spill] sm:$0xff] }
 0x1a8   : > { %v2177_v44 = vmul.f32 %v5910_v28, %v4974_v55  ;;  %v1405_v15 = vadd.f32 %v4995_v38, %v1377_v58  ;;  %v1600_v27 = vadd.f32 %v1592_v47, %v1572_v46  ;;  %vm916_vm1 = vcmp.ge.f32.partialorder %v860_v61, 0.0  ;;  %v6009_v55 = vld [vmem:[#allocation20_spill] sm:$0xff]  ;;  %v2478_v10 = vld [vmem:[%s5692_s8 + $0x10] sm:$0xff] }
 0x1a9   : > { %v1767_v33 = vadd.f32 %v1759_v37, %v1739_v22  ;;  %v2101_v52 = vadd.f32 %v2093_v23, %v2073_v16  ;;  %v971_v37 = vsel %vm915_vm0, %v6005_v0, %v946_v32  ;;  %v947_v62 = vmul.f32 %v5060_v14, %v860_v61  ;;  %v2476_v47 = vld [vmem:[%s5692_s8] sm:$0xff]  ;;  %v2479_v23 = vld [vmem:[%s5692_s8 + $0x18] sm:$0xff] }
 0x1aa   : > { %1019 = vst.msk [vmem:[#allocation2 + $0x92] sm:$0xff] %vm980_vm5, %v971_v37  ;;  %v1962_v1 = vadd.f32 %v1954_v25, %v1934_v45  ;;  %v2184_v18 = vadd.f32 %v4941_v57, %v2156_v12  ;;  %v865_v2 = vadd.f32 %v5072_v35, %v6008_v19  ;;  %v870_v13 = vadd.f32 %v5072_v35, %v6009_v55  ;;  %v2477_v25 = vld [vmem:[%s5692_s8 + $0x8] sm:$0xff] }
 0x1ab   : > { %v2129_v42 = vadd.f32 %v2121_v49, %v2101_v52  ;;  %v1795_v22 = vadd.f32 %v1787_v59, %v1767_v33  ;;  %v972_v24 = vsel %vm916_vm1, %v860_v61, %v947_v62  ;;  %v875_v38 = vadd.f32 %v5072_v35, %v6010_v26  ;;  %v2480_v49 = vld [vmem:[%s5692_s8 + $0x20] sm:$0xff] }
 0x1ac   : > { %v1990_v57 = vadd.f32 %v1982_v17, %v1962_v1  ;;  %1020 = vst.msk [vmem:[#allocation2 + $0x9a] sm:$0xf] %vm988_vm10, %v972_v24  ;;  %vm917_vm6 = vcmp.ge.f32.partialorder %v865_v2, 0.0  ;;  %v948_v59 = vmul.f32 %v5060_v14, %v865_v2  ;;  %vm918_vm9 = vcmp.ge.f32.partialorder %v870_v13, 0.0 }
 0x1ad   : > { %v2157_v29 = vadd.f32 %v2149_v6, %v2129_v42  ;;  %1022 = vst.msk [vmem:[#allocation2 + $0x9c] sm:$0xf0] %vm991_vm11, %v972_v24  ;;  %v949_v3 = vmul.f32 %v5060_v14, %v870_v13  ;;  %vm919_vm12 = vcmp.ge.f32.partialorder %v875_v38, 0.0  ;;  %v950_v17 = vmul.f32 %v5060_v14, %v875_v38  ;;  %v2481_v6 = vld [vmem:[%s5692_s8 + $0x28] sm:$0xff] }
 0x1ae   : > { %v2205_v46 = vmul.f32 %v5928_v11, %v4981_v36  ;;  %v973_v0 = vsel %vm917_vm6, %v865_v2, %v948_v59  ;;  %v3665_v39 = vpack.c.bf16 %v2477_v25, %v2476_v47  ;;  %v1433_v16 = vadd.f32 %v5001_v5, %v1405_v15  ;;  %v6013_v15 = vld [vmem:[#allocation64_spill] sm:$0xff]  ;;  %v6014_v42 = vld [vmem:[#allocation65_spill] sm:$0xff] }
 0x1af   : > { %v2185_v58 = vadd.f32 %v2177_v44, %v2157_v29  ;;  %1023 = vst.msk [vmem:[#allocation2 + $0xa4] sm:$0xff] %vm980_vm5, %v973_v0  ;;  %v974_v32 = vsel %vm918_vm9, %v870_v13, %v949_v3  ;;  %v975_v12 = vsel %vm919_vm12, %v875_v38, %v950_v17  ;;  %v3669_v33 = vpack.c.bf16 %v2479_v23, %v2478_v10  ;;  %v6016_v29 = vld [vmem:[#allocation52_spill] sm:$0xff]  ;;  %v6017_v23 = vld [vmem:[#allocation26_spill] sm:$0xff]  ;;  %v6018_v17 = vld [vmem:[#allocation27_spill] sm:$0xff] }
 0x1b0   : > { %v1628_v54 = vadd.f32 %v5014_v51, %v1600_v27  ;;  %v1823_v36 = vadd.f32 %v5032_v9, %v1795_v22  ;;  %v2018_v61 = vadd.f32 %v5049_v53, %v1990_v57  ;;  %v5122_v44 = vadd.f32 %v4945_v50, %v2184_v18  ;;  %1024 = vst.msk [vmem:[#allocation2 + $0xac] sm:$0x3] %vm994_vm14, %v974_v32  ;;  %v6012_v9 = vld [vmem:[#allocation63_spill] sm:$0xff] }
 0x1b1   : > { %v1441_v5 = vld [vmem:[#allocation2 + $0x90] sm:$0xff]  ;;  %1026 = vst.msk [vmem:[#allocation2 + $0xae] sm:$0xfc] %vm997_vm15, %v974_v32  ;;  %3666 = vmatprep.subr.bf16.mxu1 %v3665_v39  ;;  %v2213_v37 = vadd.f32 %v2205_v46, %v2185_v58  ;;  %v5130_v53 = vadd.f32 %v5072_v35, %v6012_v9  ;;  %v5134_v27 = vadd.f32 %v5072_v35, %v6013_v15  ;;  %v6019_v46 = vld [vmem:[#allocation28_spill] sm:$0xff]  ;;  %v6024_v15 = vld [vmem:[#allocation35_spill] sm:$0xff] }
 0x1b2   : > { %v1469_v45 = vld [vmem:[#allocation2 + $0x91] sm:$0xff]  ;;  %6011 = vst [vmem:[#allocation59_spill] sm:$0xff] %v5122_v44  ;;  %1027 = vst.msk [vmem:[#allocation2 + $0xb6] sm:$0xff] %vm980_vm5, %v975_v12  ;;  %v1453_v51 = vmul.f32 %v5938_v41, %v1441_v5  ;;  %3668 = vmatpush3.bf16.msra.mxu1 %v3665_v39  ;;  %v1648_v62 = vmul.f32 %v5946_v8, %v1441_v5  ;;  %v3673_v1 = vpack.c.bf16 %v2481_v6, %v2480_v49  ;;  %v6021_v49 = vld [vmem:[#allocation29_spill] sm:$0xff] }
 0x1b3   : > { %v5119_v52 = vld [vmem:[#allocation2 + $0x92] sm:$0xff]  ;;  %v1481_v50 = vmul.f32 %v5973_v40, %v1469_v45  ;;  %3670 = vmatprep.subr.bf16.mxu1 %v3669_v33  ;;  %v5140_v18 = vadd.f32 %v5072_v35, %v6014_v42  ;;  %v1676_v19 = vmul.f32 %v5984_v43, %v1469_v45  ;;  %v1843_v2 = vmul.f32 %v5953_v21, %v1441_v5 }
 0x1b4   : > { %v1509_v41 = vmul.f32 %v5978_v48, %v5119_v52  ;;  %v1461_v22 = vadd.f32 %v1453_v51, %v1433_v16  ;;  %v1525_v24 = vld [vmem:[#allocation2 + $0x93] sm:$0xff]  ;;  %v1871_v13 = vmul.f32 %v5995_v56, %v1469_v45  ;;  %v2038_v26 = vmul.f32 %v5960_v31, %v1441_v5  ;;  %v6020_v16 = vld [vmem:[#allocation32_spill] sm:$0xff] }
 0x1b5   : > { %v5146_v55 = vld [vmem:[#allocation2 + $0x94] sm:$0xff]  ;;  %v2066_v38 = vmul.f32 %v6003_v60, %v1469_v45  ;;  %v1656_v25 = vadd.f32 %v1648_v62, %v1628_v54  ;;  %v2261_v59 = vmul.f32 %v6016_v29, %v1469_v45  ;;  %v1537_v3 = vmul.f32 %v6017_v23, %v1525_v24  ;;  %v6022_v54 = vld [vmem:[#allocation33_spill] sm:$0xff]  ;;  %v6025_v62 = vld [vmem:[#allocation36_spill] sm:$0xff] }
 0x1b6   : > { %v5148_v40 = vld [vmem:[#allocation2 + $0x95] sm:$0xff]  ;;  %v1489_v10 = vadd.f32 %v1481_v50, %v1461_v22  ;;  %3672 = vmatpush3.bf16.msra.mxu1 %v3669_v33  ;;  %v1565_v58 = vmul.f32 %v6018_v17, %v5146_v55  ;;  %v1704_v32 = vmul.f32 %v6020_v16, %v5119_v52  ;;  %v1851_v45 = vadd.f32 %v1843_v2, %v1823_v36 }
 0x1b7   : > { %v5153_v47 = vld [vmem:[#allocation2 + $0x96] sm:$0xff]  ;;  %v1593_v0 = vmul.f32 %v6019_v46, %v5148_v40  ;;  %v1684_v39 = vadd.f32 %v1676_v19, %v1656_v25  ;;  %3674 = vmatprep.subr.bf16.mxu1 %v3673_v1  ;;  %v1788_v50 = vmul.f32 %v6024_v15, %v5148_v40  ;;  %v1927_v36 = vmul.f32 %v5998_v4, %v1525_v24 }
 0x1b8   : > { %v6015_v48 = vld [vmem:[#allocation51_spill] sm:$0xff]  ;;  %v1517_v12 = vadd.f32 %v1509_v41, %v1489_v10  ;;  %v1621_v6 = vmul.f32 %v6021_v49, %v5153_v47  ;;  %v6023_v33 = vld [vmem:[#allocation34_spill] sm:$0xff]  ;;  %v1816_v42 = vmul.f32 %v6025_v62, %v5153_v47  ;;  %v1879_v22 = vadd.f32 %v1871_v13, %v1851_v45 }
 0x1b9   : > { %v2233_v57 = vmul.f32 %v6015_v48, %v1441_v5  ;;  %v1732_v5 = vmul.f32 %v6022_v54, %v1525_v24  ;;  %v1712_v51 = vadd.f32 %v1704_v32, %v1684_v39  ;;  %v1760_v9 = vmul.f32 %v6023_v33, %v5146_v55  ;;  %v6026_v41 = vld [vmem:[#allocation39_spill] sm:$0xff]  ;;  %v6027_v17 = vld [vmem:[#allocation42_spill] sm:$0xff] }
 0x1ba   : > { %v1545_v19 = vadd.f32 %v1537_v3, %v1517_v12  ;;  %v1899_v25 = vmul.f32 %v6026_v41, %v5119_v52  ;;  %v2046_v10 = vadd.f32 %v2038_v26, %v2018_v61  ;;  %3676 = vmatpush3.bf16.msra.mxu1 %v3673_v1  ;;  %v1955_v2 = vmul.f32 %v5999_v20, %v5146_v55  ;;  %v1637_v12 = vld [vmem:[#allocation2 + $0xa0] sm:$0xff] }
 0x1bb   : > { %v1740_v23 = vadd.f32 %v1732_v5, %v1712_v51  ;;  %v1983_v46 = vmul.f32 %v6027_v17, %v5148_v40  ;;  %v2094_v13 = vmul.f32 %v6004_v63, %v5119_v52  ;;  %v2011_v61 = vmul.f32 %v6002_v30, %v5153_v47 }
 0x1bc   : > { %v1573_v39 = vadd.f32 %v1565_v58, %v1545_v19  ;;  %v1907_v32 = vadd.f32 %v1899_v25, %v1879_v22  ;;  %v2074_v49 = vadd.f32 %v2066_v38, %v2046_v10  ;;  %v2122_v1 = vmul.f32 %v5963_v34, %v1525_v24  ;;  %v1665_v25 = vld [vmem:[#allocation2 + $0xa1] sm:$0xff] }
 0x1bd   : > { %v1768_v3 = vadd.f32 %v1760_v9, %v1740_v23  ;;  %v2241_v26 = vadd.f32 %v2233_v57, %v2213_v37  ;;  %v2150_v44 = vmul.f32 %v5909_v7, %v5146_v55  ;;  %v2178_v38 = vmul.f32 %v5910_v28, %v5148_v40  ;;  %v6028_v9 = vld [vmem:[#allocation53_spill] sm:$0xff] }
 0x1be   : > { %v1601_v5 = vadd.f32 %v1593_v0, %v1573_v39  ;;  %v1935_v45 = vadd.f32 %v1927_v36, %v1907_v32  ;;  %v2102_v51 = vadd.f32 %v2094_v13, %v2074_v49  ;;  %v2289_v22 = vmul.f32 %v6028_v9, %v5119_v52  ;;  %v6029_v39 = vld [vmem:[#allocation54_spill] sm:$0xff]  ;;  %v1693_v32 = vld [vmem:[#allocation2 + $0xa2] sm:$0xff] }
 0x1bf   : > { %v1796_v58 = vadd.f32 %v1788_v50, %v1768_v3  ;;  %v2269_v19 = vadd.f32 %v2261_v59, %v2241_v26  ;;  %v1649_v37 = vmul.f32 %v5946_v8, %v1637_v12  ;;  %v2206_v0 = vmul.f32 %v5928_v11, %v5153_v47 }
 0x1c0   : > { %v1629_v10 = vadd.f32 %v1621_v6, %v1601_v5  ;;  %v1963_v23 = vadd.f32 %v1955_v2, %v1935_v45  ;;  %v2130_v35 = vadd.f32 %v2122_v1, %v2102_v51  ;;  %v2317_v50 = vmul.f32 %v6029_v39, %v1525_v24  ;;  %v6030_v6 = vld [vmem:[#allocation55_spill] sm:$0xff]  ;;  %v6031_v1 = vld [vmem:[#allocation56_spill] sm:$0xff] }
 0x1c1   : > { %v1824_v57 = vadd.f32 %v1816_v42, %v1796_v58  ;;  %v2297_v36 = vadd.f32 %v2289_v22, %v2269_v19  ;;  %v1677_v3 = vmul.f32 %v5984_v43, %v1665_v25  ;;  %v2345_v2 = vmul.f32 %v6030_v6, %v5146_v55  ;;  %v1721_v42 = vld [vmem:[#allocation2 + $0xa3] sm:$0xff] }
 0x1c2   : > { %v1991_v49 = vadd.f32 %v1983_v46, %v1963_v23  ;;  %v2158_v13 = vadd.f32 %v2150_v44, %v2130_v35  ;;  %v1657_v59 = vadd.f32 %v1649_v37, %v1629_v10  ;;  %v2373_v8 = vmul.f32 %v6031_v1, %v5148_v40  ;;  %v1749_v46 = vld [vmem:[#allocation2 + $0xa4] sm:$0xff] }
 0x1c3   : > { %v2325_v52 = vadd.f32 %v2317_v50, %v2297_v36  ;;  %v1844_v26 = vmul.f32 %v5953_v21, %v1637_v12  ;;  %v1705_v24 = vmul.f32 %v6020_v16, %v1693_v32  ;;  %v6032_v44 = vld [vmem:[#allocation49_spill] sm:$0xff]  ;;  %v1872_v19 = vmul.f32 %v5995_v56, %v1665_v25 }
 0x1c4   : > { %v2019_v5 = vadd.f32 %v2011_v61, %v1991_v49  ;;  %v2186_v45 = vadd.f32 %v2178_v38, %v2158_v13  ;;  %v1685_v51 = vadd.f32 %v1677_v3, %v1657_v59  ;;  %v2401_v43 = vmul.f32 %v6032_v44, %v5153_v47 }
 0x1c5   : > { %v2353_v35 = vadd.f32 %v2345_v2, %v2325_v52  ;;  %v1852_v58 = vadd.f32 %v1844_v26, %v1824_v57  ;;  %v1733_v40 = vmul.f32 %v6022_v54, %v1721_v42  ;;  %v2039_v10 = vmul.f32 %v5960_v31, %v1637_v12  ;;  %v1777_v57 = vld [vmem:[#allocation2 + $0xa5] sm:$0xff] }
 0x1c6   : > { %v2214_v55 = vadd.f32 %v2206_v0, %v2186_v45  ;;  %v1713_v22 = vadd.f32 %v1705_v24, %v1685_v51  ;;  %v1761_v61 = vmul.f32 %v6023_v33, %v1749_v46  ;;  %v1900_v16 = vmul.f32 %v6026_v41, %v1693_v32  ;;  %v1805_v2 = vld [vmem:[#allocation2 + $0xa6] sm:$0xff] }
 0x1c7   : > { %v2381_v23 = vadd.f32 %v2373_v8, %v2353_v35  ;;  %v1880_v38 = vadd.f32 %v1872_v19, %v1852_v58  ;;  %v2047_v36 = vadd.f32 %v2039_v10, %v2019_v5  ;;  %v2067_v50 = vmul.f32 %v6003_v60, %v1665_v25 }
 0x1c8   : > { %v1741_v37 = vadd.f32 %v1733_v40, %v1713_v22  ;;  %v2234_v47 = vmul.f32 %v6015_v48, %v1637_v12  ;;  %v1928_v13 = vmul.f32 %v5998_v4, %v1721_v42  ;;  %v2095_v54 = vmul.f32 %v6004_v63, %v1693_v32 }
 0x1c9   : > { %v2409_v49 = vadd.f32 %v2401_v43, %v2381_v23  ;;  %v1908_v0 = vadd.f32 %v1900_v16, %v1880_v38  ;;  %v2075_v3 = vadd.f32 %v2067_v50, %v2047_v36  ;;  %v2262_v33 = vmul.f32 %v6016_v29, %v1665_v25  ;;  %v1833_v43 = vld [vmem:[#allocation2 + $0xb0] sm:$0xff] }
 0x1ca   : > { %v1769_v59 = vadd.f32 %v1761_v61, %v1741_v37  ;;  %v2242_v52 = vadd.f32 %v2234_v47, %v2214_v55  ;;  %v1956_v26 = vmul.f32 %v5999_v20, %v1749_v46  ;;  %v2123_v12 = vmul.f32 %v5963_v34, %v1721_v42  ;;  %v1889_v47 = vld [vmem:[#allocation2 + $0xb2] sm:$0xff] }
 0x1cb   : > { %2417 = vst.msk [vmem:[#allocation3 + $0x18] sm:$0xff] %vm980_vm5, %v2409_v49  ;;  %v1936_v8 = vadd.f32 %v1928_v13, %v1908_v0  ;;  %v1789_v5 = vmul.f32 %v6024_v15, %v1777_v57  ;;  %v2103_v45 = vadd.f32 %v2095_v54, %v2075_v3  ;;  %v2151_v51 = vmul.f32 %v5909_v7, %v1749_v46  ;;  %v1861_v15 = vld [vmem:[#allocation2 + $0xb1] sm:$0xff] }
 0x1cc   : > { %v2270_v24 = vadd.f32 %v2262_v33, %v2242_v52  ;;  %v2290_v35 = vmul.f32 %v6028_v9, %v1693_v32  ;;  %v1817_v25 = vmul.f32 %v6025_v62, %v1805_v2  ;;  %v1984_v55 = vmul.f32 %v6027_v17, %v1777_v57  ;;  %v1917_v49 = vld [vmem:[#allocation2 + $0xb3] sm:$0xff] }
 0x1cd   : > { %v1964_v58 = vadd.f32 %v1956_v26, %v1936_v8  ;;  %v1797_v19 = vadd.f32 %v1789_v5, %v1769_v59  ;;  %v2131_v22 = vadd.f32 %v2123_v12, %v2103_v45  ;;  %v2318_v10 = vmul.f32 %v6029_v39, %v1721_v42  ;;  %v5228_v0 = vld [vmem:[#allocation2 + $0xb4] sm:$0xff] }
 0x1ce   : > { %v2298_v40 = vadd.f32 %v2290_v35, %v2270_v24  ;;  %v2346_v23 = vmul.f32 %v6030_v6, %v1749_v46  ;;  %v2012_v16 = vmul.f32 %v6002_v30, %v1805_v2  ;;  %v1845_v32 = vmul.f32 %v5953_v21, %v1833_v43  ;;  %v5233_v52 = vld [vmem:[#allocation2 + $0xb5] sm:$0xff] }
 0x1cf   : > { %v1825_v61 = vadd.f32 %v1817_v25, %v1797_v19  ;;  %v1992_v38 = vadd.f32 %v1984_v55, %v1964_v58  ;;  %v2159_v37 = vadd.f32 %v2151_v51, %v2131_v22  ;;  %v2179_v50 = vmul.f32 %v5910_v28, %v1777_v57  ;;  %v5235_v33 = vld [vmem:[#allocation2 + $0xb6] sm:$0xff] }
 0x1d0   : > { %v2326_v36 = vadd.f32 %v2318_v10, %v2298_v40  ;;  %v2207_v62 = vmul.f32 %v5928_v11, %v1805_v2  ;;  %v2374_v46 = vmul.f32 %v6031_v1, %v1777_v57  ;;  %v1873_v54 = vmul.f32 %v5995_v56, %v1861_v15 }
 0x1d1   : > { %v2020_v42 = vadd.f32 %v2012_v16, %v1992_v38  ;;  %v1853_v13 = vadd.f32 %v1845_v32, %v1825_v61  ;;  %v2187_v3 = vadd.f32 %v2179_v50, %v2159_v37  ;;  %v2402_v21 = vmul.f32 %v6032_v44, %v1805_v2  ;;  %v2483_v61 = vld [vmem:[%s5692_s8 + $0x38] sm:$0xff]  ;;  %v2484_v32 = vld [vmem:[%s5692_s8 + $0x40] sm:$0xff]  ;;  %v2485_v37 = vld [vmem:[%s5692_s8 + $0x48] sm:$0xff] }
 0x1d2   : > { %v2354_v59 = vadd.f32 %v2346_v23, %v2326_v36  ;;  %v2040_v8 = vmul.f32 %v5960_v31, %v1833_v43  ;;  %v1901_v12 = vmul.f32 %v6026_v41, %v1889_v47  ;;  %v1929_v5 = vmul.f32 %v5998_v4, %v1917_v49  ;;  %v2482_v23 = vld [vmem:[%s5692_s8 + $0x30] sm:$0xff] }
 0x1d3   : > { %v1881_v26 = vadd.f32 %v1873_v54, %v1853_v13  ;;  %v1957_v57 = vmul.f32 %v5999_v20, %v5228_v0  ;;  %v2215_v45 = vadd.f32 %v2207_v62, %v2187_v3  ;;  %v2068_v24 = vmul.f32 %v6003_v60, %v1861_v15  ;;  %v2303_v54 = vld [vmem:[#allocation2 + $0x73] sm:$0xff] }
 0x1d4   : > { %v2382_v56 = vadd.f32 %v2374_v46, %v2354_v59  ;;  %v2048_v51 = vadd.f32 %v2040_v8, %v2020_v42  ;;  %v1985_v35 = vmul.f32 %v6027_v17, %v5233_v52  ;;  %v5247_v58 = vmul.f32 %v6002_v30, %v5235_v33 }
 0x1d5   : > { %v1909_v2 = vadd.f32 %v1901_v12, %v1881_v26  ;;  %v2235_v41 = vmul.f32 %v6015_v48, %v1833_v43  ;;  %v2096_v25 = vmul.f32 %v6004_v63, %v1889_v47  ;;  %v2124_v20 = vmul.f32 %v5963_v34, %v1917_v49  ;;  %v2486_v26 = vld [vmem:[%s5692_s8 + $0x50] sm:$0xff]  ;;  %v2220_v12 = vld [vmem:[#allocation2 + $0x80] sm:$0xff] }
 0x1d6   : > { %v2410_v19 = vadd.f32 %v2402_v21, %v2382_v56  ;;  %v2076_v4 = vadd.f32 %v2068_v24, %v2048_v51  ;;  %v2152_v22 = vmul.f32 %v5909_v7, %v5228_v0  ;;  %v2263_v10 = vmul.f32 %v6016_v29, %v1861_v15  ;;  %v2331_v56 = vld [vmem:[#allocation2 + $0x74] sm:$0xff] }
 0x1d7   : > { %v1937_v55 = vadd.f32 %v1929_v5, %v1909_v2  ;;  %v2243_v40 = vadd.f32 %v2235_v41, %v2215_v45  ;;  %v2180_v30 = vmul.f32 %v5910_v28, %v5233_v52  ;;  %v2291_v43 = vmul.f32 %v6028_v9, %v1889_v47  ;;  %v6035_v2 = vld [vmem:[#allocation48_spill] sm:$0xff]  ;;  %v6036_v41 = vld [vmem:[#allocation47_spill] sm:$0xff] }
 0x1d8   : > { %2418 = vst.msk [vmem:[#allocation3 + $0x20] sm:$0xff] %vm980_vm5, %v2410_v19  ;;  %v2104_v17 = vadd.f32 %v2096_v25, %v2076_v4  ;;  %vm920_vm11 = vcmp.ge.f32.partialorder %v5130_v53, 0.0  ;;  %v951_v16 = vmul.f32 %v5060_v14, %v5130_v53  ;;  %vm921_vm14 = vcmp.ge.f32.partialorder %v5134_v27, 0.0 }
 0x1d9   : > { %v1965_v38 = vadd.f32 %v1957_v57, %v1937_v55  ;;  %v2271_v15 = vadd.f32 %v2263_v10, %v2243_v40  ;;  %v952_v50 = vmul.f32 %v5060_v14, %v5134_v27  ;;  %vm922_vm15 = vcmp.ge.f32.partialorder %v5140_v18, 0.0 }
 0x1da   : > { %v2132_v36 = vadd.f32 %v2124_v20, %v2104_v17  ;;  %v953_v62 = vmul.f32 %v5060_v14, %v5140_v18  ;;  %v2319_v42 = vmul.f32 %v6029_v39, %v1917_v49  ;;  %v976_v46 = vsel %vm920_vm11, %v5130_v53, %v951_v16  ;;  %v2487_v49 = vld [vmem:[%s5692_s8 + $0x58] sm:$0xff] }
 0x1db   : > { %v2299_v47 = vadd.f32 %v2291_v43, %v2271_v15  ;;  %v3677_v13 = vpack.c.bf16 %v2483_v61, %v2482_v23  ;;  %1029 = vst.msk [vmem:[#allocation2 + $0xc0] sm:$0xff] %vm980_vm5, %v976_v46  ;;  %v977_v3 = vsel %vm921_vm14, %v5134_v27, %v952_v50  ;;  %v3681_v8 = vpack.c.bf16 %v2485_v37, %v2484_v32  ;;  %v6033_v27 = vld [vmem:[#allocation17_spill] sm:$0xff]  ;;  %v2359_v17 = vld [vmem:[#allocation2 + $0x75] sm:$0xff] }
 0x1dc   : > { %v2160_v59 = vadd.f32 %v2152_v22, %v2132_v36  ;;  %v978_v21 = vsel %vm922_vm15, %v5140_v18, %v953_v62  ;;  %v2208_v53 = vmul.f32 %v5928_v11, %v5235_v33  ;;  %v2347_v57 = vmul.f32 %v6030_v6, %v5228_v0  ;;  %1030 = vst.msk [vmem:[#allocation2 + $0xc8] sm:$0x3f] %vm982_vm7, %v977_v3  ;;  %v6034_v18 = vld [vmem:[#allocation50_spill] sm:$0xff]  ;;  %v6037_v22 = vld [vmem:[#allocation44_spill] sm:$0xff] }
 0x1dd   : > { %v2327_v5 = vadd.f32 %v2319_v42, %v2299_v47  ;;  %1032 = vst.msk [vmem:[#allocation2 + $0xca] sm:$0xc0] %vm985_vm8, %v977_v3  ;;  %3678 = vmatprep.subr.bf16.mxu1 %v3677_v13  ;;  %v2406_v45 = vadd.f32 %v6034_v18, %v6033_v27  ;;  %v1993_v51 = vadd.f32 %v1985_v35, %v1965_v38  ;;  %v2387_v42 = vld [vmem:[#allocation2 + $0x76] sm:$0xff] }
 0x1de   : > { %1033 = vst.msk [vmem:[#allocation2 + $0xd2] sm:$0xff] %vm980_vm5, %v978_v21  ;;  %v2188_v24 = vadd.f32 %v2180_v30, %v2160_v59  ;;  %3680 = vmatpush3.bf16.msra.mxu1 %v3677_v13  ;;  %v895_v19 = vadd.f32 %v6036_v41, %v6035_v2  ;;  %v2315_v4 = vmul.f32 %v6029_v39, %v2303_v54  ;;  %v2248_v30 = vld [vmem:[#allocation2 + $0x81] sm:$0xff] }
 0x1df   : > { %v2355_v0 = vadd.f32 %v2347_v57, %v2327_v5  ;;  %v2375_v25 = vmul.f32 %v6031_v1, %v5233_v52  ;;  %3682 = vmatprep.subr.bf16.mxu1 %v3681_v8  ;;  %v3685_v20 = vpack.c.bf16 %v2487_v49, %v2486_v26  ;;  %2414 = vst.msk [vmem:[#allocation3] sm:$0xff] %vm980_vm5, %v2406_v45  ;;  %v6038_v52 = vld [vmem:[#allocation59_spill] sm:$0xff]  ;;  %v6040_v5 = vmov 0.0|0.0   ;;  %v5335_v45 = vld [vmem:[%s6041_s7] ss:$0 sm:$0xff]  ;;  %s5545_s7 = scalar_lea.vmem %s6044_s26, %s3317_s22  ;;  %s3247_s22 = sshll.u32 %s581_s19, 6 }
 0x1e0   : > { %v2232_v55 = vmul.f32 %v6015_v48, %v2220_v12  ;;  %vm923_vm7 = vcmp.ge.f32.partialorder %v895_v19, 0.0  ;;  %v954_v35 = vmul.f32 %v5060_v14, %v895_v19  ;;  %v2323_v40 = vadd.f32 %v2315_v4, %v6037_v22  ;;  %s583_s20 = scalar_lea.vmem [#allocation4], %s3247_s22  ;;  %s3827_s22 = sshll.u32 %s3891_s25, 4  ;;  %s3828_s22 = int_to_ptr.vmem [resolvable:$false] %s3827_s22 }
 0x1e1   : > { %v2343_v10 = vmul.f32 %v6030_v6, %v2331_v56  ;;  %v2383_v43 = vadd.f32 %v2375_v25, %v2355_v0  ;;  %v2403_v23 = vmul.f32 %v6032_v44, %v5235_v33  ;;  %v2021_v38 = vadd.f32 %v5247_v58, %v1993_v51  ;;  %v2276_v58 = vld [vmem:[#allocation2 + $0x82] sm:$0xff]  ;;  %s3829_s3 = scalar_lea.vmem %s3828_s22, 2048 }
 0x1e2   : > { %v2240_v61 = vadd.f32 %v2232_v55, %v6038_v52  ;;  %v2216_v15 = vadd.f32 %v2208_v53, %v2188_v24  ;;  %3684 = vmatpush3.bf16.msra.mxu1 %v3681_v8  ;;  %v979_v16 = vsel %vm923_vm7, %v895_v19, %v954_v35  ;;  %v2029_v14 = vld [vmem:[#allocation2 + $0xc0] sm:$0xff]  ;;  %v2371_v36 = vmul.f32 %v6031_v1, %v2359_v17 }
 0x1e3   : > { %v2351_v32 = vadd.f32 %v2343_v10, %v2323_v40  ;;  %v2411_v37 = vadd.f32 %v2403_v23, %v2383_v43  ;;  %3686 = vmatprep.subr.bf16.mxu1 %v3685_v20  ;;  %1034 = vst.msk [vmem:[#allocation2 + $0xda] sm:$0xf] %vm988_vm10, %v979_v16  ;;  %v2260_v50 = vmul.f32 %v6016_v29, %v2248_v30  ;;  %v2057_v47 = vld [vmem:[#allocation2 + $0xc1] sm:$0xff] }
 0x1e4   : > { %v2041_v62 = vmul.f32 %v5960_v31, %v2029_v14  ;;  %v2236_v33 = vmul.f32 %v6015_v48, %v2029_v14  ;;  %v2085_v46 = vld [vmem:[#allocation2 + $0xc2] sm:$0xff]  ;;  %v2069_v21 = vmul.f32 %v6003_v60, %v2057_v47  ;;  %v2264_v26 = vmul.f32 %v6016_v29, %v2057_v47  ;;  %v5325_v31 = vld [vmem:[%s6039_s6] ss:$0 sm:$0xff]  ;;  %v2651_v14 = vld [vmem:[%s5694_s10 + $0x18] sm:$0xff] }
 0x1e5   : > { %2419 = vst.msk [vmem:[#allocation3 + $0x28] sm:$0xff] %vm980_vm5, %v2411_v37  ;;  %v2379_v13 = vadd.f32 %v2371_v36, %v2351_v32  ;;  %v2268_v54 = vadd.f32 %v2260_v50, %v2240_v61  ;;  %v2113_v8 = vld [vmem:[#allocation2 + $0xc3] sm:$0xff]  ;;  %v2399_v12 = vmul.f32 %v6032_v44, %v2387_v42  ;;  %v2288_v53 = vmul.f32 %v6028_v9, %v2276_v58  ;;  %v2650_v37 = vld [vmem:[%s5694_s10 + $0x10] sm:$0xff] }
 0x1e6   : > { %v2049_v59 = vadd.f32 %v2041_v62, %v2021_v38  ;;  %v2244_v3 = vadd.f32 %v2236_v33, %v2216_v15  ;;  %3688 = vmatpush3.bf16.msra.mxu1 %v3685_v20  ;;  %v2422_v49 = vld [vmem:[#allocation3] sm:$0xff]  ;;  %v2097_v27 = vmul.f32 %v6004_v63, %v2085_v46  ;;  %v2292_v18 = vmul.f32 %v6028_v9, %v2085_v46  ;;  %v2649_v30 = vld [vmem:[%s5694_s10 + $0x8] sm:$0xff]  ;;  %v2225_v36 = vld [vmem:[#allocation2 + $0xd0] sm:$0xff] }
 0x1e7   : > { %3710 = vmatprep.subr.bf16.mxu1 %v6040_v5  ;;  %v2304_v56 = vld [vmem:[#allocation2 + $0x83] sm:$0xff]  ;;  %v2125_v51 = vmul.f32 %v5963_v34, %v2113_v8  ;;  %v2320_v44 = vmul.f32 %v6029_v39, %v2113_v8  ;;  %v2437_v2 = vadd.f32 %v5325_v31, %v2422_v49  ;;  %v2407_v4 = vadd.f32 %v2399_v12, %v2379_v13  ;;  %v3822_v58 = vld [vmem:[%s5829_s5 + $0x30] ss:$0 sm:$0xff]  ;;  %v2253_v13 = vld [vmem:[#allocation2 + $0xd1] sm:$0xff]  ;;  %s3318_s5 = sshll.u32 %s4010_s0, 10  ;;  %s5643_s0 = scalar_lea.sflag [#allocation5], %s581_s19 }
 0x1e8   : > { %v2077_v57 = vadd.f32 %v2069_v21, %v2049_v59  ;;  %v2272_v60 = vadd.f32 %v2264_v26, %v2244_v3  ;;  %v2141_v24 = vld [vmem:[#allocation2 + $0xc4] sm:$0xff]  ;;  %v2296_v63 = vadd.f32 %v2288_v53, %v2268_v54  ;;  %v2316_v55 = vmul.f32 %v6029_v39, %v2304_v56  ;;  %v2281_v12 = vld [vmem:[#allocation2 + $0xd2] sm:$0xff]  ;;  %s5635_s21 = scalar_lea.hbm %s5702_s18, %s3318_s5 }
 0x1e9   : > { %v2332_v0 = vld [vmem:[#allocation2 + $0x84] sm:$0xff]  ;;  %vm2446_vm8 = vcmp.ge.f32.partialorder %v2437_v2, 0.0  ;;  %v2460_v20 = vmul.f32 %v5335_v45, %v2437_v2  ;;  %v2153_v22 = vmul.f32 %v5909_v7, %v2141_v24  ;;  %v2348_v40 = vmul.f32 %v6030_v6, %v2141_v24  ;;  %2415 = vst.msk [vmem:[#allocation3 + $0x8] sm:$0xff] %vm980_vm5, %v2407_v4  ;;  %v2425_v56 = vld [vmem:[#allocation3 + $0x18] sm:$0xff] }
 0x1ea   : > { %v2105_v41 = vadd.f32 %v2097_v27, %v2077_v57  ;;  %v2300_v19 = vadd.f32 %v2292_v18, %v2272_v60  ;;  %v2169_v25 = vld [vmem:[#allocation2 + $0xc5] sm:$0xff]  ;;  %v2324_v52 = vadd.f32 %v2316_v55, %v2296_v63  ;;  %v2344_v61 = vmul.f32 %v6030_v6, %v2332_v0  ;;  %v2309_v18 = vld [vmem:[#allocation2 + $0xd3] sm:$0xff] }
 0x1eb   : > { %v2360_v10 = vld [vmem:[#allocation2 + $0x85] sm:$0xff]  ;;  %v2468_v23 = vsel %vm2446_vm8, %v2437_v2, %v2460_v20  ;;  %v2181_v38 = vmul.f32 %v5910_v28, %v2169_v25  ;;  %v2376_v16 = vmul.f32 %v6031_v1, %v2169_v25  ;;  %v3693_v3 = vpack.c.bf16 %v2651_v14, %v2650_v37  ;;  %v2365_v25 = vld [vmem:[#allocation2 + $0xd5] sm:$0xff] }
 0x1ec   : > { %v2133_v35 = vadd.f32 %v2125_v51, %v2105_v41  ;;  %v2328_v34 = vadd.f32 %v2320_v44, %v2300_v19  ;;  %v2648_v17 = vld [vmem:[%s5694_s10] sm:$0xff]  ;;  %3531 = vmatprep.mubr.msk.f32.mxu1 %vm980_vm5, %v2468_v23  ;;  %v2352_v50 = vadd.f32 %v2344_v61, %v2324_v52  ;;  %v2372_v62 = vmul.f32 %v6031_v1, %v2360_v10  ;;  %v2653_v49 = vld [vmem:[%s5694_s10 + $0x28] sm:$0xff]  ;;  %v2337_v19 = vld [vmem:[#allocation2 + $0xd4] sm:$0xff] }
 0x1ed   : > { %v2197_v43 = vld [vmem:[#allocation2 + $0xc6] sm:$0xff]  ;;  %v3690_v33 = vpack.c.bf16 %v2649_v30, %v2648_v17  ;;  %v2237_v26 = vmul.f32 %v6015_v48, %v2225_v36  ;;  %v2265_v60 = vmul.f32 %v6016_v29, %v2253_v13  ;;  %v2293_v44 = vmul.f32 %v6028_v9, %v2281_v12 }
 0x1ee   : > { %v2161_v7 = vadd.f32 %v2153_v22, %v2133_v35  ;;  %v2356_v15 = vadd.f32 %v2348_v40, %v2328_v34  ;;  %v2388_v32 = vld [vmem:[#allocation2 + $0x86] sm:$0xff]  ;;  %v2209_v47 = vmul.f32 %v5928_v11, %v2197_v43  ;;  %v2404_v46 = vmul.f32 %v3822_v58, %v2197_v43  ;;  %v2393_v22 = vld [vmem:[#allocation2 + $0xd6] sm:$0xff] }
 0x1ef   : > { %v2380_v54 = vadd.f32 %v2372_v62, %v2352_v50  ;;  %v2400_v59 = vmul.f32 %v3822_v58, %v2388_v32  ;;  %3691 = vmatpush3.bf16.msra.mxu0 %v3690_v33  ;;  %v2652_v11 = vld [vmem:[%s5694_s10 + $0x20] sm:$0xff]  ;;  %v2321_v29 = vmul.f32 %v6029_v39, %v2309_v18  ;;  %v2440_v0 = vadd.f32 %v5325_v31, %v2425_v56  ;;  %v2427_v55 = vld [vmem:[#allocation3 + $0x28] sm:$0xff] }
 0x1f0   : > { %v2189_v28 = vadd.f32 %v2181_v38, %v2161_v7  ;;  %v2384_v42 = vadd.f32 %v2376_v16, %v2356_v15  ;;  %3692 = vmatprep.subr.bf16.mxu0 %v6040_v5  ;;  %v2423_v53 = vld [vmem:[#allocation3 + $0x8] sm:$0xff]  ;;  %v3696_v51 = vpack.c.bf16 %v2653_v49, %v2652_v11  ;;  %v2426_v41 = vld [vmem:[#allocation3 + $0x20] sm:$0xff]  ;;  %v2349_v35 = vmul.f32 %v6030_v6, %v2337_v19  ;;  %v2662_v11 = vld [vmem:[%s5694_s10 + $0x70] sm:$0xff] }
 0x1f1   : > { %v2408_v57 = vadd.f32 %v2400_v59, %v2380_v54  ;;  %v2438_v48 = vadd.f32 %v5325_v31, %v2423_v53  ;;  %v2441_v20 = vadd.f32 %v5325_v31, %v2426_v41  ;;  %v2377_v39 = vmul.f32 %v6031_v1, %v2365_v25  ;;  %v2658_v54 = vld [vmem:[%s5694_s10 + $0x50] sm:$0xff]  ;;  %v2659_v59 = vld [vmem:[%s5694_s10 + $0x58] sm:$0xff]  ;;  %v2741_v49 = vld [vmem:[%s5697_s13] sm:$0xff] }
 0x1f2   : > { %v2217_v21 = vadd.f32 %v2209_v47, %v2189_v28  ;;  %v2412_v8 = vadd.f32 %v2404_v46, %v2384_v42  ;;  %v2463_v17 = vmul.f32 %v5335_v45, %v2440_v0  ;;  %v2442_v30 = vadd.f32 %v5325_v31, %v2427_v55  ;;  %v2654_v42 = vld [vmem:[%s5694_s10 + $0x30] sm:$0xff]  ;;  %v2742_v12 = vld [vmem:[%s5697_s13 + $0x8] sm:$0xff] }
 0x1f3   : > { %2416 = vst.msk [vmem:[#allocation3 + $0x10] sm:$0xff] %vm980_vm5, %v2408_v57  ;;  %3694 = vmatpush3.bf16.msra.mxu0 %v3693_v3  ;;  %vm2447_vm10 = vcmp.ge.f32.partialorder %v2438_v48, 0.0  ;;  %v2461_v2 = vmul.f32 %v5335_v45, %v2438_v48  ;;  %vm2449_vm13 = vcmp.ge.f32.partialorder %v2440_v0, 0.0  ;;  %v2464_v23 = vmul.f32 %v5335_v45, %v2441_v20  ;;  %v2660_v3 = vld [vmem:[%s5694_s10 + $0x60] sm:$0xff]  ;;  %v2743_v53 = vld [vmem:[%s5697_s13 + $0x10] sm:$0xff]  ;;  %v2746_v18 = vld [vmem:[%s5697_s13 + $0x28] sm:$0xff] }
 0x1f4   : > { %2420 = vst.msk [vmem:[#allocation3 + $0x30] sm:$0xff] %vm980_vm5, %v2412_v8  ;;  %v2245_v27 = vadd.f32 %v2237_v26, %v2217_v21  ;;  %3695 = vmatprep.subr.bf16.mxu0 %v6040_v5  ;;  %v2405_v61 = vmul.f32 %v3822_v58, %v2393_v22  ;;  %vm2450_vm0 = vcmp.ge.f32.partialorder %v2441_v20, 0.0  ;;  %v2471_v1 = vsel %vm2449_vm13, %v2440_v0, %v2463_v17  ;;  %v2655_v58 = vld [vmem:[%s5694_s10 + $0x38] sm:$0xff]  ;;  %v2661_v8 = vld [vmem:[%s5694_s10 + $0x68] sm:$0xff] }
 0x1f5   : > { %v2469_v63 = vsel %vm2447_vm10, %v2438_v48, %v2461_v2  ;;  %v2465_v15 = vmul.f32 %v5335_v45, %v2442_v30  ;;  %v2472_v32 = vsel %vm2450_vm0, %v2441_v20, %v2464_v23  ;;  %vm2451_vm6 = vcmp.ge.f32.partialorder %v2442_v30, 0.0  ;;  %v2745_v48 = vld [vmem:[%s5697_s13 + $0x20] sm:$0xff]  ;;  %v2750_v41 = vld [vmem:[%s5697_s13 + $0x48] sm:$0xff] }
 0x1f6   : > { %v2273_v24 = vadd.f32 %v2265_v60, %v2245_v27  ;;  %3532 = vmatmul.mubr.msk.f32.vlgmr.msra.gmra.mrb[0].mxu1 %vm980_vm5, %v2469_v63  ;;  %v6042_v47 = vmov 0.0   ;;  %v3699_v46 = vpack.c.bf16 %v2655_v58, %v2654_v42  ;;  %v3705_v21 = vpack.c.bf16 %v2659_v59, %v2658_v54  ;;  %v2744_v27 = vld [vmem:[%s5697_s13 + $0x18] sm:$0xff]  ;;  %v2749_v2 = vld [vmem:[%s5697_s13 + $0x40] sm:$0xff]  ;;  %v2869_v59 = vld [vmem:[%s5700_s16 + $0x8] sm:$0xf] }
 0x1f7   : > { %3697 = vmatpush3.bf16.msra.mxu0 %v3696_v51  ;;  %v2473_v14 = vsel %vm2451_vm6, %v2442_v30, %v2465_v15  ;;  %v3708_v26 = vpack.c.bf16 %v2661_v8, %v2660_v3  ;;  %v3711_v57 = vpack.c.bf16 %v2742_v12, %v2741_v49  ;;  %v3714_v60 = vpack.c.bf16 %v2744_v27, %v2743_v53  ;;  %v2747_v51 = vld [vmem:[%s5697_s13 + $0x30] sm:$0xff]  ;;  %v3282_v63 = vld [vmem:[%s5693_s9] ss:$0 sm:$0xff] }
 0x1f8   : > { %v2301_v4 = vadd.f32 %v2293_v44, %v2273_v24  ;;  %3698 = vmatprep.subr.bf16.mxu0 %v6040_v5  ;;  %v3717_v56 = vpack.c.bf16 %v2746_v18, %v2745_v48  ;;  %v2748_v24 = vld [vmem:[%s5697_s13 + $0x38] sm:$0xff]  ;;  %v3723_v19 = vpack.c.bf16 %v2750_v41, %v2749_v2  ;;  %v2868_v54 = vld [vmem:[%s5700_s16] sm:$0xff]  ;;  %v2855_v48 = vld [vmem:[%s5699_s15 + $0x10] sm:$0xff] }
 0x1f9   : > { %3712 = vmatpush3.bf16.msra.mxu1 %v3711_v57  ;;  %v3720_v44 = vpack.c.bf16 %v2748_v24, %v2747_v51  ;;  %v3728_v3 = vpack.c.bf16 %v2869_v59, %v2868_v54  ;;  %v2663_v8 = vld [vmem:[%s5695_s11] sm:$0x1]  ;;  %v2846_v24 = vld [vmem:[%s5545_s7 + $0x8] sm:$0xff] }
 0x1fa   : > { %v2329_v9 = vadd.f32 %v2321_v29, %v2301_v4  ;;  %v2424_v10 = vld [vmem:[#allocation3 + $0x10] sm:$0xff]  ;;  %3713 = vmatprep.subr.bf16.mxu1 %v6040_v5  ;;  %v2853_v27 = vld [vmem:[%s5699_s15] sm:$0xff]  ;;  %v2858_v41 = vld [vmem:[%s5699_s15 + $0x28] sm:$0xff] }
 0x1fb   : > { %v2428_v34 = vld [vmem:[#allocation3 + $0x30] sm:$0xff]  ;;  %v2439_v43 = vadd.f32 %v5325_v31, %v2424_v10  ;;  %3700 = vmatpush3.bf16.msra.mxu0 %v3699_v46  ;;  %v2845_v51 = vld [vmem:[%s5545_s7] sm:$0xff] }
 0x1fc   : > { %v2357_v40 = vadd.f32 %v2349_v35, %v2329_v9  ;;  %v2443_v52 = vadd.f32 %v5325_v31, %v2428_v34  ;;  %3701 = vmatprep.subr.bf16.mxu0 %v6040_v5  ;;  %v2857_v2 = vld [vmem:[%s5699_s15 + $0x20] sm:$0xff] }
 0x1fd   : > { %vm2448_vm1 = vcmp.ge.f32.partialorder %v2439_v43, 0.0  ;;  %v2462_v7 = vmul.f32 %v5335_v45, %v2439_v43  ;;  %3715 = vmatpush3.bf16.msra.mxu1 %v3714_v60  ;;  %v2854_v60 = vld [vmem:[%s5699_s15 + $0x8] sm:$0xff] }
 0x1fe   : > { %v2385_v6 = vadd.f32 %v2377_v39, %v2357_v40  ;;  %v2466_v37 = vmul.f32 %v5335_v45, %v2443_v52  ;;  %vm2452_vm9 = vcmp.ge.f32.partialorder %v2443_v52, 0.0  ;;  %3716 = vmatprep.subr.bf16.mxu1 %v6040_v5  ;;  %v3734_v18 = vpack.c.bf16 %v2854_v60, %v2853_v27 }
 0x1ff   : > { %v2470_v16 = vsel %vm2448_vm1, %v2439_v43, %v2462_v7 }
 0x200   : > { %v2413_v38 = vadd.f32 %v2405_v61, %v2385_v6  ;;  %3534 = vmatprep.mubr.msk.f32.mxu1 %vm980_vm5, %v2470_v16  ;;  %v2474_v36 = vsel %vm2452_vm9, %v2443_v52, %v2466_v37 }
 0x201   : > { %3535 = vmatmul.mubr.msk.f32.gmra.mrb[2].mxu1 %vm980_vm5, %v2471_v1 }
 0x202   : > { %2421 = vst.msk [vmem:[#allocation3 + $0x38] sm:$0xff] %vm980_vm5, %v2413_v38  ;;  %3537 = vmatprep.mubr.msk.f32.mxu1 %vm980_vm5, %v2472_v32  ;;  %3718 = vmatpush3.bf16.msra.mxu1 %v3717_v56  ;;  %v2856_v56 = vld [vmem:[%s5699_s15 + $0x18] sm:$0xff] }
 0x203   : > { %3719 = vmatprep.subr.bf16.mxu1 %v6040_v5 }
 0x205   : > { %3538 = vmatmul.mubr.msk.f32.gmra.mrb[4].mxu1 %vm980_vm5, %v2473_v14 }
 0x206   : > { %3540 = vmatprep.mubr.msk.f32.mxu1 %vm980_vm5, %v2474_v36  ;;  %3721 = vmatpush3.bf16.msra.mxu1 %v3720_v44  ;;  %v3738_v44 = vpack.c.bf16 %v2856_v56, %v2855_v48 }
 0x207   : > { %3722 = vmatprep.subr.bf16.mxu1 %v6040_v5 }
 0x209   : > { %v2429_v50 = vld [vmem:[#allocation3 + $0x38] sm:$0xff] }
 0x20a   : > { %v2444_v62 = vadd.f32 %v5325_v31, %v2429_v50  ;;  %v2656_v31 = vld [vmem:[%s5694_s10 + $0x40] sm:$0xff]  ;;  %3724 = vmatpush3.bf16.msra.mxu1 %v3723_v19  ;;  %v2847_v19 = vld [vmem:[%s5545_s7 + $0x10] sm:$0xff] }
 0x20b   : > { %3725 = vmatprep.subr.bf16.mxu1 %v6040_v5 }
 0x20c   : > { %vm2453_vm12 = vcmp.ge.f32.partialorder %v2444_v62, 0.0  ;;  %v2467_v33 = vmul.f32 %v5335_v45, %v2444_v62  ;;  %v2657_v45 = vld [vmem:[%s5694_s10 + $0x48] sm:$0xff] }
 0x20d   : > { %v3702_v13 = vpack.c.bf16 %v2657_v45, %v2656_v31  ;;  %v2751_v31 = vld [vmem:[%s5697_s13 + $0x50] sm:$0xff]  ;;  %v2752_v45 = vld [vmem:[%s5697_s13 + $0x58] sm:$0xff] }
 0x20e   : > { %v2475_v28 = vsel %vm2453_vm12, %v2444_v62, %v2467_v33 }
 0x20f   : > { %3541 = vmatmul.mubr.msk.f32.gmra.mrb[6].mxu1 %vm980_vm5, %v2475_v28  ;;  %3703 = vmatpush3.bf16.msra.mxu0 %v3702_v13  ;;  %v3726_v13 = vpack.c.bf16 %v2752_v45, %v2751_v31 }
 0x210   : > { %3600 = vmatprep.mubr.msk.f32.mxu1 %vm3889_vm3, %v6042_v47  ;;  %3704 = vmatprep.subr.bf16.mxu0 %v6040_v5  ;;  %vm2624_vm3 = vcmask 982016  }
 0x211   : > { %3727 = vmatpush3.bf16.msra.mxu1 %v3726_v13 }
 0x212   : > { %3730 = vmatprep.subr.msk.bf16.mxu1 %vm4044_vm2, %v3728_v3 }
 0x213   : > { %3706 = vmatpush3.bf16.msra.mxu0 %v3705_v21 }
 0x214   : > { %3707 = vmatprep.subr.bf16.mxu0 %v6040_v5 }
 0x217   : > { %3709 = vmatpush3.bf16.msra.mxu0 %v3708_v26 }
 0x218   : > { %3571 = vmatprep.subr.mxu0 %v6042_v47 }
 0x21b   : > { %3572 = vmatpush3.msra.mxu0 %v2662_v11  ;;  %v2737_v11 = vld [vmem:[%s5696_s12] sm:$0x1] }
 0x2c9   : > { %v3533_v4 = vpop.f32.mrb[0].mxu1 }
 0x2ca   : > { %v2585_v29 = vpop.f32.mrb[1].mxu1  ;;  %v5476_v0 = vadd.f32 %v3533_v4, %v3282_v63  ;;  %v2848_v4 = vld [vmem:[%s5545_s7 + $0x18] sm:$0xff] }
 0x2cb   : > { %v5478_v25 = vadd.f32 %v3282_v63, %v2585_v29  ;;  %v3742_v29 = vpack.c.bf16 %v2858_v41, %v2857_v2 }
 0x2cc   : > { %v2626_v20 = vsel %vm2624_vm3, %v5476_v0, 0.0 }
 0x2cd   : > { %v2625_v55 = vsel %vm2624_vm3, %v5478_v25, 0.0 }
 0x2ce   : > { %v2627_v22 = vadd.f32 %v2626_v20, %v2625_v55  ;;  %v2859_v20 = vld [vmem:[%s5699_s15 + $0x30] sm:$0xff]  ;;  %v2860_v55 = vld [vmem:[%s5699_s15 + $0x38] sm:$0xff] }
 0x2d4   : > { %v3536_v9 = vpop.f32.mrb[2].mxu1 }
 0x2d5   : > { %v2595_v35 = vpop.f32.mrb[3].mxu1  ;;  %v5486_v34 = vadd.f32 %v3536_v9, %v3282_v63  ;;  %v2850_v9 = vld [vmem:[%s5545_s7 + $0x28] sm:$0xff] }
 0x2d6   : > { %v5484_v5 = vadd.f32 %v3282_v63, %v2595_v35  ;;  %v3746_v35 = vpack.c.bf16 %v2860_v55, %v2859_v20 }
 0x2d7   : > { %v2630_v43 = vsel %vm2624_vm3, %v5486_v34, 0.0 }
 0x2d8   : > { %v2628_v40 = vsel %vm2624_vm3, %v5484_v5, 0.0  ;;  %v3539_v39 = vpop.f32.mrb[4].mxu1 }
 0x2d9   : > { %v2629_v10 = vadd.f32 %v2628_v40, %v2627_v22  ;;  %v2605_v17 = vpop.f32.mrb[5].mxu1  ;;  %v5496_v6 = vadd.f32 %v3539_v39, %v3282_v63  ;;  %v2851_v22 = vld [vmem:[%s5545_s7 + $0x30] sm:$0xff]  ;;  %v2861_v40 = vld [vmem:[%s5699_s15 + $0x40] sm:$0xff]  ;;  %v2862_v39 = vld [vmem:[%s5699_s15 + $0x48] sm:$0xff] }
 0x2da   : > { %v5490_v30 = vadd.f32 %v3282_v63, %v2605_v17  ;;  %v3750_v17 = vpack.c.bf16 %v2862_v39, %v2861_v40 }
 0x2db   : > { %v2631_v52 = vadd.f32 %v2630_v43, %v2629_v10  ;;  %v2634_v1 = vsel %vm2624_vm3, %v5496_v6, 0.0  ;;  %v2852_v10 = vld [vmem:[%s5545_s7 + $0x38] sm:$0xff]  ;;  %v2863_v43 = vld [vmem:[%s5699_s15 + $0x50] sm:$0xff] }
 0x2dc   : > { %v2632_v23 = vsel %vm2624_vm3, %v5490_v30, 0.0 }
 0x2dd   : > { %v2633_v61 = vadd.f32 %v2632_v23, %v2631_v52  ;;  %v2864_v23 = vld [vmem:[%s5699_s15 + $0x58] sm:$0xff] }
 0x2de   : > { %v3754_v52 = vpack.c.bf16 %v2864_v23, %v2863_v43 }
 0x2df   : > { %v2635_v32 = vadd.f32 %v2634_v1, %v2633_v61  ;;  %v2865_v61 = vld [vmem:[%s5699_s15 + $0x60] sm:$0xff]  ;;  %v2867_v1 = vld [vmem:[%s5699_s15 + $0x70] sm:$0xff] }
 0x2e2   : > { %v3542_v7 = vpop.f32.mrb[6].mxu1 }
 0x2e3   : > { %v2615_v38 = vpop.f32.mrb[7].mxu1  ;;  %v5500_v15 = vadd.f32 %v3542_v7, %v3282_v63  ;;  %v2866_v7 = vld [vmem:[%s5699_s15 + $0x68] sm:$0xff] }
 0x2e4   : > { %v5502_v16 = vadd.f32 %v3282_v63, %v2615_v38  ;;  %v2849_v63 = vld [vmem:[%s5545_s7 + $0x20] sm:$0xff]  ;;  %v3758_v38 = vpack.c.bf16 %v2866_v7, %v2865_v61  ;;  %s3169_s7 = sshll.u32 %s583_s20, 4  ;;  %s5637_s7 = int_to_ptr.vmem [resolvable:$true] %s3169_s7 }
 0x2e5   : > { %v2638_v36 = vsel %vm2624_vm3, %v5500_v15, 0.0  ;;  %s3823_s24 = scalar_lea.vmem %s5637_s7, 1024  ;;  %p3830_p0 = scmp.lt.s32.totalorder %s5637_s7, %s3828_s22 }
 0x2e6   : > { %v2636_v37 = vsel %vm2624_vm3, %v5502_v16, 0.0  ;;  %p3824_p11 = scmp.ne.s32.totalorder %s5637_s7, %s3823_s24  ;;  %p3831_p1 = scmp.lt.s32.totalorder %s3829_s3, %s3823_s24 }
 0x2e7   : > { %v2637_v14 = vadd.f32 %v2636_v37, %v2635_v32  ;;  %v2753_v32 = vld [vmem:[%s5698_s14] sm:$0x1] }
 0x2e8   : > { %p3825_p12 = pnand %p3824_p11, %p4027_p5  ;;  %p3832_p2 = por %p3831_p1, %p3830_p0 }
 0x2e9   : > { %v2639_v50 = vadd.f32 %v2638_v36, %v2637_v14 }
 0x2ea   : > { %p3826_p13 = pneg %p3825_p12 }
 0x2eb   : > { %v2640_v62 = vrot.slane %v2639_v50, 4 }
 0x2ec   : > { %p3833_p3 = pnand %p3832_p2, %p3826_p13 }
 0x2ed   : > { %v2641_v33 = vadd.f32 %v2640_v62, %v2639_v50 }
 0x2ef   : > { %v2642_v28 = vrot.slane %v2641_v33, 2 }
 0x2f1   : > { %v2643_v47 = vadd.f32 %v2642_v28, %v2641_v33 }
 0x2f3   : > { %v2644_v42 = vrot.slane %v2643_v47, 1 }
 0x2f5   : > { %v2645_v58 = vadd.f32 %v2644_v42, %v2643_v47  ;;  %v6045_v47 = vld [vmem:[#allocation9_spill] sm:$0xff] }
 0x2f7   : > { %v2647_v46 = vmul.f32 0.015625, %v2645_v58 }
 0x2f9   : > { %3574 = vmatmul.mubr.msk.f32.vlgmr.msra.gmra.mrb[50].mxu0 %vm2624_vm3, %v2647_v46 }
 0x3cc   : > { %v2733_v26 = vpop.f32.mrb[50].mxu0 }
 0x3cd   : > { %v2734_v49 = vadd.f32 %v2733_v26, %v2663_v8  ;;  %v3575_v12 = vpop.f32.mrb[51].mxu0 }
 0x3cf   : > { %vm2738_vm11 = vcmp.ge.f32.partialorder %v2734_v49, 0.0  ;;  %v2739_v53 = vmul.f32 %v2737_v11, %v2734_v49 }
 0x3d1   : > { %v2740_v57 = vsel %vm2738_vm11, %v2734_v49, %v2739_v53 }
 0x3d2   : > { %3601 = vmatmul.mubr.msk.f32.vlgmr.msra.gmra.mrb[8].mxu1 %vm980_vm5, %v2740_v57 }
 0x3d3   : > { %3733 = vmatpush3.bf16.msk.msra.mxu1 %vm4044_vm2, %v3728_v3  ;;  %3607 = vmatprep.mubr.msk.f32.mxu1 %vm628_vm4, %v2845_v51  ;;  %vm3146_vm2 = vcmask 261120  }
 0x3d4   : > { %3735 = vmatprep.subr.bf16.mxu1 %v3734_v18 }
 0x3d6   : > { %3608 = vmatmul.mubr.msk.f32.vlgmr.msra.gmra.mrb[10].mxu1 %vm628_vm4, %v2846_v24 }
 0x3d7   : > { %3737 = vmatpush3.bf16.msra.mxu1 %v3734_v18  ;;  %3610 = vmatprep.mubr.msk.f32.mxu1 %vm628_vm4, %v2847_v19 }
 0x3d8   : > { %3739 = vmatprep.subr.bf16.mxu1 %v3738_v44 }
 0x3da   : > { %3611 = vmatmul.mubr.msk.f32.gmra.mrb[12].mxu1 %vm628_vm4, %v2848_v4 }
 0x3db   : > { %3741 = vmatpush3.bf16.msra.mxu1 %v3738_v44  ;;  %3613 = vmatprep.mubr.msk.f32.mxu1 %vm628_vm4, %v2849_v63 }
 0x3dc   : > { %3743 = vmatprep.subr.bf16.mxu1 %v3742_v29 }
 0x3de   : > { %3614 = vmatmul.mubr.msk.f32.gmra.mrb[14].mxu1 %vm628_vm4, %v2850_v9 }
 0x3df   : > { %3745 = vmatpush3.bf16.msra.mxu1 %v3742_v29  ;;  %3616 = vmatprep.mubr.msk.f32.mxu1 %vm628_vm4, %v2851_v22 }
 0x3e0   : > { %3747 = vmatprep.subr.bf16.mxu1 %v3746_v35 }
 0x3e2   : > { %3617 = vmatmul.mubr.msk.f32.gmra.mrb[16].mxu1 %vm628_vm4, %v2852_v10 }
 0x3e3   : > { %3749 = vmatpush3.bf16.msra.mxu1 %v3746_v35 }
 0x3e4   : > { %3751 = vmatprep.subr.bf16.mxu1 %v3750_v17 }
 0x3e7   : > { %3753 = vmatpush3.bf16.msra.mxu1 %v3750_v17 }
 0x3e8   : > { %3755 = vmatprep.subr.bf16.mxu1 %v3754_v52 }
 0x3eb   : > { %3757 = vmatpush3.bf16.msra.mxu1 %v3754_v52 }
 0x3ec   : > { %3759 = vmatprep.subr.bf16.mxu1 %v3758_v38 }
 0x3ef   : > { %3761 = vmatpush3.bf16.msra.mxu1 %v3758_v38 }
 0x3f0   : > { %3647 = vmatprep.subr.mxu1 %v2867_v1 }
 0x3f3   : > { %3648 = vmatpush3.msra.mxu1 %v2867_v1 }
 0x4a5   : > { %v2823_v37 = vpop.f32.mrb[8].mxu1 }
 0x4a6   : > { %v2824_v14 = vadd.f32 %v2823_v37, %v2753_v32  ;;  %v3602_v36 = vpop.f32.mrb[9].mxu1 }
 0x4a8   : > { %v3293_v50 = vmul.f32 -1.442695, %v2824_v14 }
 0x4aa   : > { %3816 = vpow2.f32 %v3293_v50 }
 0x4b4   : > { %v3817_v62 = vpop.eup %3816 }
 0x4b5   : > { %v2830_v33 = vadd.f32 1.0, %v3817_v62 }
 0x4b7   : > { %3818 = vrcp.f32 %v2830_v33 }
 0x4c1   : > { %v3819_v28 = vpop.eup %3818 }
 0x4c2   : > { %v2836_v42 = vrot.slane %v3819_v28, %v6045_v47 }
 0x4c4   : > { %v2837_v58 = vmul.f32 %v2836_v42, %v5478_v25  ;;  %v2838_v46 = vmul.f32 %v2836_v42, %v5476_v0  ;;  %v2839_v31 = vmul.f32 %v2836_v42, %v5484_v5  ;;  %v2840_v45 = vmul.f32 %v2836_v42, %v5486_v34  ;;  %v3311_v34 = vld [vmem:[%s5701_s17] ss:$0 sm:$0xff] }
 0x4c5   : > { %v2841_v13 = vmul.f32 %v2836_v42, %v5490_v30  ;;  %v2842_v25 = vmul.f32 %v2836_v42, %v5496_v6  ;;  %v2843_v0 = vmul.f32 %v2836_v42, %v5502_v16  ;;  %v2844_v5 = vmul.f32 %v2836_v42, %v5500_v15 }
 0x4c6   : > { %3649 = vmatprep.mubr.msk.f32.mxu1 %vm2624_vm3, %v2837_v58 }
 0x4c7   : > { %3650 = vmatmul.mubr.msk.f32.vlgmr.msra.gmra.mrb[10].mxu1 %vm2624_vm3, %v2838_v46 }
 0x4c8   : > { %3652 = vmatprep.mubr.msk.f32.mxu1 %vm2624_vm3, %v2839_v31 }
 0x4cb   : > { %3653 = vmatmul.mubr.msk.f32.gmra.mrb[12].mxu1 %vm2624_vm3, %v2840_v45 }
 0x4cc   : > { %3655 = vmatprep.mubr.msk.f32.mxu1 %vm2624_vm3, %v2841_v13 }
 0x4cf   : > { %3656 = vmatmul.mubr.msk.f32.gmra.mrb[14].mxu1 %vm2624_vm3, %v2842_v25 }
 0x4d0   : > { %3658 = vmatprep.mubr.msk.f32.mxu1 %vm2624_vm3, %v2843_v0 }
 0x4d3   : > { %3659 = vmatmul.mubr.msk.f32.gmra.mrb[16].mxu1 %vm2624_vm3, %v2844_v5 }
 0x59a   : > { %v3651_v30 = vpop.f32.mrb[10].mxu1 }
 0x59b   : > { %v3139_v6 = vadd.f32 %v3651_v30, %v3311_v34  ;;  %v3092_v16 = vpop.f32.mrb[11].mxu1 }
 0x59c   : > { %v3138_v54 = vadd.f32 %v3311_v34, %v3092_v16 }
 0x59d   : > { %3148 = vst.msk [vmem:[%s583_s20 + $0x8] sm:$0xff] %vm3146_vm2, %v3139_v6 }
 0x59e   : > { %3147 = vst.msk [vmem:[%s583_s20] sm:$0xff] %vm3146_vm2, %v3138_v54  ;;  %v3654_v15 = vpop.f32.mrb[12].mxu1 }
 0x59f   : > { %v3141_v59 = vadd.f32 %v3654_v15, %v3311_v34  ;;  %v3102_v3 = vpop.f32.mrb[13].mxu1 }
 0x5a0   : > { %v3140_v21 = vadd.f32 %v3311_v34, %v3102_v3 }
 0x5a1   : > { %3150 = vst.msk [vmem:[%s583_s20 + $0x18] sm:$0xff] %vm3146_vm2, %v3141_v59 }
 0x5a2   : > { %3149 = vst.msk [vmem:[%s583_s20 + $0x10] sm:$0xff] %vm3146_vm2, %v3140_v21  ;;  %v3657_v8 = vpop.f32.mrb[14].mxu1 }
 0x5a3   : > { %v3143_v26 = vadd.f32 %v3657_v8, %v3311_v34  ;;  %v3112_v11 = vpop.f32.mrb[15].mxu1 }
 0x5a4   : > { %v3142_v49 = vadd.f32 %v3311_v34, %v3112_v11 }
 0x5a5   : > { %3152 = vst.msk [vmem:[%s583_s20 + $0x28] sm:$0xff] %vm3146_vm2, %v3143_v26 }
 0x5a6   : > { %3151 = vst.msk [vmem:[%s583_s20 + $0x20] sm:$0xff] %vm3146_vm2, %v3142_v49  ;;  %v3660_v12 = vpop.f32.mrb[16].mxu1 }
 0x5a7   : > { %v3145_v53 = vadd.f32 %v3660_v12, %v3311_v34  ;;  %v3122_v57 = vpop.f32.mrb[17].mxu1 }
 0x5a8   : > { %v3144_v27 = vadd.f32 %v3311_v34, %v3122_v57 }
 0x5a9   : > { %3154 = vst.msk [vmem:[%s583_s20 + $0x38] sm:$0xff] %vm3146_vm2, %v3145_v53 }
 0x5aa   : > { %3153 = vst.msk [vmem:[%s583_s20 + $0x30] sm:$0xff] %vm3146_vm2, %v3144_v27 }
 0x5ab   : > { %3836 = shalt.err (!%p3833_p3)
}
 0x5ac   : > { %s3837_s19 = scalar_lea.hbm %s5635_s21, 1024  ;;  %s3841_s5 = scalar_lea.hbm %s5702_s18, 2048 }
 0x5ad   : > { %p3838_p4 = scmp.ne.s32.totalorder %s5635_s21, %s3837_s19  ;;  %p3842_p9 = scmp.lt.u32.totalorder %s5635_s21, %s5702_s18 }
 0x5ae   : > { %p3843_p10 = scmp.lt.u32.totalorder %s3841_s5, %s3837_s19  ;;  %p3845_p12 = scmp.lt.u32.totalorder %s3837_s19, %s5635_s21 }
 0x5af   : > { %p3839_p7 = pnand %p3838_p4, %p4027_p5 }
 0x5b0   : > { %p3844_p11 = por %p3843_p10, %p3842_p9 }
 0x5b1   : > { %p3840_p8 = pneg %p3839_p7 }
 0x5b2   : > { %p3846_p13 = por %p3845_p12, %p3844_p11 }
 0x5b4   : > { %p3847_p0 = pnand %p3846_p13, %p3840_p8 }
 0x5b6   : > { %3850 = shalt.err (!%p3847_p0)
}
 0x5b7   : > { %s3892_s24 = smov 128   ;;  %s3893_s25 = smov 8  }
 0x5b8   : > { %3771 = dma.vmem_to_hbm [thread:$0]  (%p4027_p5), %s5637_s7, 1024, %s5635_s21, %s5643_s0, %s3892_s24, %s3892_s24, %s3893_s25  }
 0x5b9 PF: > { %p3777_p1 = scmp.ge.s32.totalorder %s3885_s30, 2  ;;  %s3184_s22 = sand.u32 1, %s3873_s27  }
 0x5ba   : > { %s3185_s3 = scalar_lea.sflag [#allocation5], %s3184_s22 }
 0x5bb   : > { %p3774_p2 = pnand %p3777_p1, %p4031_p6 }
 0x5bd   : > { %3868 = dma.done.wait (!%p3774_p2), %s3185_s3, 1024  }
 0x5be   : > { %3870 = vsyncadd (!%p3774_p2), %s3185_s3, 4294966272  ;;  %s6046_s19 = sld [smem:[#allocation7_spill]]  ;;  %p28_p3 = scmp.ge.s32.totalorder %s4014_s1, 4  }
 0x5bf   : > { %s6047_s27 = smov %s3877_s28  ;;  %s6048_s28 = smov %s3881_s29 }
 0x5c0   : > { %s6050_s30 = smov %s4014_s1  ;;  %30 = sbr.rel (!%p28_p3) target bundleno = 12 (0xc), region = 143 }
 0x5c4   : > { %s6049_s29 = smov %s6046_s19 }
 0x5c7   :  { %3190 = vsyncpa [#allocation5], 1 }
 0x5c8   :  { %3192 = vsyncpa [#allocation5 + $0x1], 1 }

</bundles_post_ra>
